<compile_context>
chip_gen: v7x
topology: tpu7x:2x2x1
jax: 0.10.0
libtpu: 0.0.40
codegen_flags: <defaults>
</compile_context>

<pallas_src>
import functools

import jax
import jax.numpy as jnp
from jax import lax
from jax.experimental import pallas as pl
from jax.experimental.pallas import tpu as pltpu

EPS = 1e-6
GROUPS = 32
LANE = 128


# ----------------------------- kernel helpers ------------------------------
def _group_norm_silu(x3, p_ref, q_ref, gamma_ref, beta_ref):
    """GroupNorm(32, eps=1e-6) + SiLU on a (Nb, HW, C) f32 slab.

    p_ref: (C, 128) with P[c, g] = 1/(group_size * HW) if channel c belongs to
    group g (zero rows for padded channels).  q_ref: (128, C) 0/1 broadcast
    matrix (zero columns for padded channels, so padded lanes stay exactly 0).
    Two-pass: mean first, then variance of the centered values.
    """
    s = jnp.sum(x3, axis=1)                                          # (Nb, C)
    mean = jnp.dot(jnp.dot(s, p_ref[...], preferred_element_type=jnp.float32),
                   q_ref[...], preferred_element_type=jnp.float32)   # (Nb, C)
    xc = x3 - mean[:, None, :]
    sq = jnp.sum(xc * xc, axis=1)                                    # (Nb, C)
    var = jnp.dot(jnp.dot(sq, p_ref[...], preferred_element_type=jnp.float32),
                  q_ref[...], preferred_element_type=jnp.float32)    # (Nb, C)
    inv = lax.rsqrt(var + EPS)
    y = xc * inv[:, None, :] * gamma_ref[...] + beta_ref[...]
    return y * (1.0 / (1.0 + jnp.exp(-y)))                           # SiLU


def _conv3x3(a, mask_ref, w_ref, b_ref, W):
    """3x3 'same' cross-correlation on a flattened (R, Cin) f32 slab.

    9-tap accumulation: per tap, roll the slab by the flattened offset, zero
    the rows that fall outside the image (mask column k; the mask is
    HW-periodic, so folding several images into one slab is safe -- any
    cross-image wraparound lands on a masked-out row), cast to bf16 and
    accumulate one (R, Cin) @ (Cin, Cout) MXU matmul in f32.  No (R, 9*Cin)
    im2col patch is ever materialized.
    """
    R = a.shape[0]
    Cout = w_ref.shape[-1]
    acc = jnp.zeros((R, Cout), jnp.float32)
    k = 0
    for dy in (-1, 0, 1):
        for dx in (-1, 0, 1):
            s = dy * W + dx
            shifted = a if s == 0 else pltpu.roll(a, shift=(-s) % R, axis=0)
            if s == 0:
                tap = shifted.astype(jnp.bfloat16)          # center tap: mask==1
            else:
                tap = (shifted * mask_ref[:, k:k + 1]).astype(jnp.bfloat16)
            acc = acc + jnp.dot(tap, w_ref[k],
                                preferred_element_type=jnp.float32)
            k += 1
    return acc + b_ref[...]


def _resblock_kernel(W, has_skip_conv, *refs):
    if has_skip_conv:
        (x_ref, mask_ref,
         p1_ref, q1_ref, g1_ref, bt1_ref, w1_ref, cb1_ref,
         p2_ref, q2_ref, g2_ref, bt2_ref, w2_ref, cb2_ref,
         wsk_ref, bsk_ref, o_ref) = refs
    else:
        (x_ref, mask_ref,
         p1_ref, q1_ref, g1_ref, bt1_ref, w1_ref, cb1_ref,
         p2_ref, q2_ref, g2_ref, bt2_ref, w2_ref, cb2_ref, o_ref) = refs

    nb, hw, cin = x_ref.shape
    cout = o_ref.shape[-1]
    r = nb * hw

    x3 = x_ref[...].astype(jnp.float32)                       # (Nb, HW, Cin)
    a = _group_norm_silu(x3, p1_ref, q1_ref, g1_ref, bt1_ref)
    del x3  # not kept live across the convs; the skip path re-reads x_ref

    h = _conv3x3(a.reshape(r, cin), mask_ref, w1_ref, cb1_ref, W)
    h = _group_norm_silu(h.reshape(nb, hw, cout),
                         p2_ref, q2_ref, g2_ref, bt2_ref)
    h = _conv3x3(h.reshape(r, cout), mask_ref, w2_ref, cb2_ref, W)

    xs = x_ref[...].astype(jnp.float32).reshape(r, cin)       # cheap VMEM re-read
    if has_skip_conv:                                         # 1x1 conv skip
        skip = jnp.dot(xs.astype(jnp.bfloat16), wsk_ref[...],
                       preferred_element_type=jnp.float32) + bsk_ref[...]
    else:                                                     # identity skip
        skip = xs
    o_ref[...] = (h + skip).reshape(nb, hw, cout).astype(o_ref.dtype)


# ------------------------------- wrapper ------------------------------------
def _pad_last(a, target):
    pad = target - a.shape[-1]
    if pad == 0:
        return a
    return jnp.pad(a, [(0, 0)] * (a.ndim - 1) + [(0, pad)])


def _group_mats(C, C_p, HW):
    """(C_p, 128) averaging + (128, C_p) broadcast-back GroupNorm matrices."""
    g = C // GROUPS
    cid = jnp.arange(C_p)
    valid = (cid < C).astype(jnp.float32)
    gid = jnp.clip(cid // g, 0, GROUPS - 1)
    onehot = jax.nn.one_hot(gid, LANE, dtype=jnp.float32) * valid[:, None]
    p = onehot / float(g * HW)                  # (C_p, 128)
    q = onehot.T                                # (128, C_p)
    return p, q


def _pick_nb(N, HW, max_rows=1024):
    """Largest divisor of N with Nb*HW <= max_rows (fills the MXU M-dim for
    small images); Nb > 1 only if HW % 8 == 0 so in-kernel reshapes stay
    tile-aligned."""
    if HW % 8 != 0:
        return 1
    nb = 1
    for cand in range(1, N + 1):
        if N % cand == 0 and cand * HW <= max_rows:
            nb = cand
    return nb


def _vmem_limit_bytes():
    """~75% of physical VMEM (v5e/v6e: ~96 MiB, v7x: ~48 MiB)."""
    try:
        cap = pltpu.get_tpu_info().vmem_capacity_bytes
    except Exception:
        cap = 128 * 1024 * 1024
    return min(int(cap * 3 // 4), 100 * 1024 * 1024)


def resblock_forward(x_nchw, params):
    N, Cin, H, W = x_nchw.shape
    Cout = params["w1"].shape[-1]
    HW = H * W
    Cin_p = ((Cin + LANE - 1) // LANE) * LANE
    Cout_p = ((Cout + LANE - 1) // LANE) * LANE
    has_skip_conv = "wsk" in params
    Nb = _pick_nb(N, HW)
    R = Nb * HW

    # NCHW -> (N, HW, Cin_p) channels-last, zero-padded lane-dense.
    x = jnp.transpose(x_nchw, (0, 2, 3, 1)).reshape(N, HW, Cin)
    x = _pad_last(x, Cin_p)

    # GroupNorm matrices + affine params (zero-padded so padded lanes stay 0).
    p1, q1 = _group_mats(Cin, Cin_p, HW)
    p2, q2 = _group_mats(Cout, Cout_p, HW)
    g1 = _pad_last(params["g1"], Cin_p)
    b1 = _pad_last(params["b1"], Cin_p)
    g2 = _pad_last(params["g2"], Cout_p)
    b2 = _pad_last(params["b2"], Cout_p)

    # Conv weights as (9, Cin_p, Cout_p) bf16: one tap matmul per leading index.
    w1 = jnp.pad(params["w1"],
                 ((0, 0), (0, Cin_p - Cin), (0, Cout_p - Cout))).astype(jnp.bfloat16)
    cb1 = _pad_last(params["cb1"], Cout_p)
    w2 = jnp.pad(params["w2"],
                 ((0, 0), (0, Cout_p - Cout), (0, Cout_p - Cout))).astype(jnp.bfloat16)
    cb2 = _pad_last(params["cb2"], Cout_p)

    # Boundary masks packed lane-wise: column k = tap (dy, dx); HW-periodic
    # over the Nb images folded into one slab.
    hh, ww = jnp.meshgrid(jnp.arange(H), jnp.arange(W), indexing="ij")
    hh = hh.reshape(HW, 1)
    ww = ww.reshape(HW, 1)
    cols = []
    for dy in (-1, 0, 1):
        for dx in (-1, 0, 1):
            cols.append((hh + dy >= 0) & (hh + dy < H) &
                        (ww + dx >= 0) & (ww + dx < W))
    mask = jnp.tile(jnp.concatenate(cols, axis=1).astype(jnp.float32), (Nb, 1))

    def cparam(shape):
        nd = len(shape)
        # grid-invariant constants: fixed index_map + single-buffered
        return pl.BlockSpec(shape, lambda i, _nd=nd: (0,) * _nd,
                            pipeline_mode=pl.Buffered(1))

    in_specs = [
        pl.BlockSpec((Nb, HW, Cin_p), lambda i: (i, 0, 0)),         # x
        cparam((R, 9)),                                             # masks
        cparam((Cin_p, LANE)), cparam((LANE, Cin_p)),               # GN1 P, Q
        cparam((1, Cin_p)), cparam((1, Cin_p)),                     # GN1 gamma, beta
        cparam((9, Cin_p, Cout_p)), cparam((1, Cout_p)),            # conv1
        cparam((Cout_p, LANE)), cparam((LANE, Cout_p)),             # GN2 P, Q
        cparam((1, Cout_p)), cparam((1, Cout_p)),                   # GN2 gamma, beta
        cparam((9, Cout_p, Cout_p)), cparam((1, Cout_p)),           # conv2
    ]
    args = [x, mask, p1, q1, g1, b1, w1, cb1, p2, q2, g2, b2, w2, cb2]
    if has_skip_conv:
        wsk = jnp.pad(params["wsk"],
                      ((0, Cin_p - Cin), (0, Cout_p - Cout))).astype(jnp.bfloat16)
        bsk = _pad_last(params["bsk"], Cout_p)
        in_specs += [cparam((Cin_p, Cout_p)), cparam((1, Cout_p))]
        args += [wsk, bsk]

    y = pl.pallas_call(
        functools.partial(_resblock_kernel, W, has_skip_conv),
        out_shape=jax.ShapeDtypeStruct((N, HW, Cout_p), jnp.float32),
        grid=(N // Nb,),
        in_specs=in_specs,
        out_specs=pl.BlockSpec((Nb, HW, Cout_p), lambda i: (i, 0, 0)),
        compiler_params=pltpu.CompilerParams(
            dimension_semantics=("parallel",),
            vmem_limit_bytes=_vmem_limit_bytes()),
    )(*args)

    y = y[..., :Cout]                                               # drop channel pad
    return jnp.transpose(y.reshape(N, H, W, Cout), (0, 3, 1, 2))    # back to NCHW


# ------------------------- deterministic parameters --------------------------
def make_params(key, Cin, Cout):
    ks = jax.random.split(key, 10)
    params = {
        "g1": 1.0 + 0.1 * jax.random.normal(ks[0], (1, Cin), jnp.float32),
        "b1": 0.1 * jax.random.normal(ks[1], (1, Cin), jnp.float32),
        "w1": 0.08 * jax.random.normal(ks[2], (9, Cin, Cout), jnp.float32),
        "cb1": 0.05 * jax.random.normal(ks[3], (1, Cout), jnp.float32),
        "g2": 1.0 + 0.1 * jax.random.normal(ks[4], (1, Cout), jnp.float32),
        "b2": 0.1 * jax.random.normal(ks[5], (1, Cout), jnp.float32),
        "w2": 0.05 * jax.random.normal(ks[6], (9, Cout, Cout), jnp.float32),
        "cb2": 0.05 * jax.random.normal(ks[7], (1, Cout), jnp.float32),
    }
    if Cin != Cout:  # 1x1 conv skip; Cin == Cout -> nn.Identity (no params)
        params["wsk"] = 0.1 * jax.random.normal(ks[8], (Cin, Cout), jnp.float32)
        params["bsk"] = 0.05 * jax.random.normal(ks[9], (1, Cout), jnp.float32)
    return params


# ------------------------------ pure-JAX reference ---------------------------
def resblock_ref(x_nchw, params):
    """Mirrors the kernel numerics: bf16 matmul operands, f32 accumulation."""
    N, Cin, H, W = x_nchw.shape
    Cout = params["w1"].shape[-1]
    x = jnp.transpose(x_nchw, (0, 2, 3, 1))  # NHWC

    def gn_silu(v, gamma, beta):
        Nn, Hh, Ww, C = v.shape
        g = C // GROUPS
        vg = v.reshape(Nn, Hh, Ww, GROUPS, g)
        mean = vg.mean(axis=(1, 2, 4), keepdims=True)
        var = ((vg - mean) ** 2).mean(axis=(1, 2, 4), keepdims=True)
        vn = ((vg - mean) / jnp.sqrt(var + EPS)).reshape(Nn, Hh, Ww, C)
        vn = vn * gamma.reshape(1, 1, 1, C) + beta.reshape(1, 1, 1, C)
        return vn * jax.nn.sigmoid(vn)

    def conv3x3(v, w9, b):
        ci, co = w9.shape[1], w9.shape[2]
        w = w9.reshape(3, 3, ci, co)
        y = lax.conv_general_dilated(
            v.astype(jnp.bfloat16), w.astype(jnp.bfloat16),
            window_strides=(1, 1), padding="SAME",
            dimension_numbers=("NHWC", "HWIO", "NHWC"),
            preferred_element_type=jnp.float32)
        return y + b.reshape(1, 1, 1, co)

    a = gn_silu(x, params["g1"], params["b1"])
    h = conv3x3(a, params["w1"], params["cb1"])
    h = gn_silu(h, params["g2"], params["b2"])
    h = conv3x3(h, params["w2"], params["cb2"])
    if "wsk" in params:
        skip = jnp.einsum("nhwc,cd->nhwd", x.astype(jnp.bfloat16),
                          params["wsk"].astype(jnp.bfloat16),
                          preferred_element_type=jnp.float32)
        skip = skip + params["bsk"].reshape(1, 1, 1, Cout)
    else:
        skip = x
    return jnp.transpose(h + skip, (0, 3, 1, 2))


# ---------------------------------- main -------------------------------------
if __name__ == "__main__":
    key = jax.random.PRNGKey(0)
    kx1, kp1, kx2, kp2 = jax.random.split(key, 4)

    # Case 1: Cin != Cout (1x1-conv skip path).  GroupNorm(32) needs C % 32 == 0.
    N, Cin, Cout, H, W = 2, 32, 64, 8, 8
    x1 = jax.random.normal(kx1, (N, Cin, H, W), jnp.float32)
    p1 = make_params(kp1, Cin, Cout)
    out1 = jax.block_until_ready(resblock_forward(x1, p1))
    ref1 = jax.block_until_ready(resblock_ref(x1, p1))
    assert out1.shape == (N, Cout, H, W), out1.shape
    err1 = float(jnp.max(jnp.abs(out1 - ref1)))
    assert err1 < 2e-2, f"skip-conv case: max abs error vs reference: {err1}"

    # Case 2: Cin == Cout (identity skip, no in-kernel 1x1 matmul).
    C2 = 32
    x2 = jax.random.normal(kx2, (N, C2, H, W), jnp.float32)
    p2 = make_params(kp2, C2, C2)
    out2 = jax.block_until_ready(resblock_forward(x2, p2))
    ref2 = jax.block_until_ready(resblock_ref(x2, p2))
    assert out2.shape == (N, C2, H, W), out2.shape
    err2 = float(jnp.max(jnp.abs(out2 - ref2)))
    assert err2 < 2e-2, f"identity-skip case: max abs error vs reference: {err2}"

    print("KERNEL_OK")
</pallas_src>

<mosaic_0001>
module attributes {stable_mosaic.version = 11 : i64} {
  func.func @_resblock_kernel(%arg0: i32, %arg1: memref<2x64x128xf32, #tpu.memory_space<vmem>>, %arg2: memref<128x9xf32, #tpu.memory_space<vmem>>, %arg3: memref<128x128xf32, #tpu.memory_space<vmem>>, %arg4: memref<128x128xf32, #tpu.memory_space<vmem>>, %arg5: memref<1x128xf32, #tpu.memory_space<vmem>>, %arg6: memref<1x128xf32, #tpu.memory_space<vmem>>, %arg7: memref<9x128x128xbf16, #tpu.memory_space<vmem>>, %arg8: memref<1x128xf32, #tpu.memory_space<vmem>>, %arg9: memref<128x128xf32, #tpu.memory_space<vmem>>, %arg10: memref<128x128xf32, #tpu.memory_space<vmem>>, %arg11: memref<1x128xf32, #tpu.memory_space<vmem>>, %arg12: memref<1x128xf32, #tpu.memory_space<vmem>>, %arg13: memref<9x128x128xbf16, #tpu.memory_space<vmem>>, %arg14: memref<1x128xf32, #tpu.memory_space<vmem>>, %arg15: memref<128x128xbf16, #tpu.memory_space<vmem>>, %arg16: memref<1x128xf32, #tpu.memory_space<vmem>>, %arg17: memref<2x64x128xf32, #tpu.memory_space<vmem>>) attributes {dimension_semantics = [#tpu.dimension_semantics<parallel>], iteration_bounds = array<i64: 1>, scalar_prefetch = 0 : i64, scratch_operands = 0 : i64, tpu.core_type = #tpu.core_type<tc>, window_params = [{transform_indices = @transform_0, window_bounds = array<i64: 2, 64, 128>}, {pipeline_mode = #tpu.pipeline_mode<synchronous>, transform_indices = @transform_1, window_bounds = array<i64: 128, 9>}, {pipeline_mode = #tpu.pipeline_mode<synchronous>, transform_indices = @transform_2, window_bounds = array<i64: 128, 128>}, {pipeline_mode = #tpu.pipeline_mode<synchronous>, transform_indices = @transform_3, window_bounds = array<i64: 128, 128>}, {pipeline_mode = #tpu.pipeline_mode<synchronous>, transform_indices = @transform_4, window_bounds = array<i64: 1, 128>}, {pipeline_mode = #tpu.pipeline_mode<synchronous>, transform_indices = @transform_5, window_bounds = array<i64: 1, 128>}, {pipeline_mode = #tpu.pipeline_mode<synchronous>, transform_indices = @transform_6, window_bounds = array<i64: 9, 128, 128>}, {pipeline_mode = #tpu.pipeline_mode<synchronous>, transform_indices = @transform_7, window_bounds = array<i64: 1, 128>}, {pipeline_mode = #tpu.pipeline_mode<synchronous>, transform_indices = @transform_8, window_bounds = array<i64: 128, 128>}, {pipeline_mode = #tpu.pipeline_mode<synchronous>, transform_indices = @transform_9, window_bounds = array<i64: 128, 128>}, {pipeline_mode = #tpu.pipeline_mode<synchronous>, transform_indices = @transform_10, window_bounds = array<i64: 1, 128>}, {pipeline_mode = #tpu.pipeline_mode<synchronous>, transform_indices = @transform_11, window_bounds = array<i64: 1, 128>}, {pipeline_mode = #tpu.pipeline_mode<synchronous>, transform_indices = @transform_12, window_bounds = array<i64: 9, 128, 128>}, {pipeline_mode = #tpu.pipeline_mode<synchronous>, transform_indices = @transform_13, window_bounds = array<i64: 1, 128>}, {pipeline_mode = #tpu.pipeline_mode<synchronous>, transform_indices = @transform_14, window_bounds = array<i64: 128, 128>}, {pipeline_mode = #tpu.pipeline_mode<synchronous>, transform_indices = @transform_15, window_bounds = array<i64: 1, 128>}, {transform_indices = @transform_16, window_bounds = array<i64: 2, 64, 128>}]} {
    %c0 = arith.constant 0 : index
    %c0_0 = arith.constant 0 : index
    %c0_1 = arith.constant 0 : index
    %0 = vector.load %arg1[%c0, %c0_0, %c0_1] : memref<2x64x128xf32, #tpu.memory_space<vmem>>, vector<2x64x128xf32>
    %cst = arith.constant dense<0.000000e+00> : vector<2x128xf32>
    %1 = vector.multi_reduction <add>, %0, %cst [1] : vector<2x64x128xf32> to vector<2x128xf32>
    %c0_2 = arith.constant 0 : index
    %c0_3 = arith.constant 0 : index
    %2 = vector.load %arg3[%c0_2, %c0_3] : memref<128x128xf32, #tpu.memory_space<vmem>>, vector<128x128xf32>
    %cst_4 = arith.constant dense<0.000000e+00> : vector<2x128xf32>
    %3 = tpu.matmul %1, %2, %cst_4 {dimension_numbers = #tpu.dot_dimension_numbers<[1], [0], [0], [1], [0, 0, 1, 1], [], []>} : vector<2x128xf32>, vector<128x128xf32>, vector<2x128xf32> -> vector<2x128xf32>
    %c0_5 = arith.constant 0 : index
    %c0_6 = arith.constant 0 : index
    %4 = vector.load %arg4[%c0_5, %c0_6] : memref<128x128xf32, #tpu.memory_space<vmem>>, vector<128x128xf32>
    %cst_7 = arith.constant dense<0.000000e+00> : vector<2x128xf32>
    %5 = tpu.matmul %3, %4, %cst_7 {dimension_numbers = #tpu.dot_dimension_numbers<[1], [0], [0], [1], [0, 0, 1, 1], [], []>} : vector<2x128xf32>, vector<128x128xf32>, vector<2x128xf32> -> vector<2x128xf32>
    %6 = vector.shape_cast %5 : vector<2x128xf32> to vector<2x1x128xf32>
    %7 = vector.broadcast %6 : vector<2x1x128xf32> to vector<2x64x128xf32>
    %8 = arith.subf %0, %7 : vector<2x64x128xf32>
    %9 = arith.mulf %8, %8 : vector<2x64x128xf32>
    %cst_8 = arith.constant dense<0.000000e+00> : vector<2x128xf32>
    %10 = vector.multi_reduction <add>, %9, %cst_8 [1] : vector<2x64x128xf32> to vector<2x128xf32>
    %c0_9 = arith.constant 0 : index
    %c0_10 = arith.constant 0 : index
    %11 = vector.load %arg3[%c0_9, %c0_10] : memref<128x128xf32, #tpu.memory_space<vmem>>, vector<128x128xf32>
    %cst_11 = arith.constant dense<0.000000e+00> : vector<2x128xf32>
    %12 = tpu.matmul %10, %11, %cst_11 {dimension_numbers = #tpu.dot_dimension_numbers<[1], [0], [0], [1], [0, 0, 1, 1], [], []>} : vector<2x128xf32>, vector<128x128xf32>, vector<2x128xf32> -> vector<2x128xf32>
    %c0_12 = arith.constant 0 : index
    %c0_13 = arith.constant 0 : index
    %13 = vector.load %arg4[%c0_12, %c0_13] : memref<128x128xf32, #tpu.memory_space<vmem>>, vector<128x128xf32>
    %cst_14 = arith.constant dense<0.000000e+00> : vector<2x128xf32>
    %14 = tpu.matmul %12, %13, %cst_14 {dimension_numbers = #tpu.dot_dimension_numbers<[1], [0], [0], [1], [0, 0, 1, 1], [], []>} : vector<2x128xf32>, vector<128x128xf32>, vector<2x128xf32> -> vector<2x128xf32>
    %cst_15 = arith.constant 9.99999997E-7 : f32
    %15 = vector.broadcast %cst_15 : f32 to vector<2x128xf32>
    %16 = arith.addf %14, %15 : vector<2x128xf32>
    %17 = math.rsqrt %16 : vector<2x128xf32>
    %18 = vector.shape_cast %17 : vector<2x128xf32> to vector<2x1x128xf32>
    %19 = vector.broadcast %18 : vector<2x1x128xf32> to vector<2x64x128xf32>
    %20 = arith.mulf %8, %19 : vector<2x64x128xf32>
    %c0_16 = arith.constant 0 : index
    %c0_17 = arith.constant 0 : index
    %21 = vector.load %arg5[%c0_16, %c0_17] : memref<1x128xf32, #tpu.memory_space<vmem>>, vector<1x128xf32>
    %22 = vector.shape_cast %21 : vector<1x128xf32> to vector<1x1x128xf32>
    %23 = vector.broadcast %22 : vector<1x1x128xf32> to vector<2x64x128xf32>
    %24 = arith.mulf %20, %23 : vector<2x64x128xf32>
    %c0_18 = arith.constant 0 : index
    %c0_19 = arith.constant 0 : index
    %25 = vector.load %arg6[%c0_18, %c0_19] : memref<1x128xf32, #tpu.memory_space<vmem>>, vector<1x128xf32>
    %26 = vector.shape_cast %25 : vector<1x128xf32> to vector<1x1x128xf32>
    %27 = vector.broadcast %26 : vector<1x1x128xf32> to vector<2x64x128xf32>
    %28 = arith.addf %24, %27 : vector<2x64x128xf32>
    %cst_20 = arith.constant 0.000000e+00 : f32
    %29 = vector.broadcast %cst_20 : f32 to vector<2x64x128xf32>
    %30 = arith.subf %29, %28 : vector<2x64x128xf32>
    %31 = math.exp %30 : vector<2x64x128xf32>
    %cst_21 = arith.constant 1.000000e+00 : f32
    %32 = vector.broadcast %cst_21 : f32 to vector<2x64x128xf32>
    %33 = arith.addf %32, %31 : vector<2x64x128xf32>
    %cst_22 = arith.constant 1.000000e+00 : f32
    %34 = vector.broadcast %cst_22 : f32 to vector<2x64x128xf32>
    %35 = arith.divf %34, %33 : vector<2x64x128xf32>
    %36 = arith.mulf %28, %35 : vector<2x64x128xf32>
    %37 = vector.shape_cast %36 : vector<2x64x128xf32> to vector<128x128xf32>
    %cst_23 = arith.constant 0.000000e+00 : f32
    %38 = vector.broadcast %cst_23 : f32 to vector<128x128xf32>
    %c9_i32 = arith.constant 9 : i32
    %39 = tpu.dynamic_rotate %37 by %c9_i32 dim 0 : vector<128x128xf32>, i32 -> vector<128x128xf32>
    %c0_24 = arith.constant 0 : index
    %c0_25 = arith.constant 0 : index
    %40 = vector.load %arg2[%c0_24, %c0_25] : memref<128x9xf32, #tpu.memory_space<vmem>>, vector<128x1xf32>
    %41 = vector.broadcast %40 : vector<128x1xf32> to vector<128x128xf32>
    %42 = arith.mulf %39, %41 : vector<128x128xf32>
    %43 = arith.truncf %42 : vector<128x128xf32> to vector<128x128xbf16>
    %c0_26 = arith.constant 0 : index
    %c0_27 = arith.constant 0 : index
    %c0_28 = arith.constant 0 : index
    %44 = vector.load %arg7[%c0_26, %c0_27, %c0_28] : memref<9x128x128xbf16, #tpu.memory_space<vmem>>, vector<1x128x128xbf16>
    %45 = vector.shape_cast %44 : vector<1x128x128xbf16> to vector<128x128xbf16>
    %cst_29 = arith.constant dense<0.000000e+00> : vector<128x128xf32>
    %46 = tpu.matmul %43, %45, %cst_29 {dimension_numbers = #tpu.dot_dimension_numbers<[1], [0], [0], [1], [0, 0, 1, 1], [], []>} : vector<128x128xbf16>, vector<128x128xbf16>, vector<128x128xf32> -> vector<128x128xf32>
    %47 = arith.addf %38, %46 : vector<128x128xf32>
    %c8_i32 = arith.constant 8 : i32
    %48 = tpu.dynamic_rotate %37 by %c8_i32 dim 0 : vector<128x128xf32>, i32 -> vector<128x128xf32>
    %c0_30 = arith.constant 0 : index
    %c1 = arith.constant 1 : index
    %49 = vector.load %arg2[%c0_30, %c1] : memref<128x9xf32, #tpu.memory_space<vmem>>, vector<128x1xf32>
    %50 = vector.broadcast %49 : vector<128x1xf32> to vector<128x128xf32>
    %51 = arith.mulf %48, %50 : vector<128x128xf32>
    %52 = arith.truncf %51 : vector<128x128xf32> to vector<128x128xbf16>
    %c1_31 = arith.constant 1 : index
    %c0_32 = arith.constant 0 : index
    %c0_33 = arith.constant 0 : index
    %53 = vector.load %arg7[%c1_31, %c0_32, %c0_33] : memref<9x128x128xbf16, #tpu.memory_space<vmem>>, vector<1x128x128xbf16>
    %54 = vector.shape_cast %53 : vector<1x128x128xbf16> to vector<128x128xbf16>
    %cst_34 = arith.constant dense<0.000000e+00> : vector<128x128xf32>
    %55 = tpu.matmul %52, %54, %cst_34 {dimension_numbers = #tpu.dot_dimension_numbers<[1], [0], [0], [1], [0, 0, 1, 1], [], []>} : vector<128x128xbf16>, vector<128x128xbf16>, vector<128x128xf32> -> vector<128x128xf32>
    %56 = arith.addf %47, %55 : vector<128x128xf32>
    %c7_i32 = arith.constant 7 : i32
    %57 = tpu.dynamic_rotate %37 by %c7_i32 dim 0 : vector<128x128xf32>, i32 -> vector<128x128xf32>
    %c0_35 = arith.constant 0 : index
    %c2 = arith.constant 2 : index
    %58 = vector.load %arg2[%c0_35, %c2] : memref<128x9xf32, #tpu.memory_space<vmem>>, vector<128x1xf32>
    %59 = vector.broadcast %58 : vector<128x1xf32> to vector<128x128xf32>
    %60 = arith.mulf %57, %59 : vector<128x128xf32>
    %61 = arith.truncf %60 : vector<128x128xf32> to vector<128x128xbf16>
    %c2_36 = arith.constant 2 : index
    %c0_37 = arith.constant 0 : index
    %c0_38 = arith.constant 0 : index
    %62 = vector.load %arg7[%c2_36, %c0_37, %c0_38] : memref<9x128x128xbf16, #tpu.memory_space<vmem>>, vector<1x128x128xbf16>
    %63 = vector.shape_cast %62 : vector<1x128x128xbf16> to vector<128x128xbf16>
    %cst_39 = arith.constant dense<0.000000e+00> : vector<128x128xf32>
    %64 = tpu.matmul %61, %63, %cst_39 {dimension_numbers = #tpu.dot_dimension_numbers<[1], [0], [0], [1], [0, 0, 1, 1], [], []>} : vector<128x128xbf16>, vector<128x128xbf16>, vector<128x128xf32> -> vector<128x128xf32>
    %65 = arith.addf %56, %64 : vector<128x128xf32>
    %c1_i32 = arith.constant 1 : i32
    %66 = tpu.dynamic_rotate %37 by %c1_i32 dim 0 : vector<128x128xf32>, i32 -> vector<128x128xf32>
    %c0_40 = arith.constant 0 : index
    %c3 = arith.constant 3 : index
    %67 = vector.load %arg2[%c0_40, %c3] : memref<128x9xf32, #tpu.memory_space<vmem>>, vector<128x1xf32>
    %68 = vector.broadcast %67 : vector<128x1xf32> to vector<128x128xf32>
    %69 = arith.mulf %66, %68 : vector<128x128xf32>
    %70 = arith.truncf %69 : vector<128x128xf32> to vector<128x128xbf16>
    %c3_41 = arith.constant 3 : index
    %c0_42 = arith.constant 0 : index
    %c0_43 = arith.constant 0 : index
    %71 = vector.load %arg7[%c3_41, %c0_42, %c0_43] : memref<9x128x128xbf16, #tpu.memory_space<vmem>>, vector<1x128x128xbf16>
    %72 = vector.shape_cast %71 : vector<1x128x128xbf16> to vector<128x128xbf16>
    %cst_44 = arith.constant dense<0.000000e+00> : vector<128x128xf32>
    %73 = tpu.matmul %70, %72, %cst_44 {dimension_numbers = #tpu.dot_dimension_numbers<[1], [0], [0], [1], [0, 0, 1, 1], [], []>} : vector<128x128xbf16>, vector<128x128xbf16>, vector<128x128xf32> -> vector<128x128xf32>
    %74 = arith.addf %65, %73 : vector<128x128xf32>
    %75 = arith.truncf %37 : vector<128x128xf32> to vector<128x128xbf16>
    %c4 = arith.constant 4 : index
    %c0_45 = arith.constant 0 : index
    %c0_46 = arith.constant 0 : index
    %76 = vector.load %arg7[%c4, %c0_45, %c0_46] : memref<9x128x128xbf16, #tpu.memory_space<vmem>>, vector<1x128x128xbf16>
    %77 = vector.shape_cast %76 : vector<1x128x128xbf16> to vector<128x128xbf16>
    %cst_47 = arith.constant dense<0.000000e+00> : vector<128x128xf32>
    %78 = tpu.matmul %75, %77, %cst_47 {dimension_numbers = #tpu.dot_dimension_numbers<[1], [0], [0], [1], [0, 0, 1, 1], [], []>} : vector<128x128xbf16>, vector<128x128xbf16>, vector<128x128xf32> -> vector<128x128xf32>
    %79 = arith.addf %74, %78 : vector<128x128xf32>
    %c127_i32 = arith.constant 127 : i32
    %80 = tpu.dynamic_rotate %37 by %c127_i32 dim 0 : vector<128x128xf32>, i32 -> vector<128x128xf32>
    %c0_48 = arith.constant 0 : index
    %c5 = arith.constant 5 : index
    %81 = vector.load %arg2[%c0_48, %c5] : memref<128x9xf32, #tpu.memory_space<vmem>>, vector<128x1xf32>
    %82 = vector.broadcast %81 : vector<128x1xf32> to vector<128x128xf32>
    %83 = arith.mulf %80, %82 : vector<128x128xf32>
    %84 = arith.truncf %83 : vector<128x128xf32> to vector<128x128xbf16>
    %c5_49 = arith.constant 5 : index
    %c0_50 = arith.constant 0 : index
    %c0_51 = arith.constant 0 : index
    %85 = vector.load %arg7[%c5_49, %c0_50, %c0_51] : memref<9x128x128xbf16, #tpu.memory_space<vmem>>, vector<1x128x128xbf16>
    %86 = vector.shape_cast %85 : vector<1x128x128xbf16> to vector<128x128xbf16>
    %cst_52 = arith.constant dense<0.000000e+00> : vector<128x128xf32>
    %87 = tpu.matmul %84, %86, %cst_52 {dimension_numbers = #tpu.dot_dimension_numbers<[1], [0], [0], [1], [0, 0, 1, 1], [], []>} : vector<128x128xbf16>, vector<128x128xbf16>, vector<128x128xf32> -> vector<128x128xf32>
    %88 = arith.addf %79, %87 : vector<128x128xf32>
    %c121_i32 = arith.constant 121 : i32
    %89 = tpu.dynamic_rotate %37 by %c121_i32 dim 0 : vector<128x128xf32>, i32 -> vector<128x128xf32>
    %c0_53 = arith.constant 0 : index
    %c6 = arith.constant 6 : index
    %90 = vector.load %arg2[%c0_53, %c6] : memref<128x9xf32, #tpu.memory_space<vmem>>, vector<128x1xf32>
    %91 = vector.broadcast %90 : vector<128x1xf32> to vector<128x128xf32>
    %92 = arith.mulf %89, %91 : vector<128x128xf32>
    %93 = arith.truncf %92 : vector<128x128xf32> to vector<128x128xbf16>
    %c6_54 = arith.constant 6 : index
    %c0_55 = arith.constant 0 : index
    %c0_56 = arith.constant 0 : index
    %94 = vector.load %arg7[%c6_54, %c0_55, %c0_56] : memref<9x128x128xbf16, #tpu.memory_space<vmem>>, vector<1x128x128xbf16>
    %95 = vector.shape_cast %94 : vector<1x128x128xbf16> to vector<128x128xbf16>
    %cst_57 = arith.constant dense<0.000000e+00> : vector<128x128xf32>
    %96 = tpu.matmul %93, %95, %cst_57 {dimension_numbers = #tpu.dot_dimension_numbers<[1], [0], [0], [1], [0, 0, 1, 1], [], []>} : vector<128x128xbf16>, vector<128x128xbf16>, vector<128x128xf32> -> vector<128x128xf32>
    %97 = arith.addf %88, %96 : vector<128x128xf32>
    %c120_i32 = arith.constant 120 : i32
    %98 = tpu.dynamic_rotate %37 by %c120_i32 dim 0 : vector<128x128xf32>, i32 -> vector<128x128xf32>
    %c0_58 = arith.constant 0 : index
    %c7 = arith.constant 7 : index
    %99 = vector.load %arg2[%c0_58, %c7] : memref<128x9xf32, #tpu.memory_space<vmem>>, vector<128x1xf32>
    %100 = vector.broadcast %99 : vector<128x1xf32> to vector<128x128xf32>
    %101 = arith.mulf %98, %100 : vector<128x128xf32>
    %102 = arith.truncf %101 : vector<128x128xf32> to vector<128x128xbf16>
    %c7_59 = arith.constant 7 : index
    %c0_60 = arith.constant 0 : index
    %c0_61 = arith.constant 0 : index
    %103 = vector.load %arg7[%c7_59, %c0_60, %c0_61] : memref<9x128x128xbf16, #tpu.memory_space<vmem>>, vector<1x128x128xbf16>
    %104 = vector.shape_cast %103 : vector<1x128x128xbf16> to vector<128x128xbf16>
    %cst_62 = arith.constant dense<0.000000e+00> : vector<128x128xf32>
    %105 = tpu.matmul %102, %104, %cst_62 {dimension_numbers = #tpu.dot_dimension_numbers<[1], [0], [0], [1], [0, 0, 1, 1], [], []>} : vector<128x128xbf16>, vector<128x128xbf16>, vector<128x128xf32> -> vector<128x128xf32>
    %106 = arith.addf %97, %105 : vector<128x128xf32>
    %c119_i32 = arith.constant 119 : i32
    %107 = tpu.dynamic_rotate %37 by %c119_i32 dim 0 : vector<128x128xf32>, i32 -> vector<128x128xf32>
    %c0_63 = arith.constant 0 : index
    %c8 = arith.constant 8 : index
    %108 = vector.load %arg2[%c0_63, %c8] : memref<128x9xf32, #tpu.memory_space<vmem>>, vector<128x1xf32>
    %109 = vector.broadcast %108 : vector<128x1xf32> to vector<128x128xf32>
    %110 = arith.mulf %107, %109 : vector<128x128xf32>
    %111 = arith.truncf %110 : vector<128x128xf32> to vector<128x128xbf16>
    %c8_64 = arith.constant 8 : index
    %c0_65 = arith.constant 0 : index
    %c0_66 = arith.constant 0 : index
    %112 = vector.load %arg7[%c8_64, %c0_65, %c0_66] : memref<9x128x128xbf16, #tpu.memory_space<vmem>>, vector<1x128x128xbf16>
    %113 = vector.shape_cast %112 : vector<1x128x128xbf16> to vector<128x128xbf16>
    %cst_67 = arith.constant dense<0.000000e+00> : vector<128x128xf32>
    %114 = tpu.matmul %111, %113, %cst_67 {dimension_numbers = #tpu.dot_dimension_numbers<[1], [0], [0], [1], [0, 0, 1, 1], [], []>} : vector<128x128xbf16>, vector<128x128xbf16>, vector<128x128xf32> -> vector<128x128xf32>
    %115 = arith.addf %106, %114 : vector<128x128xf32>
    %c0_68 = arith.constant 0 : index
    %c0_69 = arith.constant 0 : index
    %116 = vector.load %arg8[%c0_68, %c0_69] : memref<1x128xf32, #tpu.memory_space<vmem>>, vector<1x128xf32>
    %117 = vector.broadcast %116 : vector<1x128xf32> to vector<128x128xf32>
    %118 = arith.addf %115, %117 : vector<128x128xf32>
    %119 = vector.shape_cast %118 : vector<128x128xf32> to vector<2x64x128xf32>
    %cst_70 = arith.constant dense<0.000000e+00> : vector<2x128xf32>
    %120 = vector.multi_reduction <add>, %119, %cst_70 [1] : vector<2x64x128xf32> to vector<2x128xf32>
    %c0_71 = arith.constant 0 : index
    %c0_72 = arith.constant 0 : index
    %121 = vector.load %arg9[%c0_71, %c0_72] : memref<128x128xf32, #tpu.memory_space<vmem>>, vector<128x128xf32>
    %cst_73 = arith.constant dense<0.000000e+00> : vector<2x128xf32>
    %122 = tpu.matmul %120, %121, %cst_73 {dimension_numbers = #tpu.dot_dimension_numbers<[1], [0], [0], [1], [0, 0, 1, 1], [], []>} : vector<2x128xf32>, vector<128x128xf32>, vector<2x128xf32> -> vector<2x128xf32>
    %c0_74 = arith.constant 0 : index
    %c0_75 = arith.constant 0 : index
    %123 = vector.load %arg10[%c0_74, %c0_75] : memref<128x128xf32, #tpu.memory_space<vmem>>, vector<128x128xf32>
    %cst_76 = arith.constant dense<0.000000e+00> : vector<2x128xf32>
    %124 = tpu.matmul %122, %123, %cst_76 {dimension_numbers = #tpu.dot_dimension_numbers<[1], [0], [0], [1], [0, 0, 1, 1], [], []>} : vector<2x128xf32>, vector<128x128xf32>, vector<2x128xf32> -> vector<2x128xf32>
    %125 = vector.shape_cast %124 : vector<2x128xf32> to vector<2x1x128xf32>
    %126 = vector.broadcast %125 : vector<2x1x128xf32> to vector<2x64x128xf32>
    %127 = arith.subf %119, %126 : vector<2x64x128xf32>
    %128 = arith.mulf %127, %127 : vector<2x64x128xf32>
    %cst_77 = arith.constant dense<0.000000e+00> : vector<2x128xf32>
    %129 = vector.multi_reduction <add>, %128, %cst_77 [1] : vector<2x64x128xf32> to vector<2x128xf32>
    %c0_78 = arith.constant 0 : index
    %c0_79 = arith.constant 0 : index
    %130 = vector.load %arg9[%c0_78, %c0_79] : memref<128x128xf32, #tpu.memory_space<vmem>>, vector<128x128xf32>
    %cst_80 = arith.constant dense<0.000000e+00> : vector<2x128xf32>
    %131 = tpu.matmul %129, %130, %cst_80 {dimension_numbers = #tpu.dot_dimension_numbers<[1], [0], [0], [1], [0, 0, 1, 1], [], []>} : vector<2x128xf32>, vector<128x128xf32>, vector<2x128xf32> -> vector<2x128xf32>
    %c0_81 = arith.constant 0 : index
    %c0_82 = arith.constant 0 : index
    %132 = vector.load %arg10[%c0_81, %c0_82] : memref<128x128xf32, #tpu.memory_space<vmem>>, vector<128x128xf32>
    %cst_83 = arith.constant dense<0.000000e+00> : vector<2x128xf32>
    %133 = tpu.matmul %131, %132, %cst_83 {dimension_numbers = #tpu.dot_dimension_numbers<[1], [0], [0], [1], [0, 0, 1, 1], [], []>} : vector<2x128xf32>, vector<128x128xf32>, vector<2x128xf32> -> vector<2x128xf32>
    %cst_84 = arith.constant 9.99999997E-7 : f32
    %134 = vector.broadcast %cst_84 : f32 to vector<2x128xf32>
    %135 = arith.addf %133, %134 : vector<2x128xf32>
    %136 = math.rsqrt %135 : vector<2x128xf32>
    %137 = vector.shape_cast %136 : vector<2x128xf32> to vector<2x1x128xf32>
    %138 = vector.broadcast %137 : vector<2x1x128xf32> to vector<2x64x128xf32>
    %139 = arith.mulf %127, %138 : vector<2x64x128xf32>
    %c0_85 = arith.constant 0 : index
    %c0_86 = arith.constant 0 : index
    %140 = vector.load %arg11[%c0_85, %c0_86] : memref<1x128xf32, #tpu.memory_space<vmem>>, vector<1x128xf32>
    %141 = vector.shape_cast %140 : vector<1x128xf32> to vector<1x1x128xf32>
    %142 = vector.broadcast %141 : vector<1x1x128xf32> to vector<2x64x128xf32>
    %143 = arith.mulf %139, %142 : vector<2x64x128xf32>
    %c0_87 = arith.constant 0 : index
    %c0_88 = arith.constant 0 : index
    %144 = vector.load %arg12[%c0_87, %c0_88] : memref<1x128xf32, #tpu.memory_space<vmem>>, vector<1x128xf32>
    %145 = vector.shape_cast %144 : vector<1x128xf32> to vector<1x1x128xf32>
    %146 = vector.broadcast %145 : vector<1x1x128xf32> to vector<2x64x128xf32>
    %147 = arith.addf %143, %146 : vector<2x64x128xf32>
    %cst_89 = arith.constant 0.000000e+00 : f32
    %148 = vector.broadcast %cst_89 : f32 to vector<2x64x128xf32>
    %149 = arith.subf %148, %147 : vector<2x64x128xf32>
    %150 = math.exp %149 : vector<2x64x128xf32>
    %cst_90 = arith.constant 1.000000e+00 : f32
    %151 = vector.broadcast %cst_90 : f32 to vector<2x64x128xf32>
    %152 = arith.addf %151, %150 : vector<2x64x128xf32>
    %cst_91 = arith.constant 1.000000e+00 : f32
    %153 = vector.broadcast %cst_91 : f32 to vector<2x64x128xf32>
    %154 = arith.divf %153, %152 : vector<2x64x128xf32>
    %155 = arith.mulf %147, %154 : vector<2x64x128xf32>
    %156 = vector.shape_cast %155 : vector<2x64x128xf32> to vector<128x128xf32>
    %cst_92 = arith.constant 0.000000e+00 : f32
    %157 = vector.broadcast %cst_92 : f32 to vector<128x128xf32>
    %c9_i32_93 = arith.constant 9 : i32
    %158 = tpu.dynamic_rotate %156 by %c9_i32_93 dim 0 : vector<128x128xf32>, i32 -> vector<128x128xf32>
    %c0_94 = arith.constant 0 : index
    %c0_95 = arith.constant 0 : index
    %159 = vector.load %arg2[%c0_94, %c0_95] : memref<128x9xf32, #tpu.memory_space<vmem>>, vector<128x1xf32>
    %160 = vector.broadcast %159 : vector<128x1xf32> to vector<128x128xf32>
    %161 = arith.mulf %158, %160 : vector<128x128xf32>
    %162 = arith.truncf %161 : vector<128x128xf32> to vector<128x128xbf16>
    %c0_96 = arith.constant 0 : index
    %c0_97 = arith.constant 0 : index
    %c0_98 = arith.constant 0 : index
    %163 = vector.load %arg13[%c0_96, %c0_97, %c0_98] : memref<9x128x128xbf16, #tpu.memory_space<vmem>>, vector<1x128x128xbf16>
    %164 = vector.shape_cast %163 : vector<1x128x128xbf16> to vector<128x128xbf16>
    %cst_99 = arith.constant dense<0.000000e+00> : vector<128x128xf32>
    %165 = tpu.matmul %162, %164, %cst_99 {dimension_numbers = #tpu.dot_dimension_numbers<[1], [0], [0], [1], [0, 0, 1, 1], [], []>} : vector<128x128xbf16>, vector<128x128xbf16>, vector<128x128xf32> -> vector<128x128xf32>
    %166 = arith.addf %157, %165 : vector<128x128xf32>
    %c8_i32_100 = arith.constant 8 : i32
    %167 = tpu.dynamic_rotate %156 by %c8_i32_100 dim 0 : vector<128x128xf32>, i32 -> vector<128x128xf32>
    %c0_101 = arith.constant 0 : index
    %c1_102 = arith.constant 1 : index
    %168 = vector.load %arg2[%c0_101, %c1_102] : memref<128x9xf32, #tpu.memory_space<vmem>>, vector<128x1xf32>
    %169 = vector.broadcast %168 : vector<128x1xf32> to vector<128x128xf32>
    %170 = arith.mulf %167, %169 : vector<128x128xf32>
    %171 = arith.truncf %170 : vector<128x128xf32> to vector<128x128xbf16>
    %c1_103 = arith.constant 1 : index
    %c0_104 = arith.constant 0 : index
    %c0_105 = arith.constant 0 : index
    %172 = vector.load %arg13[%c1_103, %c0_104, %c0_105] : memref<9x128x128xbf16, #tpu.memory_space<vmem>>, vector<1x128x128xbf16>
    %173 = vector.shape_cast %172 : vector<1x128x128xbf16> to vector<128x128xbf16>
    %cst_106 = arith.constant dense<0.000000e+00> : vector<128x128xf32>
    %174 = tpu.matmul %171, %173, %cst_106 {dimension_numbers = #tpu.dot_dimension_numbers<[1], [0], [0], [1], [0, 0, 1, 1], [], []>} : vector<128x128xbf16>, vector<128x128xbf16>, vector<128x128xf32> -> vector<128x128xf32>
    %175 = arith.addf %166, %174 : vector<128x128xf32>
    %c7_i32_107 = arith.constant 7 : i32
    %176 = tpu.dynamic_rotate %156 by %c7_i32_107 dim 0 : vector<128x128xf32>, i32 -> vector<128x128xf32>
    %c0_108 = arith.constant 0 : index
    %c2_109 = arith.constant 2 : index
    %177 = vector.load %arg2[%c0_108, %c2_109] : memref<128x9xf32, #tpu.memory_space<vmem>>, vector<128x1xf32>
    %178 = vector.broadcast %177 : vector<128x1xf32> to vector<128x128xf32>
    %179 = arith.mulf %176, %178 : vector<128x128xf32>
    %180 = arith.truncf %179 : vector<128x128xf32> to vector<128x128xbf16>
    %c2_110 = arith.constant 2 : index
    %c0_111 = arith.constant 0 : index
    %c0_112 = arith.constant 0 : index
    %181 = vector.load %arg13[%c2_110, %c0_111, %c0_112] : memref<9x128x128xbf16, #tpu.memory_space<vmem>>, vector<1x128x128xbf16>
    %182 = vector.shape_cast %181 : vector<1x128x128xbf16> to vector<128x128xbf16>
    %cst_113 = arith.constant dense<0.000000e+00> : vector<128x128xf32>
    %183 = tpu.matmul %180, %182, %cst_113 {dimension_numbers = #tpu.dot_dimension_numbers<[1], [0], [0], [1], [0, 0, 1, 1], [], []>} : vector<128x128xbf16>, vector<128x128xbf16>, vector<128x128xf32> -> vector<128x128xf32>
    %184 = arith.addf %175, %183 : vector<128x128xf32>
    %c1_i32_114 = arith.constant 1 : i32
    %185 = tpu.dynamic_rotate %156 by %c1_i32_114 dim 0 : vector<128x128xf32>, i32 -> vector<128x128xf32>
    %c0_115 = arith.constant 0 : index
    %c3_116 = arith.constant 3 : index
    %186 = vector.load %arg2[%c0_115, %c3_116] : memref<128x9xf32, #tpu.memory_space<vmem>>, vector<128x1xf32>
    %187 = vector.broadcast %186 : vector<128x1xf32> to vector<128x128xf32>
    %188 = arith.mulf %185, %187 : vector<128x128xf32>
    %189 = arith.truncf %188 : vector<128x128xf32> to vector<128x128xbf16>
    %c3_117 = arith.constant 3 : index
    %c0_118 = arith.constant 0 : index
    %c0_119 = arith.constant 0 : index
    %190 = vector.load %arg13[%c3_117, %c0_118, %c0_119] : memref<9x128x128xbf16, #tpu.memory_space<vmem>>, vector<1x128x128xbf16>
    %191 = vector.shape_cast %190 : vector<1x128x128xbf16> to vector<128x128xbf16>
    %cst_120 = arith.constant dense<0.000000e+00> : vector<128x128xf32>
    %192 = tpu.matmul %189, %191, %cst_120 {dimension_numbers = #tpu.dot_dimension_numbers<[1], [0], [0], [1], [0, 0, 1, 1], [], []>} : vector<128x128xbf16>, vector<128x128xbf16>, vector<128x128xf32> -> vector<128x128xf32>
    %193 = arith.addf %184, %192 : vector<128x128xf32>
    %194 = arith.truncf %156 : vector<128x128xf32> to vector<128x128xbf16>
    %c4_121 = arith.constant 4 : index
    %c0_122 = arith.constant 0 : index
    %c0_123 = arith.constant 0 : index
    %195 = vector.load %arg13[%c4_121, %c0_122, %c0_123] : memref<9x128x128xbf16, #tpu.memory_space<vmem>>, vector<1x128x128xbf16>
    %196 = vector.shape_cast %195 : vector<1x128x128xbf16> to vector<128x128xbf16>
    %cst_124 = arith.constant dense<0.000000e+00> : vector<128x128xf32>
    %197 = tpu.matmul %194, %196, %cst_124 {dimension_numbers = #tpu.dot_dimension_numbers<[1], [0], [0], [1], [0, 0, 1, 1], [], []>} : vector<128x128xbf16>, vector<128x128xbf16>, vector<128x128xf32> -> vector<128x128xf32>
    %198 = arith.addf %193, %197 : vector<128x128xf32>
    %c127_i32_125 = arith.constant 127 : i32
    %199 = tpu.dynamic_rotate %156 by %c127_i32_125 dim 0 : vector<128x128xf32>, i32 -> vector<128x128xf32>
    %c0_126 = arith.constant 0 : index
    %c5_127 = arith.constant 5 : index
    %200 = vector.load %arg2[%c0_126, %c5_127] : memref<128x9xf32, #tpu.memory_space<vmem>>, vector<128x1xf32>
    %201 = vector.broadcast %200 : vector<128x1xf32> to vector<128x128xf32>
    %202 = arith.mulf %199, %201 : vector<128x128xf32>
    %203 = arith.truncf %202 : vector<128x128xf32> to vector<128x128xbf16>
    %c5_128 = arith.constant 5 : index
    %c0_129 = arith.constant 0 : index
    %c0_130 = arith.constant 0 : index
    %204 = vector.load %arg13[%c5_128, %c0_129, %c0_130] : memref<9x128x128xbf16, #tpu.memory_space<vmem>>, vector<1x128x128xbf16>
    %205 = vector.shape_cast %204 : vector<1x128x128xbf16> to vector<128x128xbf16>
    %cst_131 = arith.constant dense<0.000000e+00> : vector<128x128xf32>
    %206 = tpu.matmul %203, %205, %cst_131 {dimension_numbers = #tpu.dot_dimension_numbers<[1], [0], [0], [1], [0, 0, 1, 1], [], []>} : vector<128x128xbf16>, vector<128x128xbf16>, vector<128x128xf32> -> vector<128x128xf32>
    %207 = arith.addf %198, %206 : vector<128x128xf32>
    %c121_i32_132 = arith.constant 121 : i32
    %208 = tpu.dynamic_rotate %156 by %c121_i32_132 dim 0 : vector<128x128xf32>, i32 -> vector<128x128xf32>
    %c0_133 = arith.constant 0 : index
    %c6_134 = arith.constant 6 : index
    %209 = vector.load %arg2[%c0_133, %c6_134] : memref<128x9xf32, #tpu.memory_space<vmem>>, vector<128x1xf32>
    %210 = vector.broadcast %209 : vector<128x1xf32> to vector<128x128xf32>
    %211 = arith.mulf %208, %210 : vector<128x128xf32>
    %212 = arith.truncf %211 : vector<128x128xf32> to vector<128x128xbf16>
    %c6_135 = arith.constant 6 : index
    %c0_136 = arith.constant 0 : index
    %c0_137 = arith.constant 0 : index
    %213 = vector.load %arg13[%c6_135, %c0_136, %c0_137] : memref<9x128x128xbf16, #tpu.memory_space<vmem>>, vector<1x128x128xbf16>
    %214 = vector.shape_cast %213 : vector<1x128x128xbf16> to vector<128x128xbf16>
    %cst_138 = arith.constant dense<0.000000e+00> : vector<128x128xf32>
    %215 = tpu.matmul %212, %214, %cst_138 {dimension_numbers = #tpu.dot_dimension_numbers<[1], [0], [0], [1], [0, 0, 1, 1], [], []>} : vector<128x128xbf16>, vector<128x128xbf16>, vector<128x128xf32> -> vector<128x128xf32>
    %216 = arith.addf %207, %215 : vector<128x128xf32>
    %c120_i32_139 = arith.constant 120 : i32
    %217 = tpu.dynamic_rotate %156 by %c120_i32_139 dim 0 : vector<128x128xf32>, i32 -> vector<128x128xf32>
    %c0_140 = arith.constant 0 : index
    %c7_141 = arith.constant 7 : index
    %218 = vector.load %arg2[%c0_140, %c7_141] : memref<128x9xf32, #tpu.memory_space<vmem>>, vector<128x1xf32>
    %219 = vector.broadcast %218 : vector<128x1xf32> to vector<128x128xf32>
    %220 = arith.mulf %217, %219 : vector<128x128xf32>
    %221 = arith.truncf %220 : vector<128x128xf32> to vector<128x128xbf16>
    %c7_142 = arith.constant 7 : index
    %c0_143 = arith.constant 0 : index
    %c0_144 = arith.constant 0 : index
    %222 = vector.load %arg13[%c7_142, %c0_143, %c0_144] : memref<9x128x128xbf16, #tpu.memory_space<vmem>>, vector<1x128x128xbf16>
    %223 = vector.shape_cast %222 : vector<1x128x128xbf16> to vector<128x128xbf16>
    %cst_145 = arith.constant dense<0.000000e+00> : vector<128x128xf32>
    %224 = tpu.matmul %221, %223, %cst_145 {dimension_numbers = #tpu.dot_dimension_numbers<[1], [0], [0], [1], [0, 0, 1, 1], [], []>} : vector<128x128xbf16>, vector<128x128xbf16>, vector<128x128xf32> -> vector<128x128xf32>
    %225 = arith.addf %216, %224 : vector<128x128xf32>
    %c119_i32_146 = arith.constant 119 : i32
    %226 = tpu.dynamic_rotate %156 by %c119_i32_146 dim 0 : vector<128x128xf32>, i32 -> vector<128x128xf32>
    %c0_147 = arith.constant 0 : index
    %c8_148 = arith.constant 8 : index
    %227 = vector.load %arg2[%c0_147, %c8_148] : memref<128x9xf32, #tpu.memory_space<vmem>>, vector<128x1xf32>
    %228 = vector.broadcast %227 : vector<128x1xf32> to vector<128x128xf32>
    %229 = arith.mulf %226, %228 : vector<128x128xf32>
    %230 = arith.truncf %229 : vector<128x128xf32> to vector<128x128xbf16>
    %c8_149 = arith.constant 8 : index
    %c0_150 = arith.constant 0 : index
    %c0_151 = arith.constant 0 : index
    %231 = vector.load %arg13[%c8_149, %c0_150, %c0_151] : memref<9x128x128xbf16, #tpu.memory_space<vmem>>, vector<1x128x128xbf16>
    %232 = vector.shape_cast %231 : vector<1x128x128xbf16> to vector<128x128xbf16>
    %cst_152 = arith.constant dense<0.000000e+00> : vector<128x128xf32>
    %233 = tpu.matmul %230, %232, %cst_152 {dimension_numbers = #tpu.dot_dimension_numbers<[1], [0], [0], [1], [0, 0, 1, 1], [], []>} : vector<128x128xbf16>, vector<128x128xbf16>, vector<128x128xf32> -> vector<128x128xf32>
    %234 = arith.addf %225, %233 : vector<128x128xf32>
    %c0_153 = arith.constant 0 : index
    %c0_154 = arith.constant 0 : index
    %235 = vector.load %arg14[%c0_153, %c0_154] : memref<1x128xf32, #tpu.memory_space<vmem>>, vector<1x128xf32>
    %236 = vector.broadcast %235 : vector<1x128xf32> to vector<128x128xf32>
    %237 = arith.addf %234, %236 : vector<128x128xf32>
    %c0_155 = arith.constant 0 : index
    %c0_156 = arith.constant 0 : index
    %c0_157 = arith.constant 0 : index
    %238 = vector.load %arg1[%c0_155, %c0_156, %c0_157] : memref<2x64x128xf32, #tpu.memory_space<vmem>>, vector<2x64x128xf32>
    %239 = vector.shape_cast %238 : vector<2x64x128xf32> to vector<128x128xf32>
    %240 = arith.truncf %239 : vector<128x128xf32> to vector<128x128xbf16>
    %c0_158 = arith.constant 0 : index
    %c0_159 = arith.constant 0 : index
    %241 = vector.load %arg15[%c0_158, %c0_159] : memref<128x128xbf16, #tpu.memory_space<vmem>>, vector<128x128xbf16>
    %cst_160 = arith.constant dense<0.000000e+00> : vector<128x128xf32>
    %242 = tpu.matmul %240, %241, %cst_160 {dimension_numbers = #tpu.dot_dimension_numbers<[1], [0], [0], [1], [0, 0, 1, 1], [], []>} : vector<128x128xbf16>, vector<128x128xbf16>, vector<128x128xf32> -> vector<128x128xf32>
    %c0_161 = arith.constant 0 : index
    %c0_162 = arith.constant 0 : index
    %243 = vector.load %arg16[%c0_161, %c0_162] : memref<1x128xf32, #tpu.memory_space<vmem>>, vector<1x128xf32>
    %244 = vector.broadcast %243 : vector<1x128xf32> to vector<128x128xf32>
    %245 = arith.addf %242, %244 : vector<128x128xf32>
    %246 = arith.addf %237, %245 : vector<128x128xf32>
    %247 = vector.shape_cast %246 : vector<128x128xf32> to vector<2x64x128xf32>
    %c0_163 = arith.constant 0 : index
    %c0_164 = arith.constant 0 : index
    %c0_165 = arith.constant 0 : index
    %248 = vector.load %arg17[%c0_163, %c0_164, %c0_165] : memref<2x64x128xf32, #tpu.memory_space<vmem>>, vector<2x64x128xf32>
    tpu.vector_store %arg17[%c0_163, %c0_164, %c0_165], %247 {strides = array<i32>} : memref<2x64x128xf32, #tpu.memory_space<vmem>>, vector<2x64x128xf32>,
    return
  }
  func.func @transform_0(%arg0: i32) -> (i32, i32, i32) {
    %c0_i32 = arith.constant 0 : i32
    %c0_i32_0 = arith.constant 0 : i32
    %c0_i32_1 = arith.constant 0 : i32
    return %arg0, %c0_i32, %c0_i32_0 : i32, i32, i32
  }
  func.func @transform_1(%arg0: i32) -> (i32, i32) {
    %c0_i32 = arith.constant 0 : i32
    %c0_i32_0 = arith.constant 0 : i32
    %c0_i32_1 = arith.constant 0 : i32
    return %c0_i32, %c0_i32_0 : i32, i32
  }
  func.func @transform_2(%arg0: i32) -> (i32, i32) {
    %c0_i32 = arith.constant 0 : i32
    %c0_i32_0 = arith.constant 0 : i32
    %c0_i32_1 = arith.constant 0 : i32
    return %c0_i32, %c0_i32_0 : i32, i32
  }
  func.func @transform_3(%arg0: i32) -> (i32, i32) {
    %c0_i32 = arith.constant 0 : i32
    %c0_i32_0 = arith.constant 0 : i32
    %c0_i32_1 = arith.constant 0 : i32
    return %c0_i32, %c0_i32_0 : i32, i32
  }
  func.func @transform_4(%arg0: i32) -> (i32, i32) {
    %c0_i32 = arith.constant 0 : i32
    %c0_i32_0 = arith.constant 0 : i32
    %c0_i32_1 = arith.constant 0 : i32
    return %c0_i32, %c0_i32_0 : i32, i32
  }
  func.func @transform_5(%arg0: i32) -> (i32, i32) {
    %c0_i32 = arith.constant 0 : i32
    %c0_i32_0 = arith.constant 0 : i32
    %c0_i32_1 = arith.constant 0 : i32
    return %c0_i32, %c0_i32_0 : i32, i32
  }
  func.func @transform_6(%arg0: i32) -> (i32, i32, i32) {
    %c0_i32 = arith.constant 0 : i32
    %c0_i32_0 = arith.constant 0 : i32
    %c0_i32_1 = arith.constant 0 : i32
    %c0_i32_2 = arith.constant 0 : i32
    return %c0_i32, %c0_i32_0, %c0_i32_1 : i32, i32, i32
  }
  func.func @transform_7(%arg0: i32) -> (i32, i32) {
    %c0_i32 = arith.constant 0 : i32
    %c0_i32_0 = arith.constant 0 : i32
    %c0_i32_1 = arith.constant 0 : i32
    return %c0_i32, %c0_i32_0 : i32, i32
  }
  func.func @transform_8(%arg0: i32) -> (i32, i32) {
    %c0_i32 = arith.constant 0 : i32
    %c0_i32_0 = arith.constant 0 : i32
    %c0_i32_1 = arith.constant 0 : i32
    return %c0_i32, %c0_i32_0 : i32, i32
  }
  func.func @transform_9(%arg0: i32) -> (i32, i32) {
    %c0_i32 = arith.constant 0 : i32
    %c0_i32_0 = arith.constant 0 : i32
    %c0_i32_1 = arith.constant 0 : i32
    return %c0_i32, %c0_i32_0 : i32, i32
  }
  func.func @transform_10(%arg0: i32) -> (i32, i32) {
    %c0_i32 = arith.constant 0 : i32
    %c0_i32_0 = arith.constant 0 : i32
    %c0_i32_1 = arith.constant 0 : i32
    return %c0_i32, %c0_i32_0 : i32, i32
  }
  func.func @transform_11(%arg0: i32) -> (i32, i32) {
    %c0_i32 = arith.constant 0 : i32
    %c0_i32_0 = arith.constant 0 : i32
    %c0_i32_1 = arith.constant 0 : i32
    return %c0_i32, %c0_i32_0 : i32, i32
  }
  func.func @transform_12(%arg0: i32) -> (i32, i32, i32) {
    %c0_i32 = arith.constant 0 : i32
    %c0_i32_0 = arith.constant 0 : i32
    %c0_i32_1 = arith.constant 0 : i32
    %c0_i32_2 = arith.constant 0 : i32
    return %c0_i32, %c0_i32_0, %c0_i32_1 : i32, i32, i32
  }
  func.func @transform_13(%arg0: i32) -> (i32, i32) {
    %c0_i32 = arith.constant 0 : i32
    %c0_i32_0 = arith.constant 0 : i32
    %c0_i32_1 = arith.constant 0 : i32
    return %c0_i32, %c0_i32_0 : i32, i32
  }
  func.func @transform_14(%arg0: i32) -> (i32, i32) {
    %c0_i32 = arith.constant 0 : i32
    %c0_i32_0 = arith.constant 0 : i32
    %c0_i32_1 = arith.constant 0 : i32
    return %c0_i32, %c0_i32_0 : i32, i32
  }
  func.func @transform_15(%arg0: i32) -> (i32, i32) {
    %c0_i32 = arith.constant 0 : i32
    %c0_i32_0 = arith.constant 0 : i32
    %c0_i32_1 = arith.constant 0 : i32
    return %c0_i32, %c0_i32_0 : i32, i32
  }
  func.func @transform_16(%arg0: i32) -> (i32, i32, i32) {
    %c0_i32 = arith.constant 0 : i32
    %c0_i32_0 = arith.constant 0 : i32
    %c0_i32_1 = arith.constant 0 : i32
    return %arg0, %c0_i32, %c0_i32_0 : i32, i32, i32
  }
}

</mosaic_0001>

<bundles_post_ra>
// kernel: tpu_custom_call.1
= control target key start
LH: loop header
LB: loop body
LE: loop exit
PB: predicated region body
PF: predicated region fallthrough
CT: control target
= control target key end

     0   :  { %s12095_s0 = inlined_call_operand.hbm [shape: f32[2,64,128], index: 0, kind: input, shape index: {}]   ;;  %s12096_s1 = inlined_call_operand.hbm [shape: f32[128,9], index: 1, kind: input, shape index: {}]   ;;  %s12097_s2 = inlined_call_operand.hbm [shape: f32[128,128], index: 2, kind: input, shape index: {}]   ;;  %s12098_s3 = inlined_call_operand.hbm [shape: f32[128,128], index: 3, kind: input, shape index: {}]   ;;  %s12099_s4 = inlined_call_operand.hbm [shape: f32[1,128], index: 4, kind: input, shape index: {}]   ;;  %s12100_s5 = inlined_call_operand.hbm [shape: f32[1,128], index: 5, kind: input, shape index: {}]   ;;  %s12101_s6 = inlined_call_operand.hbm [shape: bf16[9,128,128], index: 6, kind: input, shape index: {}]   ;;  %s12102_s7 = inlined_call_operand.hbm [shape: f32[1,128], index: 7, kind: input, shape index: {}]   ;;  %s12103_s8 = inlined_call_operand.hbm [shape: f32[128,128], index: 8, kind: input, shape index: {}]   ;;  %s12104_s9 = inlined_call_operand.hbm [shape: f32[128,128], index: 9, kind: input, shape index: {}]   ;;  %s12105_s10 = inlined_call_operand.hbm [shape: f32[1,128], index: 10, kind: input, shape index: {}]   ;;  %s12106_s11 = inlined_call_operand.hbm [shape: f32[1,128], index: 11, kind: input, shape index: {}]   ;;  %s12107_s12 = inlined_call_operand.hbm [shape: bf16[9,128,128], index: 12, kind: input, shape index: {}]   ;;  %s12108_s13 = inlined_call_operand.hbm [shape: f32[1,128], index: 13, kind: input, shape index: {}]   ;;  %s12109_s14 = inlined_call_operand.hbm [shape: bf16[128,128], index: 14, kind: input, shape index: {}]   ;;  %s12110_s15 = inlined_call_operand.hbm [shape: f32[1,128], index: 15, kind: input, shape index: {}]   ;;  %s12111_s16 = inlined_call_operand.hbm [shape: f32[2,64,128], index: 16, kind: output, shape index: {}]  }
   0x1   :  { %12406 = sst [smem:[#allocation244_spill]] %s12095_s0 }
   0x2   :  { %21 = vsyncpa [#allocation3], 0 }
   0x3   :  { %22 = vsyncpa [#allocation6], 0 }
   0x4   :  { %23 = vsyncpa [#allocation9], 0 }
   0x5   :  { %24 = vsyncpa [#allocation12], 0 }
   0x6   :  { %25 = vsyncpa [#allocation15], 0 }
   0x7   :  { %26 = vsyncpa [#allocation18], 0 }
   0x8   :  { %27 = vsyncpa [#allocation21], 0 }
   0x9   :  { %28 = vsyncpa [#allocation24], 0 }
   0xa   :  { %29 = vsyncpa [#allocation27], 0 }
   0xb   :  { %30 = vsyncpa [#allocation4], 0  ;;  %s8800_s21 = smov [#allocation5]   ;;  %s8801_s23 = smov [#allocation8]  }
   0xc   :  { %s48_s22 = sshll.u32 %s8800_s21, 4  ;;  %s72_s24 = sshll.u32 %s8801_s23, 4  ;;  %s49_s22 = int_to_ptr.vmem [resolvable:$true] %s48_s22  ;;  %s8918_s24 = int_to_ptr.vmem [resolvable:$true] %s72_s24 }
   0xd   :  { %s8406_s27 = scalar_lea.hbm %s12096_s1, 2048 }
   0xe   :  { %p8407_p0 = scmp.ne.s32.totalorder %s12096_s1, %s8406_s27  ;;  %p8410_p1 = scmp.lt.u32.totalorder %s8406_s27, %s12096_s1 }
  0x10   :  { %p8412_p2 = pnand %p8410_p1, %p8407_p0 }
  0x12   :  { %8415 = shalt.err (!%p8412_p2)
}
  0x13   :  { %s8416_s17 = scalar_lea.vmem %s49_s22, 2048  ;;  %p8421_p4 = scmp.lt.s32.totalorder %s49_s22, %s49_s22 }
  0x14   :  { %p8417_p3 = scmp.ne.s32.totalorder %s49_s22, %s8416_s17  ;;  %p8422_p5 = scmp.lt.s32.totalorder %s8416_s17, %s8416_s17 }
  0x16   :  { %p8423_p6 = por %p8422_p5, %p8421_p4 }
  0x18   :  { %p8424_p7 = pnand %p8423_p6, %p8417_p3 }
  0x1a   :  { %8427 = shalt.err (!%p8424_p7)
}
  0x1b   :  { %s8802_s18 = smov 128   ;;  %s8803_s19 = smov 8  }
  0x1c   :  { %54 = dma.hbm_to_vmem [thread:$0]  %s12096_s1, 2048, %s49_s22, [#allocation6], %s8802_s18, %s8802_s18, %s8803_s19  }
  0x1d   :  { %s8428_s26 = scalar_lea.hbm %s12098_s3, 2048 }
  0x1e   :  { %p8429_p8 = scmp.ne.s32.totalorder %s12098_s3, %s8428_s26  ;;  %p8432_p9 = scmp.lt.u32.totalorder %s8428_s26, %s12098_s3 }
  0x20   :  { %p8434_p10 = pnand %p8432_p9, %p8429_p8 }
  0x22   :  { %8437 = shalt.err (!%p8434_p10)
}
  0x23   :  { %s8438_s0 = scalar_lea.vmem %s8918_s24, 2048  ;;  %p8443_p12 = scmp.lt.s32.totalorder %s8918_s24, %s8918_s24 }
  0x24   :  { %p8439_p11 = scmp.ne.s32.totalorder %s8918_s24, %s8438_s0  ;;  %p8444_p13 = scmp.lt.s32.totalorder %s8438_s0, %s8438_s0 }
  0x26   :  { %p8445_p0 = por %p8444_p13, %p8443_p12 }
  0x28   :  { %p8446_p1 = pnand %p8445_p0, %p8439_p11 }
  0x2a   :  { %8449 = shalt.err (!%p8446_p1)
}
  0x2b   :  { %78 = dma.hbm_to_vmem [thread:$0]  %s12098_s3, 2048, %s8918_s24, [#allocation9], %s8802_s18, %s8802_s18, %s8803_s19  }
  0x2c   :  { %s8804_s17 = smov [#allocation11]   ;;  %s8805_s21 = smov [#allocation14]  }
  0x2d   :  { %s95_s20 = sshll.u32 %s8804_s17, 4  ;;  %s117_s23 = sshll.u32 %s8805_s21, 4  ;;  %s96_s20 = int_to_ptr.vmem [resolvable:$true] %s95_s20  ;;  %s118_s23 = int_to_ptr.vmem [resolvable:$true] %s117_s23 }
  0x2e   :  { %s8450_s27 = scalar_lea.hbm %s12100_s5, 16 }
  0x2f   :  { %p8451_p2 = scmp.ne.s32.totalorder %s12100_s5, %s8450_s27  ;;  %p8454_p3 = scmp.lt.u32.totalorder %s8450_s27, %s12100_s5 }
  0x31   :  { %p8456_p4 = pnand %p8454_p3, %p8451_p2 }
  0x33   :  { %8459 = shalt.err (!%p8456_p4)
}
  0x34   :  { %s8460_s3 = scalar_lea.vmem %s96_s20, 16  ;;  %s8464_s24 = scalar_lea.vmem %s96_s20, 32 }
  0x35   :  { %p8461_p5 = scmp.ne.s32.totalorder %s96_s20, %s8460_s3  ;;  %p8465_p6 = scmp.lt.s32.totalorder %s96_s20, %s96_s20 }
  0x36   :  { %p8466_p7 = scmp.lt.s32.totalorder %s8464_s24, %s8460_s3 }
  0x38   :  { %p8467_p8 = por %p8466_p7, %p8465_p6 }
  0x3a   :  { %p8468_p9 = pnand %p8467_p8, %p8461_p5 }
  0x3c   :  { %8471 = shalt.err (!%p8468_p9)
}
  0x3d   :  { %98 = dma.hbm_to_vmem [thread:$0]  %s12100_s5, 16, %s96_s20, [#allocation12]  }
  0x3e   :  { %s8472_s25 = scalar_lea.hbm %s12102_s7, 16 }
  0x3f   :  { %p8473_p10 = scmp.ne.s32.totalorder %s12102_s7, %s8472_s25  ;;  %p8476_p11 = scmp.lt.u32.totalorder %s8472_s25, %s12102_s7 }
  0x41   :  { %p8478_p12 = pnand %p8476_p11, %p8473_p10 }
  0x43   :  { %8481 = shalt.err (!%p8478_p12)
}
  0x44   :  { %s8482_s30 = scalar_lea.vmem %s118_s23, 16  ;;  %s8486_s0 = scalar_lea.vmem %s118_s23, 32 }
  0x45   :  { %p8483_p13 = scmp.ne.s32.totalorder %s118_s23, %s8482_s30  ;;  %p8487_p0 = scmp.lt.s32.totalorder %s118_s23, %s118_s23 }
  0x46   :  { %p8488_p1 = scmp.lt.s32.totalorder %s8486_s0, %s8482_s30 }
  0x48   :  { %p8489_p2 = por %p8488_p1, %p8487_p0 }
  0x4a   :  { %p8490_p3 = pnand %p8489_p2, %p8483_p13 }
  0x4c   :  { %8493 = shalt.err (!%p8490_p3)
}
  0x4d   :  { %120 = dma.hbm_to_vmem [thread:$0]  %s12102_s7, 16, %s118_s23, [#allocation15]  }
  0x4e   :  { %s8806_s3 = smov [#allocation17]   ;;  %s8807_s1 = smov [#allocation20]  }
  0x4f   :  { %s138_s24 = sshll.u32 %s8806_s3, 4  ;;  %s161_s22 = sshll.u32 %s8807_s1, 4  ;;  %s139_s24 = int_to_ptr.vmem [resolvable:$true] %s138_s24  ;;  %s162_s22 = int_to_ptr.vmem [resolvable:$true] %s161_s22 }
  0x50   :  { %s8494_s25 = scalar_lea.hbm %s12104_s9, 2048 }
  0x51   :  { %p8495_p4 = scmp.ne.s32.totalorder %s12104_s9, %s8494_s25  ;;  %p8498_p5 = scmp.lt.u32.totalorder %s8494_s25, %s12104_s9 }
  0x53   :  { %p8500_p6 = pnand %p8498_p5, %p8495_p4 }
  0x55   :  { %8503 = shalt.err (!%p8500_p6)
}
  0x56   :  { %s8504_s7 = scalar_lea.vmem %s139_s24, 2048  ;;  %p8509_p8 = scmp.lt.s32.totalorder %s139_s24, %s139_s24 }
  0x57   :  { %p8505_p7 = scmp.ne.s32.totalorder %s139_s24, %s8504_s7  ;;  %p8510_p9 = scmp.lt.s32.totalorder %s8504_s7, %s8504_s7 }
  0x59   :  { %p8511_p10 = por %p8510_p9, %p8509_p8 }
  0x5b   :  { %p8512_p11 = pnand %p8511_p10, %p8505_p7 }
  0x5d   :  { %8515 = shalt.err (!%p8512_p11)
}
  0x5e   :  { %144 = dma.hbm_to_vmem [thread:$0]  %s12104_s9, 2048, %s139_s24, [#allocation18], %s8802_s18, %s8802_s18, %s8803_s19  }
  0x5f   :  { %s8516_s20 = scalar_lea.hbm %s12106_s11, 16 }
  0x60   :  { %p8517_p12 = scmp.ne.s32.totalorder %s12106_s11, %s8516_s20  ;;  %p8520_p13 = scmp.lt.u32.totalorder %s8516_s20, %s12106_s11 }
  0x62   :  { %p8522_p0 = pnand %p8520_p13, %p8517_p12 }
  0x64   :  { %8525 = shalt.err (!%p8522_p0)
}
  0x65   :  { %s8526_s25 = scalar_lea.vmem %s162_s22, 16  ;;  %s8530_s26 = scalar_lea.vmem %s162_s22, 32 }
  0x66   :  { %p8527_p1 = scmp.ne.s32.totalorder %s162_s22, %s8526_s25  ;;  %p8531_p2 = scmp.lt.s32.totalorder %s162_s22, %s162_s22 }
  0x67   :  { %p8532_p3 = scmp.lt.s32.totalorder %s8530_s26, %s8526_s25 }
  0x69   :  { %p8533_p4 = por %p8532_p3, %p8531_p2 }
  0x6b   :  { %p8534_p5 = pnand %p8533_p4, %p8527_p1 }
  0x6d   :  { %8537 = shalt.err (!%p8534_p5)
}
  0x6e   :  { %164 = dma.hbm_to_vmem [thread:$0]  %s12106_s11, 16, %s162_s22, [#allocation21]  }
  0x6f   :  { %s8808_s27 = smov [#allocation23]   ;;  %s8809_s29 = smov [#allocation2]  }
  0x70   :  { %s183_s28 = sshll.u32 %s8808_s27, 4  ;;  %s36_s7 = sshll.u32 %s8809_s29, 4  ;;  %s184_s28 = int_to_ptr.vmem [resolvable:$true] %s183_s28  ;;  %s9006_s7 = int_to_ptr.vmem [resolvable:$true] %s36_s7 }
  0x71   :  { %s8538_s0 = scalar_lea.hbm %s12108_s13, 16 }
  0x72   :  { %p8539_p6 = scmp.ne.s32.totalorder %s12108_s13, %s8538_s0  ;;  %p8542_p7 = scmp.lt.u32.totalorder %s8538_s0, %s12108_s13 }
  0x74   :  { %p8544_p8 = pnand %p8542_p7, %p8539_p6 }
  0x76   :  { %8547 = shalt.err (!%p8544_p8)
}
  0x77   :  { %s8548_s11 = scalar_lea.vmem %s184_s28, 16  ;;  %s8552_s22 = scalar_lea.vmem %s184_s28, 32 }
  0x78   :  { %p8549_p9 = scmp.ne.s32.totalorder %s184_s28, %s8548_s11  ;;  %p8553_p10 = scmp.lt.s32.totalorder %s184_s28, %s184_s28 }
  0x79   :  { %p8554_p11 = scmp.lt.s32.totalorder %s8552_s22, %s8548_s11 }
  0x7b   :  { %p8555_p12 = por %p8554_p11, %p8553_p10 }
  0x7d   :  { %p8556_p13 = pnand %p8555_p12, %p8549_p9 }
  0x7f   :  { %8559 = shalt.err (!%p8556_p13)
}
  0x80   :  { %186 = dma.hbm_to_vmem [thread:$0]  %s12108_s13, 16, %s184_s28, [#allocation24]  }
  0x81   :  { %s12407_s9 = sld [smem:[#allocation244_spill]] }
  0x87   :  { %s8560_s24 = scalar_lea.hbm %s12407_s9, 2048 }
  0x88   :  { %p8561_p0 = scmp.ne.s32.totalorder %s12407_s9, %s8560_s24  ;;  %p8564_p1 = scmp.lt.u32.totalorder %s8560_s24, %s12407_s9 }
  0x8a   :  { %p8566_p2 = pnand %p8564_p1, %p8561_p0 }
  0x8c   :  { %8569 = shalt.err (!%p8566_p2)
}
  0x8d   :  { %s8570_s0 = scalar_lea.vmem %s9006_s7, 2048  ;;  %p8575_p4 = scmp.lt.s32.totalorder %s9006_s7, %s9006_s7 }
  0x8e   :  { %p8571_p3 = scmp.ne.s32.totalorder %s9006_s7, %s8570_s0  ;;  %p8576_p5 = scmp.lt.s32.totalorder %s8570_s0, %s8570_s0 }
  0x90   :  { %p8577_p6 = por %p8576_p5, %p8575_p4 }
  0x92   :  { %p8578_p7 = pnand %p8577_p6, %p8571_p3 }
  0x94   :  { %8581 = shalt.err (!%p8578_p7)
}
  0x95   :  { %42 = dma.hbm_to_vmem [thread:$0]  %s12407_s9, 2048, %s9006_s7, [#allocation3], %s8802_s18, %s8802_s18, %s8803_s19  }
  0x96   :  { %s8810_s5 = smov [#allocation7]   ;;  %s8811_s3 = smov [#allocation10]  }
  0x97   :  { %s60_s20 = sshll.u32 %s8810_s5, 4  ;;  %s85_s1 = sshll.u32 %s8811_s3, 4  ;;  %s61_s20 = int_to_ptr.vmem [resolvable:$true] %s60_s20  ;;  %s86_s1 = int_to_ptr.vmem [resolvable:$true] %s85_s1 }
  0x98   :  { %s8582_s17 = scalar_lea.hbm %s12097_s2, 2048 }
  0x99   :  { %p8583_p8 = scmp.ne.s32.totalorder %s12097_s2, %s8582_s17  ;;  %p8586_p9 = scmp.lt.u32.totalorder %s8582_s17, %s12097_s2 }
  0x9b   :  { %p8588_p10 = pnand %p8586_p9, %p8583_p8 }
  0x9d   :  { %8591 = shalt.err (!%p8588_p10)
}
  0x9e   :  { %s8592_s7 = scalar_lea.vmem %s61_s20, 2048  ;;  %p8597_p12 = scmp.lt.s32.totalorder %s61_s20, %s61_s20 }
  0x9f   :  { %p8593_p11 = scmp.ne.s32.totalorder %s61_s20, %s8592_s7  ;;  %p8598_p13 = scmp.lt.s32.totalorder %s8592_s7, %s8592_s7 }
  0xa1   :  { %p8599_p0 = por %p8598_p13, %p8597_p12 }
  0xa3   :  { %p8600_p1 = pnand %p8599_p0, %p8593_p11 }
  0xa5   :  { %8603 = shalt.err (!%p8600_p1)
}
  0xa6   :  { %66 = dma.hbm_to_vmem [thread:$0]  %s12097_s2, 2048, %s61_s20, [#allocation6], %s8802_s18, %s8802_s18, %s8803_s19  }
  0xa7   :  { %s8604_s30 = scalar_lea.hbm %s12099_s4, 16 }
  0xa8   :  { %p8605_p2 = scmp.ne.s32.totalorder %s12099_s4, %s8604_s30  ;;  %p8608_p3 = scmp.lt.u32.totalorder %s8604_s30, %s12099_s4 }
  0xaa   :  { %p8610_p4 = pnand %p8608_p3, %p8605_p2 }
  0xac   :  { %8613 = shalt.err (!%p8610_p4)
}
  0xad   :  { %s8614_s3 = scalar_lea.vmem %s86_s1, 16  ;;  %s8618_s11 = scalar_lea.vmem %s86_s1, 32 }
  0xae   :  { %p8615_p5 = scmp.ne.s32.totalorder %s86_s1, %s8614_s3  ;;  %p8619_p6 = scmp.lt.s32.totalorder %s86_s1, %s86_s1 }
  0xaf   :  { %p8620_p7 = scmp.lt.s32.totalorder %s8618_s11, %s8614_s3 }
  0xb1   :  { %p8621_p8 = por %p8620_p7, %p8619_p6 }
  0xb3   :  { %p8622_p9 = pnand %p8621_p8, %p8615_p5 }
  0xb5   :  { %8625 = shalt.err (!%p8622_p9)
}
  0xb6   :  { %88 = dma.hbm_to_vmem [thread:$0]  %s12099_s4, 16, %s86_s1, [#allocation9]  }
  0xb7   :  { %s8812_s22 = smov [#allocation13]   ;;  %s8626_s26 = scalar_lea.hbm %s12101_s6, 9216 }
  0xb8   :  { %s104_s17 = sshll.u32 %s8812_s22, 4  ;;  %p8627_p10 = scmp.ne.s32.totalorder %s12101_s6, %s8626_s26  ;;  %s105_s17 = int_to_ptr.vmem [resolvable:$true] %s104_s17 }
  0xb9   :  { %p8630_p11 = scmp.lt.u32.totalorder %s8626_s26, %s12101_s6 }
  0xbb   :  { %p8632_p12 = pnand %p8630_p11, %p8627_p10 }
  0xbd   :  { %8635 = shalt.err (!%p8632_p12)
}
  0xbe   :  { %s8636_s29 = scalar_lea.vmem %s105_s17, 9216  ;;  %p8641_p0 = scmp.lt.s32.totalorder %s105_s17, %s105_s17 }
  0xbf   :  { %p8637_p13 = scmp.ne.s32.totalorder %s105_s17, %s8636_s29  ;;  %p8642_p1 = scmp.lt.s32.totalorder %s8636_s29, %s8636_s29 }
  0xc1   :  { %p8643_p2 = por %p8642_p1, %p8641_p0 }
  0xc3   :  { %p8644_p3 = pnand %p8643_p2, %p8637_p13 }
  0xc5   :  { %8647 = shalt.err (!%p8644_p3)
}
  0xc6   :  { %s8813_s4 = smov 64   ;;  %s8814_s1 = smov 4  }
  0xc7   :  { %110 = dma.hbm_to_vmem [thread:$0]  %s12101_s6, 9216, %s105_s17, [#allocation12], %s8813_s4, %s8813_s4, %s8814_s1  }
  0xc8   :  { %s8815_s0 = smov [#allocation16]   ;;  %s8816_s28 = smov [#allocation19]  }
  0xc9   :  { %s126_s13 = sshll.u32 %s8815_s0, 4  ;;  %s151_s5 = sshll.u32 %s8816_s28, 4  ;;  %s127_s13 = int_to_ptr.vmem [resolvable:$true] %s126_s13  ;;  %s152_s5 = int_to_ptr.vmem [resolvable:$true] %s151_s5 }
  0xca   :  { %s8648_s2 = scalar_lea.hbm %s12103_s8, 2048 }
  0xcb   :  { %p8649_p4 = scmp.ne.s32.totalorder %s12103_s8, %s8648_s2  ;;  %p8652_p5 = scmp.lt.u32.totalorder %s8648_s2, %s12103_s8 }
  0xcd   :  { %p8654_p6 = pnand %p8652_p5, %p8649_p4 }
  0xcf   :  { %8657 = shalt.err (!%p8654_p6)
}
  0xd0   :  { %s8658_s6 = scalar_lea.vmem %s127_s13, 2048  ;;  %p8663_p8 = scmp.lt.s32.totalorder %s127_s13, %s127_s13 }
  0xd1   :  { %p8659_p7 = scmp.ne.s32.totalorder %s127_s13, %s8658_s6  ;;  %p8664_p9 = scmp.lt.s32.totalorder %s8658_s6, %s8658_s6 }
  0xd3   :  { %p8665_p10 = por %p8664_p9, %p8663_p8 }
  0xd5   :  { %p8666_p11 = pnand %p8665_p10, %p8659_p7 }
  0xd7   :  { %8669 = shalt.err (!%p8666_p11)
}
  0xd8   :  { %132 = dma.hbm_to_vmem [thread:$0]  %s12103_s8, 2048, %s127_s13, [#allocation15], %s8802_s18, %s8802_s18, %s8803_s19  }
  0xd9   :  { %s8670_s9 = scalar_lea.hbm %s12105_s10, 16 }
  0xda   :  { %p8671_p12 = scmp.ne.s32.totalorder %s12105_s10, %s8670_s9  ;;  %p8674_p13 = scmp.lt.u32.totalorder %s8670_s9, %s12105_s10 }
  0xdc   :  { %p8676_p0 = pnand %p8674_p13, %p8671_p12 }
  0xde   :  { %8679 = shalt.err (!%p8676_p0)
}
  0xdf   :  { %s8680_s0 = scalar_lea.vmem %s152_s5, 16  ;;  %s8684_s28 = scalar_lea.vmem %s152_s5, 32 }
  0xe0   :  { %p8681_p1 = scmp.ne.s32.totalorder %s152_s5, %s8680_s0  ;;  %p8685_p2 = scmp.lt.s32.totalorder %s152_s5, %s152_s5 }
  0xe1   :  { %p8686_p3 = scmp.lt.s32.totalorder %s8684_s28, %s8680_s0 }
  0xe3   :  { %p8687_p4 = por %p8686_p3, %p8685_p2 }
  0xe5   :  { %p8688_p5 = pnand %p8687_p4, %p8681_p1 }
  0xe7   :  { %8691 = shalt.err (!%p8688_p5)
}
  0xe8   :  { %154 = dma.hbm_to_vmem [thread:$0]  %s12105_s10, 16, %s152_s5, [#allocation18]  }
  0xe9   :  { %s8817_s3 = smov [#allocation22]   ;;  %s8818_s2 = smov [#allocation25]  }
  0xea   :  { %s170_s11 = sshll.u32 %s8817_s3, 4  ;;  %s192_s20 = sshll.u32 %s8818_s2, 4  ;;  %s171_s11 = int_to_ptr.vmem [resolvable:$true] %s170_s11  ;;  %s193_s20 = int_to_ptr.vmem [resolvable:$true] %s192_s20 }
  0xeb   :  { %s8692_s25 = scalar_lea.hbm %s12107_s12, 9216 }
  0xec   :  { %p8693_p6 = scmp.ne.s32.totalorder %s12107_s12, %s8692_s25  ;;  %p8696_p7 = scmp.lt.u32.totalorder %s8692_s25, %s12107_s12 }
  0xee   :  { %p8698_p8 = pnand %p8696_p7, %p8693_p6 }
  0xf0   :  { %8701 = shalt.err (!%p8698_p8)
}
  0xf1   :  { %s8702_s10 = scalar_lea.vmem %s171_s11, 9216  ;;  %p8707_p10 = scmp.lt.s32.totalorder %s171_s11, %s171_s11 }
  0xf2   :  { %p8703_p9 = scmp.ne.s32.totalorder %s171_s11, %s8702_s10  ;;  %p8708_p11 = scmp.lt.s32.totalorder %s8702_s10, %s8702_s10 }
  0xf4   :  { %p8709_p12 = por %p8708_p11, %p8707_p10 }
  0xf6   :  { %p8710_p13 = pnand %p8709_p12, %p8703_p9 }
  0xf8   :  { %8713 = shalt.err (!%p8710_p13)
}
  0xf9   :  { %176 = dma.hbm_to_vmem [thread:$0]  %s12107_s12, 9216, %s171_s11, [#allocation21], %s8813_s4, %s8813_s4, %s8814_s1  }
  0xfa   :  { %s8714_s29 = scalar_lea.hbm %s12109_s14, 1024 }
  0xfb   :  { %p8715_p0 = scmp.ne.s32.totalorder %s12109_s14, %s8714_s29  ;;  %p8718_p1 = scmp.lt.u32.totalorder %s8714_s29, %s12109_s14 }
  0xfd   :  { %p8720_p2 = pnand %p8718_p1, %p8715_p0 }
  0xff   :  { %8723 = shalt.err (!%p8720_p2)
}
 0x100   :  { %s8724_s8 = scalar_lea.vmem %s193_s20, 1024  ;;  %p8729_p4 = scmp.lt.s32.totalorder %s193_s20, %s193_s20 }
 0x101   :  { %p8725_p3 = scmp.ne.s32.totalorder %s193_s20, %s8724_s8  ;;  %p8730_p5 = scmp.lt.s32.totalorder %s8724_s8, %s8724_s8 }
 0x103   :  { %p8731_p6 = por %p8730_p5, %p8729_p4 }
 0x105   :  { %p8732_p7 = pnand %p8731_p6, %p8725_p3 }
 0x107   :  { %8735 = shalt.err (!%p8732_p7)
}
 0x108   :  { %198 = dma.hbm_to_vmem [thread:$0]  %s12109_s14, 1024, %s193_s20, [#allocation24], %s8813_s4, %s8813_s4, %s8814_s1  }
 0x109   :  { %s8819_s3 = smov [#allocation26]   ;;  %s8736_s21 = scalar_lea.hbm %s12110_s15, 16 }
 0x10a   :  { %s205_s11 = sshll.u32 %s8819_s3, 4  ;;  %p8737_p8 = scmp.ne.s32.totalorder %s12110_s15, %s8736_s21  ;;  %s206_s11 = int_to_ptr.vmem [resolvable:$true] %s205_s11 }
 0x10b   :  { %p8740_p9 = scmp.lt.u32.totalorder %s8736_s21, %s12110_s15 }
 0x10d   :  { %p8742_p10 = pnand %p8740_p9, %p8737_p8 }
 0x10f   :  { %8745 = shalt.err (!%p8742_p10)
}
 0x110   :  { %s8746_s24 = scalar_lea.vmem %s206_s11, 16  ;;  %s8750_s14 = scalar_lea.vmem %s206_s11, 32 }
 0x111   :  { %p8747_p11 = scmp.ne.s32.totalorder %s206_s11, %s8746_s24  ;;  %p8751_p12 = scmp.lt.s32.totalorder %s206_s11, %s206_s11 }
 0x112   :  { %p8752_p13 = scmp.lt.s32.totalorder %s8750_s14, %s8746_s24 }
 0x114   :  { %p8753_p0 = por %p8752_p13, %p8751_p12 }
 0x116   :  { %p8754_p1 = pnand %p8753_p0, %p8747_p11 }
 0x118   :  { %8757 = shalt.err (!%p8754_p1)
}
 0x119   :  { %208 = dma.hbm_to_vmem [thread:$0]  %s12110_s15, 16, %s206_s11, [#allocation27]  }
 0x11a   :  { %8780 = dma.done.wait [#allocation3], 2048  }
 0x11b   :  { %8781 = vsyncadd [#allocation3], 4294965248 }
 0x11c   :  { %8782 = dma.done.wait [#allocation6], 4096  }
 0x11d   :  { %8783 = vsyncadd [#allocation6], 4294963200 }
 0x11e   :  { %8784 = dma.done.wait [#allocation9], 2064  }
 0x11f   :  { %8785 = vsyncadd [#allocation9], 4294965232 }
 0x120   :  { %8786 = dma.done.wait [#allocation12], 9232  }
 0x121   :  { %8787 = vsyncadd [#allocation12], 4294958064 }
 0x122   :  { %8788 = dma.done.wait [#allocation15], 2064  }
 0x123   :  { %8789 = vsyncadd [#allocation15], 4294965232 }
 0x124   :  { %8790 = dma.done.wait [#allocation18], 2064  }
 0x125   :  { %8791 = vsyncadd [#allocation18], 4294965232 }
 0x126   :  { %8792 = dma.done.wait [#allocation21], 9232  }
 0x127   :  { %8793 = vsyncadd [#allocation21], 4294958064 }
 0x128   :  { %8794 = dma.done.wait [#allocation24], 1040  }
 0x129   :  { %8795 = vsyncadd [#allocation24], 4294966256 }
 0x12a   :  { %8796 = dma.done.wait [#allocation27], 16  }
 0x12b   :  { %8797 = vsyncadd [#allocation27], 4294967280  ;;  %v12115_v0 = vmov 0.0|0.0   ;;  %vm8821_vm0 = vmmov 0   ;;  %v12113_v1 = vmov 0.0   ;;  %v300_v2 = vld [vmem:[#allocation7] sm:$0xff] }
 0x12c   :  { %7545 = vmatprep.subr.bf16.mxu0 %v12115_v0  ;;  %6689 = vmatprep.mubr.msk.f32.mxu0 %vm8821_vm0, %v12113_v1  ;;  %v301_v3 = vld [vmem:[#allocation7 + $0x8] sm:$0xff]  ;;  %v302_v4 = vld [vmem:[#allocation7 + $0x10] sm:$0xff]  ;;  %v303_v6 = vld [vmem:[#allocation7 + $0x18] sm:$0xff]  ;;  %vm318_vm1 = vcmask 1041409   ;;  %s8832_s15 = smov [#allocation28]  }
 0x12d   :  { %7665 = vmatprep.subr.bf16.mxu1 %v12115_v0  ;;  %7152 = vmatprep.mubr.msk.f32.mxu1 %vm8821_vm0, %v12113_v1  ;;  %v9157_v5 = vpack.c.bf16 %v301_v3, %v300_v2  ;;  %v9160_v7 = vpack.c.bf16 %v303_v6, %v302_v4  ;;  %v304_v8 = vld [vmem:[#allocation7 + $0x20] sm:$0xff]  ;;  %v305_v9 = vld [vmem:[#allocation7 + $0x28] sm:$0xff]  ;;  %v260_v12 = vld [vmem:[#allocation2 + $0x10] sm:$0xff]  ;;  %s6038_s20 = sshll.u32 %s8832_s15, 4  ;;  %s6039_s20 = int_to_ptr.vmem [resolvable:$true] %s6038_s20 }
 0x12e   :  { %v258_v10 = vld [vmem:[#allocation2] sm:$0xff]  ;;  %v259_v11 = vld [vmem:[#allocation2 + $0x8] sm:$0xff]  ;;  %v9164_v14 = vpack.c.bf16 %v305_v9, %v304_v8  ;;  %v306_v15 = vld [vmem:[#allocation7 + $0x30] sm:$0xff]  ;;  %s8758_s10 = scalar_lea.vmem %s6039_s20, 2048  ;;  %p8763_p3 = scmp.lt.s32.totalorder %s6039_s20, %s6039_s20 }
 0x12f   :  { %7547 = vmatpush3.bf16.msra.mxu0 %v9157_v5  ;;  %v274_v13 = vadd.f32 %v259_v11, %v258_v10  ;;  %v307_v16 = vld [vmem:[#allocation7 + $0x38] sm:$0xff]  ;;  %v266_v18 = vld [vmem:[#allocation2 + $0x40] sm:$0xff]  ;;  %v267_v19 = vld [vmem:[#allocation2 + $0x48] sm:$0xff]  ;;  %p8759_p2 = scmp.ne.s32.totalorder %s6039_s20, %s8758_s10  ;;  %p8764_p4 = scmp.lt.s32.totalorder %s8758_s10, %s8758_s10 }
 0x130   :  { %7548 = vmatprep.subr.bf16.mxu0 %v12115_v0  ;;  %v261_v17 = vld [vmem:[#allocation2 + $0x18] sm:$0xff]  ;;  %v268_v20 = vld [vmem:[#allocation2 + $0x50] sm:$0xff]  ;;  %v262_v22 = vld [vmem:[#allocation2 + $0x20] sm:$0xff]  ;;  %v287_v23 = vadd.f32 %v267_v19, %v266_v18  ;;  %v9168_v26 = vpack.c.bf16 %v307_v16, %v306_v15 }
 0x131   :  { %v275_v21 = vadd.f32 %v274_v13, %v260_v12  ;;  %v269_v24 = vld [vmem:[#allocation2 + $0x58] sm:$0xff]  ;;  %v263_v27 = vld [vmem:[#allocation2 + $0x28] sm:$0xff]  ;;  %v308_v29 = vld [vmem:[#allocation7 + $0x40] sm:$0xff]  ;;  %p8765_p5 = por %p8764_p4, %p8763_p3 }
 0x132   :  { %v288_v28 = vadd.f32 %v287_v23, %v268_v20  ;;  %v309_v30 = vld [vmem:[#allocation7 + $0x48] sm:$0xff]  ;;  %v270_v31 = vld [vmem:[#allocation2 + $0x60] sm:$0xff]  ;;  %v264_v33 = vld [vmem:[#allocation2 + $0x30] sm:$0xff] }
 0x133   :  { %7550 = vmatpush3.bf16.msra.mxu0 %v9160_v7  ;;  %v276_v25 = vadd.f32 %v275_v21, %v261_v17  ;;  %v310_v35 = vld [vmem:[#allocation7 + $0x50] sm:$0xff]  ;;  %v271_v36 = vld [vmem:[#allocation2 + $0x68] sm:$0xff]  ;;  %v9172_v38 = vpack.c.bf16 %v309_v30, %v308_v29  ;;  %v311_v39 = vld [vmem:[#allocation7 + $0x58] sm:$0xff]  ;;  %p8766_p6 = pnand %p8765_p5, %p8759_p2 }
 0x134   :  { %7551 = vmatprep.subr.bf16.mxu0 %v12115_v0  ;;  %v289_v34 = vadd.f32 %v288_v28, %v269_v24  ;;  %v265_v40 = vld [vmem:[#allocation2 + $0x38] sm:$0xff]  ;;  %v272_v41 = vld [vmem:[#allocation2 + $0x70] sm:$0xff]  ;;  %v312_v46 = vld [vmem:[#allocation7 + $0x60] sm:$0xff]  ;;  %v9176_v48 = vpack.c.bf16 %v311_v39, %v310_v35 }
 0x135   :  { %v277_v32 = vadd.f32 %v276_v25, %v262_v22  ;;  %v273_v43 = vld [vmem:[#allocation2 + $0x78] sm:$0xff]  ;;  %v313_v50 = vld [vmem:[#allocation7 + $0x68] sm:$0xff]  ;;  %v314_v55 = vld [vmem:[#allocation7 + $0x70] sm:$0xff] }
 0x136   :  { %v290_v42 = vadd.f32 %v289_v34, %v270_v31  ;;  %v9180_v54 = vpack.c.bf16 %v313_v50, %v312_v46  ;;  %v315_v57 = vld [vmem:[#allocation7 + $0x78] sm:$0xff]  ;;  %v391_v2 = vld [vmem:[#allocation8] sm:$0xff]  ;;  %v392_v3 = vld [vmem:[#allocation8 + $0x8] sm:$0xff]  ;;  %v8824_v50 = vmov 0  }
 0x137   :  { %7553 = vmatpush3.bf16.msra.mxu0 %v9164_v14  ;;  %v278_v37 = vadd.f32 %v277_v32, %v263_v27  ;;  %v9184_v61 = vpack.c.bf16 %v315_v57, %v314_v55  ;;  %v393_v9 = vld [vmem:[#allocation8 + $0x10] sm:$0xff]  ;;  %v394_v10 = vld [vmem:[#allocation8 + $0x18] sm:$0xff]  ;;  %v9189_v12 = vpack.c.bf16 %v392_v3, %v391_v2  ;;  %v395_v15 = vld [vmem:[#allocation8 + $0x20] sm:$0xff] }
 0x138   :  { %7554 = vmatprep.subr.bf16.mxu0 %v12115_v0  ;;  %v291_v45 = vadd.f32 %v290_v42, %v271_v36  ;;  %v396_v16 = vld [vmem:[#allocation8 + $0x28] sm:$0xff]  ;;  %v9193_v17 = vpack.c.bf16 %v394_v10, %v393_v9  ;;  %v397_v18 = vld [vmem:[#allocation8 + $0x30] sm:$0xff]  ;;  %v398_v19 = vld [vmem:[#allocation8 + $0x38] sm:$0xff] }
 0x139   :  { %v279_v44 = vadd.f32 %v278_v37, %v264_v33  ;;  %v9199_v20 = vpack.c.bf16 %v396_v16, %v395_v15  ;;  %v399_v21 = vld [vmem:[#allocation8 + $0x40] sm:$0xff]  ;;  %v400_v22 = vld [vmem:[#allocation8 + $0x48] sm:$0xff]  ;;  %v9203_v23 = vpack.c.bf16 %v398_v19, %v397_v18  ;;  %v401_v24 = vld [vmem:[#allocation8 + $0x50] sm:$0xff] }
 0x13a   :  { %v292_v49 = vadd.f32 %v291_v45, %v272_v41  ;;  %v402_v25 = vld [vmem:[#allocation8 + $0x58] sm:$0xff]  ;;  %v9207_v27 = vpack.c.bf16 %v400_v22, %v399_v21  ;;  %v403_v28 = vld [vmem:[#allocation8 + $0x60] sm:$0xff]  ;;  %v404_v29 = vld [vmem:[#allocation8 + $0x68] sm:$0xff] }
 0x13b   :  { %7556 = vmatpush3.bf16.msra.mxu0 %v9168_v26  ;;  %v280_v47 = vadd.f32 %v279_v44, %v265_v40  ;;  %v9211_v30 = vpack.c.bf16 %v402_v25, %v401_v24  ;;  %v405_v31 = vld [vmem:[#allocation8 + $0x70] sm:$0xff]  ;;  %v406_v32 = vld [vmem:[#allocation8 + $0x78] sm:$0xff]  ;;  %v9215_v33 = vpack.c.bf16 %v404_v29, %v403_v28  ;;  %v9250_v37 = vld [vmem:[#allocation5 + $0x8] sm:$0xff]  ;;  %v8827_v28 = vmov 3  }
 0x13c   :  { %7557 = vmatprep.subr.bf16.mxu0 %v12115_v0  ;;  %v293_v52 = vadd.f32 %v292_v49, %v273_v43  ;;  %v9219_v34 = vpack.c.bf16 %v406_v32, %v405_v31  ;;  %v9256_v39 = vld [vmem:[#allocation5 + $0x20] sm:$0xff]  ;;  %v9259_v40 = vld [vmem:[#allocation5 + $0x38] sm:$0xff]  ;;  %v9262_v41 = vld [vmem:[#allocation5 + $0x30] sm:$0xff] }
 0x13d   :  { %v281_v51 = vrot.slane %v280_v47, 4  ;;  %v9265_v42 = vld [vmem:[#allocation5 + $0x48] sm:$0xff]  ;;  %v9268_v43 = vld [vmem:[#allocation5 + $0x40] sm:$0xff]  ;;  %v9271_v44 = vld [vmem:[#allocation5 + $0x58] sm:$0xff] }
 0x13e   :  { %v294_v56 = vrot.slane %v293_v52, 4  ;;  %v9274_v45 = vld [vmem:[#allocation5 + $0x50] sm:$0xff]  ;;  %v9277_v46 = vld [vmem:[#allocation5 + $0x68] sm:$0xff]  ;;  %v8380_v29 = vld [vmem:[#allocation2 + $0x18] sm:$0xff] }
 0x13f   :  { %7559 = vmatpush3.bf16.msra.mxu0 %v9172_v38  ;;  %v282_v53 = vadd.f32 %v281_v51, %v280_v47  ;;  %v9280_v47 = vld [vmem:[#allocation5 + $0x60] sm:$0xff]  ;;  %v9286_v49 = vld [vmem:[#allocation5 + $0x70] sm:$0xff]  ;;  %v8825_v51 = vmov 2   ;;  %v8375_v9 = vld [vmem:[#allocation2 + $0x8] sm:$0xff] }
 0x140   :  { %7560 = vmatprep.subr.bf16.mxu0 %v12115_v0  ;;  %v295_v59 = vadd.f32 %v294_v56, %v293_v52  ;;  %v8826_v52 = vmov 1966171168   ;;  %v8377_v15 = vld [vmem:[#allocation2 + $0x48] sm:$0xff]  ;;  %v8378_v18 = vld [vmem:[#allocation2 + $0x10] sm:$0xff]  ;;  %v8381_v32 = vld [vmem:[#allocation2 + $0x58] sm:$0xff] }
 0x141   :  { %v283_v58 = vrot.slane %v282_v53, 2  ;;  %v8379_v21 = vld [vmem:[#allocation2 + $0x50] sm:$0xff] }
 0x142   :  { %v296_v62 = vrot.slane %v295_v59, 2 }
 0x143   :  { %7562 = vmatpush3.bf16.msra.mxu0 %v9176_v48  ;;  %v284_v60 = vadd.f32 %v283_v58, %v282_v53  ;;  %v479_v53 = vunpack.c.l.s4 %v8826_v52  ;;  %v8383_v52 = vld [vmem:[#allocation2 + $0x60] sm:$0xff] }
 0x144   :  { %7563 = vmatprep.subr.bf16.mxu0 %v12115_v0  ;;  %v297_v4 = vadd.f32 %v296_v62, %v295_v59 }
 0x145   :  { %v285_v63 = vrot.slane %v284_v60, 1  ;;  %v480_v55 = vunpack.c.0.s8 %v479_v53 }
 0x146   :  { %v298_v8 = vrot.slane %v297_v4, 1 }
 0x147   :  { %7565 = vmatpush3.bf16.msra.mxu0 %v9180_v54  ;;  %v286_v6 = vadd.f32 %v285_v63, %v284_v60 }
 0x148   :  { %7566 = vmatprep.subr.bf16.mxu0 %v12115_v0  ;;  %v299_v11 = vadd.f32 %v298_v8, %v297_v4 }
 0x14a   :  { %v319_v13 = vsel %vm318_vm1, %v299_v11, %v286_v6  ;;  %v8374_v6 = vld [vmem:[#allocation2] sm:$0xff] }
 0x14b   :  { %7568 = vmatpush3.bf16.msra.mxu0 %v9184_v61  ;;  %v8376_v11 = vld [vmem:[#allocation2 + $0x40] sm:$0xff] }
 0x14c   :  { %7569 = vmatprep.subr.bf16.mxu0 %v12115_v0 }
 0x14e   :  { %6690 = vmatmul.mubr.f32.vlgmr.msra.gmra.mrb[0].mxu0 %v319_v13 }
 0x14f   :  { %7571 = vmatpush3.bf16.msra.mxu0 %v9189_v12  ;;  %6724 = vmatprep.mubr.msk.f32.mxu0 %vm8821_vm0, %v12113_v1 }
 0x150   :  { %7572 = vmatprep.subr.bf16.mxu0 %v12115_v0 }
 0x153   :  { %7574 = vmatpush3.bf16.msra.mxu0 %v9193_v17 }
 0x154   :  { %7575 = vmatprep.subr.bf16.mxu0 %v12115_v0 }
 0x157   :  { %7577 = vmatpush3.bf16.msra.mxu0 %v9199_v20 }
 0x158   :  { %7578 = vmatprep.subr.bf16.mxu0 %v12115_v0 }
 0x15b   :  { %7580 = vmatpush3.bf16.msra.mxu0 %v9203_v23 }
 0x15c   :  { %7581 = vmatprep.subr.bf16.mxu0 %v12115_v0 }
 0x15f   :  { %7583 = vmatpush3.bf16.msra.mxu0 %v9207_v27 }
 0x160   :  { %7584 = vmatprep.subr.bf16.mxu0 %v12115_v0 }
 0x163   :  { %7586 = vmatpush3.bf16.msra.mxu0 %v9211_v30 }
 0x164   :  { %7587 = vmatprep.subr.bf16.mxu0 %v12115_v0 }
 0x167   :  { %7589 = vmatpush3.bf16.msra.mxu0 %v9215_v33 }
 0x168   :  { %7590 = vmatprep.subr.bf16.mxu0 %v12115_v0 }
 0x16b   :  { %7592 = vmatpush3.bf16.msra.mxu0 %v9219_v34 }
 0x16c   :  { %7593 = vmatprep.subr.bf16.mxu0 %v12115_v0 }
 0x221   :  { %v387_v35 = vpop.f32.mrb[0].mxu0 }
 0x222   :  { %v6691_v36 = vpop.f32.mrb[1].mxu0  ;;  %6725 = vmatmul.mubr.f32.vlgmr.msra.gmra.mrb[2].mxu0 %v387_v35 }
 0x223   :  { %7595 = vmatpush3.bf16.msra.mxu0 %v9157_v5  ;;  %6759 = vmatprep.mubr.msk.f32.mxu0 %vm8821_vm0, %v12113_v1  ;;  %v9242_v5 = vld [vmem:[#allocation5 + $0x10] sm:$0xff] }
 0x224   :  { %7596 = vmatprep.subr.bf16.mxu0 %v12115_v0 }
 0x227   :  { %7598 = vmatpush3.bf16.msra.mxu0 %v9160_v7  ;;  %v8823_v7 = vmov 1  }
 0x228   :  { %7599 = vmatprep.subr.bf16.mxu0 %v12115_v0  ;;  %8075 = vset.pattern.permute.xlu1 %v8823_v7 }
 0x229   :  { %8074 = vset.pattern.permute.xlu0 %v8823_v7  ;;  %1100 = vperm.xlu1 %8075, %v9242_v5  }
 0x22b   :  { %7601 = vmatpush3.bf16.msra.mxu0 %v9164_v14  ;;  %v9245_v14 = vld [vmem:[#allocation5] sm:$0xff] }
 0x22c   :  { %7602 = vmatprep.subr.bf16.mxu0 %v12115_v0  ;;  %1092 = vperm.xlu0 %8074, %v9245_v14  }
 0x22f   :  { %7604 = vmatpush3.bf16.msra.mxu0 %v9168_v26  ;;  %v9247_v26 = vld [vmem:[#allocation5 + $0x18] sm:$0xff] }
 0x230   :  { %7605 = vmatprep.subr.bf16.mxu0 %v12115_v0  ;;  %1104 = vperm.xlu1 %8075, %v9247_v26  }
 0x231   :  { %1096 = vperm.xlu0 %8074, %v9250_v37  }
 0x233   :  { %7607 = vmatpush3.bf16.msra.mxu0 %v9172_v38  ;;  %v9253_v38 = vld [vmem:[#allocation5 + $0x28] sm:$0xff] }
 0x234   :  { %7608 = vmatprep.subr.bf16.mxu0 %v12115_v0  ;;  %1112 = vperm.xlu1 %8075, %v9253_v38  }
 0x235   :  { %1108 = vperm.xlu0 %8074, %v9256_v39  }
 0x237   :  { %7610 = vmatpush3.bf16.msra.mxu0 %v9176_v48  ;;  %v9283_v48 = vld [vmem:[#allocation5 + $0x78] sm:$0xff] }
 0x238   :  { %7611 = vmatprep.subr.bf16.mxu0 %v12115_v0  ;;  %1120 = vperm.xlu1 %8075, %v9259_v40  }
 0x239   :  { %1116 = vperm.xlu0 %8074, %v9262_v41  }
 0x23b   :  { %7613 = vmatpush3.bf16.msra.mxu0 %v9180_v54  ;;  %v481_v54 = vlaneseq }
 0x23c   :  { %7614 = vmatprep.subr.bf16.mxu0 %v12115_v0  ;;  %1128 = vperm.xlu1 %8075, %v9265_v42  }
 0x23d   :  { %1124 = vperm.xlu0 %8074, %v9268_v43   ;;  %v9312_v56 = vshrl.u32 %v481_v54, 7 }
 0x23f   :  { %7616 = vmatpush3.bf16.msra.mxu0 %v9184_v61  ;;  %12408 = vst [vmem:[#allocation39_spill] sm:$0xff] %v9312_v56  ;;  %v9317_v57 = vsub.s32 %v480_v55, %v9312_v56  ;;  %v9323_v60 = vsub.s32 0, %v9312_v56  ;;  %vm1502_vm2 = vcmp.lt.s32.totalorder %v9312_v56, 7  ;;  %vm938_vm3 = vcmp.lt.s32.totalorder %v9312_v56, 1 }
 0x240   :  { %7617 = vmatprep.subr.bf16.mxu0 %v12115_v0  ;;  %1136 = vperm.xlu1 %8075, %v9271_v44  }
 0x241   :  { %1132 = vperm.xlu0 %8074, %v9274_v45   ;;  %12409 = vst [vmem:[#allocation40_spill] sm:$0xff] %v9317_v57  ;;  %12410 = vst [vmem:[#allocation41_spill] sm:$0xff] %v9323_v60 }
 0x244   :  { %1144 = vperm.xlu1 %8075, %v9277_v46  }
 0x245   :  { %1140 = vperm.xlu0 %8074, %v9280_v47  }
 0x248   :  { %1152 = vperm.xlu1 %8075, %v9283_v48  }
 0x249   :  { %1148 = vperm.xlu0 %8074, %v9286_v49  }
 0x24c   :  { %8077 = vset.pattern.permute.xlu1 %v8824_v50 }
 0x24d   :  { %978 = vperm.xlu1 %8077, %v9250_v37   ;;  %8076 = vset.pattern.permute.xlu0 %v8824_v50  ;;  %v8382_v50 = vld [vmem:[#allocation2 + $0x20] sm:$0xff] }
 0x24e   :  { %973 = vperm.xlu0 %8076, %v9245_v14  }
 0x251   :  { %983 = vperm.xlu1 %8077, %v9242_v5  }
 0x252   :  { %988 = vperm.xlu0 %8076, %v9247_v26  }
 0x255   :  { %993 = vperm.xlu1 %8077, %v9256_v39  }
 0x256   :  { %998 = vperm.xlu0 %8076, %v9253_v38  }
 0x259   :  { %1003 = vperm.xlu1 %8077, %v9262_v41  }
 0x25a   :  { %1008 = vperm.xlu0 %8076, %v9259_v40  }
 0x25d   :  { %1013 = vperm.xlu1 %8077, %v9268_v43  }
 0x25e   :  { %1018 = vperm.xlu0 %8076, %v9265_v42  }
 0x261   :  { %1023 = vperm.xlu1 %8077, %v9274_v45  }
 0x262   :  { %1028 = vperm.xlu0 %8076, %v9271_v44  }
 0x265   :  { %1033 = vperm.xlu1 %8077, %v9280_v47  }
 0x266   :  { %1038 = vperm.xlu0 %8076, %v9277_v46  }
 0x269   :  { %1043 = vperm.xlu1 %8077, %v9286_v49  }
 0x26a   :  { %1048 = vperm.xlu0 %8076, %v9283_v48  }
 0x26d   :  { %8078 = vset.pattern.permute.xlu1 %v8825_v51 }
 0x26e   :  { %1520 = vperm.xlu1 %8078, %v9245_v14   ;;  %8079 = vset.pattern.permute.xlu0 %v8825_v51 }
 0x26f   :  { %1524 = vperm.xlu0 %8079, %v9250_v37  }
 0x272   :  { %1528 = vperm.xlu1 %8078, %v9242_v5  }
 0x273   :  { %1536 = vperm.xlu0 %8079, %v9256_v39  }
 0x276   :  { %1532 = vperm.xlu1 %8078, %v9247_v26  }
 0x277   :  { %1544 = vperm.xlu0 %8079, %v9262_v41  }
 0x27a   :  { %1540 = vperm.xlu1 %8078, %v9253_v38  }
 0x27b   :  { %1552 = vperm.xlu0 %8079, %v9268_v43  }
 0x27e   :  { %1548 = vperm.xlu1 %8078, %v9259_v40  }
 0x27f   :  { %1560 = vperm.xlu0 %8079, %v9274_v45  }
 0x282   :  { %1556 = vperm.xlu1 %8078, %v9265_v42  }
 0x283   :  { %1568 = vperm.xlu0 %8079, %v9280_v47  }
 0x286   :  { %1564 = vperm.xlu1 %8078, %v9271_v44  }
 0x287   :  { %1576 = vperm.xlu0 %8079, %v9286_v49  }
 0x28a   :  { %1572 = vperm.xlu1 %8078, %v9277_v46  }
 0x28b   :  { %8080 = vset.pattern.permute.xlu0 %v8827_v28 }
 0x28c   :  { %1786 = vperm.xlu0 %8080, %v9245_v14  }
 0x28e   :  { %1580 = vperm.xlu1 %8078, %v9283_v48  }
 0x290   :  { %1798 = vperm.xlu0 %8080, %v9247_v26  }
 0x292   :  { %8081 = vset.pattern.permute.xlu1 %v8827_v28 }
 0x293   :  { %1790 = vperm.xlu1 %8081, %v9250_v37  }
 0x294   :  { %1806 = vperm.xlu0 %8080, %v9253_v38  }
 0x297   :  { %1794 = vperm.xlu1 %8081, %v9242_v5  }
 0x298   :  { %1814 = vperm.xlu0 %8080, %v9259_v40  }
 0x29b   :  { %1802 = vperm.xlu1 %8081, %v9256_v39  }
 0x29c   :  { %1822 = vperm.xlu0 %8080, %v9265_v42  }
 0x29f   :  { %1810 = vperm.xlu1 %8081, %v9262_v41  }
 0x2a0   :  { %1830 = vperm.xlu0 %8080, %v9271_v44  }
 0x2a3   :  { %1818 = vperm.xlu1 %8081, %v9268_v43  }
 0x2a4   :  { %1838 = vperm.xlu0 %8080, %v9277_v46  }
 0x2a7   :  { %1826 = vperm.xlu1 %8081, %v9274_v45  }
 0x2a8   :  { %1846 = vperm.xlu0 %8080, %v9283_v48  }
 0x2ab   :  { %1834 = vperm.xlu1 %8081, %v9280_v47  }
 0x2af   :  { %1842 = vperm.xlu1 %8081, %v9286_v49  }
 0x2f5   :  { %v473_v58 = vpop.f32.mrb[2].mxu0 }
 0x2f6   :  { %v484_v59 = vrot.slane %v473_v58, %v9317_v57  ;;  %v6726_v61 = vpop.f32.mrb[3].mxu0 }
 0x2f7   :  { %v8384_v61 = vld [vmem:[#allocation2 + $0x28] sm:$0xff] }
 0x2f8   :  { %v485_v62 = vcombine.high %v484_v59, %v484_v59  ;;  %v492_v63 = vrot.slane %v484_v59, %v9317_v57 }
 0x2fa   :  { %v499_v2 = vrot.slane %v485_v62, %v9317_v57  ;;  %v503_v3 = vrot.slane %v492_v63, %v9323_v60  ;;  %v8385_v63 = vld [vmem:[#allocation2 + $0x68] sm:$0xff] }
 0x2fc   :  { %v507_v4 = vrot.slane %v499_v2, %v9323_v60  ;;  %v9332_v8 = vsub.f32 %v8374_v6, %v503_v3  ;;  %v9334_v10 = vsub.f32 %v8375_v9, %v503_v3  ;;  %v9342_v19 = vsub.f32 %v8378_v18, %v503_v3  ;;  %v8386_v18 = vld [vmem:[#allocation2 + $0x30] sm:$0xff] }
 0x2fd   :  { %v9351_v31 = vsub.f32 %v8380_v29, %v503_v3  ;;  %v9359_v51 = vsub.f32 %v8382_v50, %v503_v3  ;;  %v9368_v62 = vsub.f32 %v8384_v61, %v503_v3  ;;  %v8388_v50 = vld [vmem:[#allocation2 + $0x38] sm:$0xff] }
 0x2fe   :  { %v9337_v13 = vsub.f32 %v8376_v11, %v507_v4  ;;  %v9339_v16 = vsub.f32 %v8377_v15, %v507_v4  ;;  %v9344_v22 = vsub.f32 %v8379_v21, %v507_v4  ;;  %v526_v24 = vmul.f32 %v9332_v8, %v9332_v8 }
 0x2ff   :  { %v527_v25 = vmul.f32 %v9334_v10, %v9334_v10  ;;  %v9353_v35 = vsub.f32 %v8381_v32, %v507_v4  ;;  %v9361_v53 = vsub.f32 %v8383_v52, %v507_v4  ;;  %v528_v54 = vmul.f32 %v9342_v19, %v9342_v19 }
 0x300   :  { %v534_v36 = vmul.f32 %v9337_v13, %v9337_v13  ;;  %v535_v7 = vmul.f32 %v9339_v16, %v9339_v16  ;;  %v536_v55 = vmul.f32 %v9344_v22, %v9344_v22  ;;  %v9370_v2 = vsub.f32 %v8385_v63, %v507_v4 }
 0x301   :  { %v542_v58 = vadd.f32 %v527_v25, %v526_v24  ;;  %v529_v6 = vmul.f32 %v9351_v31, %v9351_v31  ;;  %v537_v9 = vmul.f32 %v9353_v35, %v9353_v35  ;;  %v9377_v21 = vsub.f32 %v8386_v18, %v503_v3  ;;  %v8387_v24 = vld [vmem:[#allocation2 + $0x70] sm:$0xff] }
 0x302   :  { %v555_v59 = vadd.f32 %v535_v7, %v534_v36  ;;  %v9379_v25 = vsub.f32 %v8387_v24, %v507_v4  ;;  %v530_v29 = vmul.f32 %v9359_v51, %v9359_v51  ;;  %v538_v32 = vmul.f32 %v9361_v53, %v9361_v53 }
 0x303   :  { %v543_v11 = vadd.f32 %v542_v58, %v528_v54  ;;  %v9386_v52 = vsub.f32 %v8388_v50, %v503_v3  ;;  %v8389_v54 = vld [vmem:[#allocation2 + $0x78] sm:$0xff]  ;;  %v531_v28 = vmul.f32 %v9368_v62, %v9368_v62  ;;  %v539_v58 = vmul.f32 %v9370_v2, %v9370_v2 }
 0x304   :  { %v556_v15 = vadd.f32 %v555_v59, %v536_v55  ;;  %v9388_v55 = vsub.f32 %v8389_v54, %v507_v4  ;;  %v532_v63 = vmul.f32 %v9377_v21, %v9377_v21  ;;  %v540_v3 = vmul.f32 %v9379_v25, %v9379_v25 }
 0x305   :  { %v544_v36 = vadd.f32 %v543_v11, %v529_v6  ;;  %v533_v4 = vmul.f32 %v9386_v52, %v9386_v52 }
 0x306   :  { %v557_v7 = vadd.f32 %v556_v15, %v537_v9  ;;  %v541_v11 = vmul.f32 %v9388_v55, %v9388_v55 }
 0x307   :  { %v545_v59 = vadd.f32 %v544_v36, %v530_v29 }
 0x308   :  { %v558_v61 = vadd.f32 %v557_v7, %v538_v32 }
 0x309   :  { %v546_v6 = vadd.f32 %v545_v59, %v531_v28 }
 0x30a   :  { %v559_v9 = vadd.f32 %v558_v61, %v539_v58 }
 0x30b   :  { %v547_v15 = vadd.f32 %v546_v6, %v532_v63 }
 0x30c   :  { %v560_v18 = vadd.f32 %v559_v9, %v540_v3 }
 0x30d   :  { %v548_v24 = vadd.f32 %v547_v15, %v533_v4  ;;  %v8830_v15 = vmov 7  }
 0x30e   :  { %v561_v29 = vadd.f32 %v560_v18, %v541_v11 }
 0x30f   :  { %v549_v32 = vrot.slane %v548_v24, 4 }
 0x310   :  { %v562_v36 = vrot.slane %v561_v29, 4 }
 0x311   :  { %v550_v7 = vadd.f32 %v549_v32, %v548_v24 }
 0x312   :  { %v563_v50 = vadd.f32 %v562_v36, %v561_v29 }
 0x313   :  { %v551_v54 = vrot.slane %v550_v7, 2 }
 0x314   :  { %v564_v28 = vrot.slane %v563_v50, 2 }
 0x315   :  { %v552_v58 = vadd.f32 %v551_v54, %v550_v7 }
 0x316   :  { %v565_v59 = vadd.f32 %v564_v28, %v563_v50 }
 0x317   :  { %v553_v61 = vrot.slane %v552_v58, 1 }
 0x318   :  { %v566_v63 = vrot.slane %v565_v59, 1 }
 0x319   :  { %v554_v3 = vadd.f32 %v553_v61, %v552_v58 }
 0x31a   :  { %v567_v6 = vadd.f32 %v566_v63, %v565_v59  ;;  %v8831_v59 = vmov 8  }
 0x31c   :  { %v570_v9 = vsel %vm318_vm1, %v567_v6, %v554_v3 }
 0x31d   :  { %6760 = vmatmul.mubr.f32.vlgmr.msra.gmra.mrb[4].mxu0 %v570_v9 }
 0x31e   :  { %7619 = vmatpush3.bf16.msra.mxu0 %v9189_v12  ;;  %6794 = vmatprep.mubr.msk.f32.mxu0 %vm8821_vm0, %v12113_v1  ;;  %v8828_v12 = vmov 5  }
 0x31f   :  { %7620 = vmatprep.subr.bf16.mxu0 %v12115_v0  ;;  %8082 = vset.pattern.permute.xlu1 %v8828_v12 }
 0x320   :  { %8083 = vset.pattern.permute.xlu0 %v8828_v12  ;;  %2238 = vperm.xlu1 %8082, %v9245_v14  }
 0x321   :  { %2242 = vperm.xlu0 %8083, %v9250_v37  }
 0x322   :  { %7622 = vmatpush3.bf16.msra.mxu0 %v9193_v17  ;;  %v9447_v17 = vpop.permute.xlu1 %1100 }
 0x323   :  { %7623 = vmatprep.subr.bf16.mxu0 %v12115_v0  ;;  %12411 = vst [vmem:[#allocation42_spill] sm:$0xff] %v9447_v17 }
 0x324   :  { %2246 = vperm.xlu1 %8082, %v9242_v5  }
 0x325   :  { %2254 = vperm.xlu0 %8083, %v9256_v39  }
 0x326   :  { %7625 = vmatpush3.bf16.msra.mxu0 %v9199_v20  ;;  %v8829_v20 = vmov 6  }
 0x327   :  { %7626 = vmatprep.subr.bf16.mxu0 %v12115_v0 }
 0x328   :  { %2250 = vperm.xlu1 %8082, %v9247_v26  }
 0x329   :  { %2262 = vperm.xlu0 %8083, %v9262_v41  }
 0x32a   :  { %7628 = vmatpush3.bf16.msra.mxu0 %v9203_v23  ;;  %v9452_v23 = vpop.permute.xlu1 %1104 }
 0x32b   :  { %7629 = vmatprep.subr.bf16.mxu0 %v12115_v0  ;;  %12412 = vst [vmem:[#allocation43_spill] sm:$0xff] %v9452_v23 }
 0x32c   :  { %2258 = vperm.xlu1 %8082, %v9253_v38  }
 0x32d   :  { %2270 = vperm.xlu0 %8083, %v9268_v43  }
 0x32e   :  { %7631 = vmatpush3.bf16.msra.mxu0 %v9207_v27  ;;  %v9457_v27 = vpop.permute.xlu1 %1112 }
 0x32f   :  { %7632 = vmatprep.subr.bf16.mxu0 %v12115_v0  ;;  %12413 = vst [vmem:[#allocation44_spill] sm:$0xff] %v9457_v27 }
 0x330   :  { %2266 = vperm.xlu1 %8082, %v9259_v40  }
 0x331   :  { %2278 = vperm.xlu0 %8083, %v9274_v45  }
 0x332   :  { %7634 = vmatpush3.bf16.msra.mxu0 %v9211_v30  ;;  %v9461_v30 = vpop.permute.xlu1 %1120 }
 0x333   :  { %7635 = vmatprep.subr.bf16.mxu0 %v12115_v0  ;;  %12414 = vst [vmem:[#allocation45_spill] sm:$0xff] %v9461_v30 }
 0x334   :  { %2274 = vperm.xlu1 %8082, %v9265_v42  }
 0x335   :  { %2286 = vperm.xlu0 %8083, %v9280_v47  }
 0x336   :  { %7637 = vmatpush3.bf16.msra.mxu0 %v9215_v33  ;;  %v9467_v33 = vpop.permute.xlu1 %1128 }
 0x337   :  { %7638 = vmatprep.subr.bf16.mxu0 %v12115_v0  ;;  %12415 = vst [vmem:[#allocation46_spill] sm:$0xff] %v9467_v33 }
 0x338   :  { %2282 = vperm.xlu1 %8082, %v9271_v44  }
 0x339   :  { %2294 = vperm.xlu0 %8083, %v9286_v49  }
 0x33a   :  { %7640 = vmatpush3.bf16.msra.mxu0 %v9219_v34  ;;  %v9469_v34 = vpop.permute.xlu0 %1092  ;;  %v9473_v4 = vpop.permute.xlu1 %1136 }
 0x33b   :  { %12416 = vst [vmem:[#allocation47_spill] sm:$0xff] %v9469_v34  ;;  %12417 = vst [vmem:[#allocation48_spill] sm:$0xff] %v9473_v4 }
 0x33c   :  { %2290 = vperm.xlu1 %8082, %v9277_v46  }
 0x33d   :  { %8084 = vset.pattern.permute.xlu0 %v8829_v20 }
 0x33e   :  { %2504 = vperm.xlu0 %8084, %v9245_v14   ;;  %v9477_v11 = vpop.permute.xlu0 %1096  ;;  %v9481_v18 = vpop.permute.xlu1 %1144 }
 0x33f   :  { %12418 = vst [vmem:[#allocation49_spill] sm:$0xff] %v9477_v11  ;;  %12419 = vst [vmem:[#allocation50_spill] sm:$0xff] %v9481_v18 }
 0x340   :  { %2298 = vperm.xlu1 %8082, %v9283_v48  }
 0x342   :  { %2516 = vperm.xlu0 %8084, %v9247_v26   ;;  %v9483_v24 = vpop.permute.xlu0 %1108  ;;  %v9487_v29 = vpop.permute.xlu1 %1152 }
 0x343   :  { %12420 = vst [vmem:[#allocation51_spill] sm:$0xff] %v9483_v24  ;;  %12421 = vst [vmem:[#allocation52_spill] sm:$0xff] %v9487_v29 }
 0x344   :  { %8085 = vset.pattern.permute.xlu1 %v8829_v20 }
 0x345   :  { %2508 = vperm.xlu1 %8085, %v9250_v37  }
 0x346   :  { %2524 = vperm.xlu0 %8084, %v9253_v38   ;;  %v9491_v32 = vpop.permute.xlu0 %1116  ;;  %v9495_v36 = vpop.permute.xlu1 %978 }
 0x347   :  { %12422 = vst [vmem:[#allocation53_spill] sm:$0xff] %v9491_v32  ;;  %12423 = vst [vmem:[#allocation54_spill] sm:$0xff] %v9495_v36 }
 0x349   :  { %2512 = vperm.xlu1 %8085, %v9242_v5  }
 0x34a   :  { %2532 = vperm.xlu0 %8084, %v9259_v40   ;;  %v9497_v7 = vpop.permute.xlu0 %1124  ;;  %v9501_v50 = vpop.permute.xlu1 %983 }
 0x34b   :  { %12424 = vst [vmem:[#allocation55_spill] sm:$0xff] %v9497_v7  ;;  %12425 = vst [vmem:[#allocation56_spill] sm:$0xff] %v9501_v50 }
 0x34d   :  { %2520 = vperm.xlu1 %8085, %v9256_v39  }
 0x34e   :  { %2540 = vperm.xlu0 %8084, %v9265_v42   ;;  %v9505_v54 = vpop.permute.xlu0 %1132  ;;  %v9509_v28 = vpop.permute.xlu1 %993 }
 0x34f   :  { %12426 = vst [vmem:[#allocation57_spill] sm:$0xff] %v9505_v54  ;;  %12427 = vst [vmem:[#allocation58_spill] sm:$0xff] %v9509_v28 }
 0x351   :  { %2528 = vperm.xlu1 %8085, %v9262_v41  }
 0x352   :  { %2548 = vperm.xlu0 %8084, %v9271_v44   ;;  %v9511_v58 = vpop.permute.xlu0 %1140  ;;  %v9515_v61 = vpop.permute.xlu1 %1003 }
 0x353   :  { %12428 = vst [vmem:[#allocation59_spill] sm:$0xff] %v9511_v58  ;;  %12429 = vst [vmem:[#allocation60_spill] sm:$0xff] %v9515_v61 }
 0x355   :  { %2536 = vperm.xlu1 %8085, %v9268_v43  }
 0x356   :  { %2556 = vperm.xlu0 %8084, %v9277_v46   ;;  %v9518_v63 = vpop.permute.xlu0 %1148  ;;  %v9522_v3 = vpop.permute.xlu1 %1013 }
 0x357   :  { %12430 = vst [vmem:[#allocation61_spill] sm:$0xff] %v9518_v63  ;;  %12431 = vst [vmem:[#allocation62_spill] sm:$0xff] %v9522_v3 }
 0x359   :  { %2544 = vperm.xlu1 %8085, %v9274_v45  }
 0x35a   :  { %2564 = vperm.xlu0 %8084, %v9283_v48   ;;  %v9525_v6 = vpop.permute.xlu0 %973 }
 0x35b   :  { %12432 = vst [vmem:[#allocation63_spill] sm:$0xff] %v9525_v6 }
 0x35d   :  { %2552 = vperm.xlu1 %8085, %v9280_v47  }
 0x35e   :  { %8087 = vset.pattern.permute.xlu0 %v8830_v15  ;;  %v9531_v9 = vpop.permute.xlu0 %988 }
 0x35f   :  { %2774 = vperm.xlu0 %8087, %v9250_v37   ;;  %12434 = vst [vmem:[#allocation65_spill] sm:$0xff] %v9531_v9 }
 0x361   :  { %2560 = vperm.xlu1 %8085, %v9286_v49  }
 0x363   :  { %2786 = vperm.xlu0 %8087, %v9256_v39  }
 0x365   :  { %8086 = vset.pattern.permute.xlu1 %v8830_v15 }
 0x366   :  { %2770 = vperm.xlu1 %8086, %v9245_v14  }
 0x367   :  { %2794 = vperm.xlu0 %8087, %v9262_v41  }
 0x36a   :  { %2778 = vperm.xlu1 %8086, %v9242_v5  }
 0x36b   :  { %2802 = vperm.xlu0 %8087, %v9268_v43  }
 0x36e   :  { %2782 = vperm.xlu1 %8086, %v9247_v26  }
 0x36f   :  { %2810 = vperm.xlu0 %8087, %v9274_v45  }
 0x372   :  { %2790 = vperm.xlu1 %8086, %v9253_v38  }
 0x373   :  { %2818 = vperm.xlu0 %8087, %v9280_v47  }
 0x376   :  { %2798 = vperm.xlu1 %8086, %v9259_v40  }
 0x377   :  { %2826 = vperm.xlu0 %8087, %v9286_v49  }
 0x37a   :  { %2806 = vperm.xlu1 %8086, %v9265_v42  }
 0x37b   :  { %8088 = vset.pattern.permute.xlu0 %v8831_v59 }
 0x37c   :  { %3036 = vperm.xlu0 %8088, %v9245_v14   ;;  %v9529_v14 = vpop.permute.xlu1 %1023 }
 0x37d   :  { %12433 = vst [vmem:[#allocation64_spill] sm:$0xff] %v9529_v14 }
 0x37e   :  { %2814 = vperm.xlu1 %8086, %v9271_v44  }
 0x380   :  { %3048 = vperm.xlu0 %8088, %v9247_v26   ;;  %v9535_v26 = vpop.permute.xlu1 %1033 }
 0x381   :  { %12435 = vst [vmem:[#allocation66_spill] sm:$0xff] %v9535_v26 }
 0x382   :  { %2822 = vperm.xlu1 %8086, %v9277_v46  }
 0x384   :  { %3056 = vperm.xlu0 %8088, %v9253_v38   ;;  %v9539_v38 = vpop.permute.xlu0 %998 }
 0x385   :  { %12436 = vst [vmem:[#allocation67_spill] sm:$0xff] %v9539_v38 }
 0x386   :  { %2830 = vperm.xlu1 %8086, %v9283_v48  }
 0x388   :  { %3064 = vperm.xlu0 %8088, %v9259_v40   ;;  %v9543_v40 = vpop.permute.xlu1 %1043  ;;  %v9545_v12 = vpop.permute.xlu0 %1008 }
 0x389   :  { %12437 = vst [vmem:[#allocation68_spill] sm:$0xff] %v9543_v40  ;;  %12438 = vst [vmem:[#allocation69_spill] sm:$0xff] %v9545_v12 }
 0x38a   :  { %8089 = vset.pattern.permute.xlu1 %v8831_v59 }
 0x38b   :  { %3040 = vperm.xlu1 %8089, %v9250_v37  }
 0x38c   :  { %3072 = vperm.xlu0 %8088, %v9265_v42   ;;  %v9549_v37 = vpop.permute.xlu1 %1520 }
 0x38d   :  { %12439 = vst [vmem:[#allocation70_spill] sm:$0xff] %v9549_v37 }
 0x38f   :  { %3044 = vperm.xlu1 %8089, %v9242_v5  }
 0x390   :  { %3080 = vperm.xlu0 %8088, %v9271_v44   ;;  %v9556_v44 = vpop.permute.xlu0 %1018 }
 0x391   :  { %12441 = vst [vmem:[#allocation72_spill] sm:$0xff] %v9556_v44 }
 0x393   :  { %3052 = vperm.xlu1 %8089, %v9256_v39   ;;  %v9553_v39 = vpop.permute.xlu1 %1528 }
 0x394   :  { %3088 = vperm.xlu0 %8088, %v9277_v46   ;;  %12440 = vst [vmem:[#allocation71_spill] sm:$0xff] %v9553_v39 }
 0x397   :  { %3060 = vperm.xlu1 %8089, %v9262_v41   ;;  %v9558_v46 = vpop.permute.xlu1 %1532  ;;  %v9561_v41 = vpop.permute.xlu0 %1028 }
 0x398   :  { %3096 = vperm.xlu0 %8088, %v9283_v48   ;;  %12442 = vst [vmem:[#allocation73_spill] sm:$0xff] %v9558_v46  ;;  %12443 = vst [vmem:[#allocation74_spill] sm:$0xff] %v9561_v41 }
 0x39b   :  { %3068 = vperm.xlu1 %8089, %v9268_v43   ;;  %v9563_v48 = vpop.permute.xlu1 %1540  ;;  %v9565_v43 = vpop.permute.xlu0 %1038 }
 0x39c   :  { %12444 = vst [vmem:[#allocation75_spill] sm:$0xff] %v9563_v48  ;;  %12445 = vst [vmem:[#allocation76_spill] sm:$0xff] %v9565_v43 }
 0x39f   :  { %3076 = vperm.xlu1 %8089, %v9274_v45   ;;  %v9567_v20 = vpop.permute.xlu1 %1548  ;;  %v9569_v15 = vpop.permute.xlu0 %1048 }
 0x3a0   :  { %12446 = vst [vmem:[#allocation77_spill] sm:$0xff] %v9567_v20  ;;  %12447 = vst [vmem:[#allocation78_spill] sm:$0xff] %v9569_v15 }
 0x3a3   :  { %3084 = vperm.xlu1 %8089, %v9280_v47   ;;  %v9571_v45 = vpop.permute.xlu1 %1556  ;;  %v9573_v59 = vpop.permute.xlu0 %1524 }
 0x3a4   :  { %12448 = vst [vmem:[#allocation79_spill] sm:$0xff] %v9571_v45  ;;  %12449 = vst [vmem:[#allocation80_spill] sm:$0xff] %v9573_v59 }
 0x3a7   :  { %3092 = vperm.xlu1 %8089, %v9286_v49   ;;  %v9575_v47 = vpop.permute.xlu1 %1564 }
 0x3a8   :  { %12450 = vst [vmem:[#allocation81_spill] sm:$0xff] %v9575_v47 }
 0x3f0   :  { %v638_v5 = vpop.f32.mrb[4].mxu0 }
 0x3f1   :  { %v6761_v42 = vpop.f32.mrb[5].mxu0  ;;  %6795 = vmatmul.mubr.f32.vlgmr.msra.gmra.mrb[6].mxu0 %v638_v5  ;;  %v9577_v5 = vpop.permute.xlu0 %1536 }
 0x3f2   :  { %12451 = vst [vmem:[#allocation82_spill] sm:$0xff] %v9577_v5  ;;  %v9579_v42 = vpop.permute.xlu1 %1572 }
 0x3f3   :  { %12452 = vst [vmem:[#allocation83_spill] sm:$0xff] %v9579_v42 }
 0x3f5   :  { %v9581_v49 = vpop.permute.xlu0 %1544 }
 0x3f6   :  { %12453 = vst [vmem:[#allocation84_spill] sm:$0xff] %v9581_v49  ;;  %v9583_v1 = vpop.permute.xlu1 %1580 }
 0x3f7   :  { %12454 = vst [vmem:[#allocation85_spill] sm:$0xff] %v9583_v1 }
 0x3f9   :  { %v9585_v0 = vpop.permute.xlu0 %1552 }
 0x3fa   :  { %12455 = vst [vmem:[#allocation86_spill] sm:$0xff] %v9585_v0  ;;  %v9587_v48 = vpop.permute.xlu1 %1790 }
 0x3fb   :  { %12456 = vst [vmem:[#allocation87_spill] sm:$0xff] %v9587_v48 }
 0x3fd   :  { %v9589_v20 = vpop.permute.xlu0 %1560 }
 0x3fe   :  { %12457 = vst [vmem:[#allocation88_spill] sm:$0xff] %v9589_v20  ;;  %v9591_v46 = vpop.permute.xlu1 %1794 }
 0x3ff   :  { %12458 = vst [vmem:[#allocation89_spill] sm:$0xff] %v9591_v46 }
 0x401   :  { %v9593_v45 = vpop.permute.xlu0 %1568 }
 0x402   :  { %12459 = vst [vmem:[#allocation90_spill] sm:$0xff] %v9593_v45  ;;  %v9595_v39 = vpop.permute.xlu1 %1802 }
 0x403   :  { %12460 = vst [vmem:[#allocation91_spill] sm:$0xff] %v9595_v39  ;;  %v8090_v39 = vld [vmem:[#allocation13 + $0x40] sm:$0xff]  }
 0x404   :  { %6797 = vmatprep.subr.bf16.mxu0 %v8090_v39 }
 0x405   :  { %v9597_v47 = vpop.permute.xlu0 %1576  ;;  %6798 = vmatpush3.bf16.msra.mxu0 %v8090_v39 }
 0x406   :  { %12461 = vst [vmem:[#allocation92_spill] sm:$0xff] %v9597_v47  ;;  %v9599_v5 = vpop.permute.xlu1 %1810 }
 0x407   :  { %12462 = vst [vmem:[#allocation93_spill] sm:$0xff] %v9599_v5 }
 0x409   :  { %v9601_v42 = vpop.permute.xlu0 %1786 }
 0x40a   :  { %12463 = vst [vmem:[#allocation94_spill] sm:$0xff] %v9601_v42  ;;  %v9603_v49 = vpop.permute.xlu1 %1818 }
 0x40b   :  { %12464 = vst [vmem:[#allocation95_spill] sm:$0xff] %v9603_v49 }
 0x40d   :  { %v9605_v59 = vpop.permute.xlu0 %1798 }
 0x40e   :  { %12465 = vst [vmem:[#allocation96_spill] sm:$0xff] %v9605_v59  ;;  %v9607_v0 = vpop.permute.xlu1 %1826 }
 0x40f   :  { %12466 = vst [vmem:[#allocation97_spill] sm:$0xff] %v9607_v0 }
 0x411   :  { %v9609_v37 = vpop.permute.xlu0 %1806 }
 0x412   :  { %12467 = vst [vmem:[#allocation98_spill] sm:$0xff] %v9609_v37  ;;  %v9611_v20 = vpop.permute.xlu1 %1834 }
 0x413   :  { %12468 = vst [vmem:[#allocation99_spill] sm:$0xff] %v9611_v20 }
 0x415   :  { %v9613_v15 = vpop.permute.xlu0 %1814 }
 0x416   :  { %12469 = vst [vmem:[#allocation100_spill] sm:$0xff] %v9613_v15  ;;  %v9615_v45 = vpop.permute.xlu1 %1842 }
 0x417   :  { %12470 = vst [vmem:[#allocation101_spill] sm:$0xff] %v9615_v45 }
 0x419   :  { %v9617_v40 = vpop.permute.xlu0 %1822 }
 0x41a   :  { %12471 = vst [vmem:[#allocation102_spill] sm:$0xff] %v9617_v40  ;;  %v9619_v43 = vpop.permute.xlu1 %2238 }
 0x41b   :  { %12472 = vst [vmem:[#allocation103_spill] sm:$0xff] %v9619_v43 }
 0x41d   :  { %v9621_v26 = vpop.permute.xlu0 %1830 }
 0x41e   :  { %12473 = vst [vmem:[#allocation104_spill] sm:$0xff] %v9621_v26  ;;  %v9623_v41 = vpop.permute.xlu1 %2246 }
 0x41f   :  { %12474 = vst [vmem:[#allocation105_spill] sm:$0xff] %v9623_v41 }
 0x421   :  { %v9625_v14 = vpop.permute.xlu0 %1838 }
 0x422   :  { %12475 = vst [vmem:[#allocation106_spill] sm:$0xff] %v9625_v14  ;;  %v9627_v49 = vpop.permute.xlu1 %2250 }
 0x423   :  { %12476 = vst [vmem:[#allocation107_spill] sm:$0xff] %v9627_v49 }
 0x425   :  { %v9629_v0 = vpop.permute.xlu0 %1846 }
 0x426   :  { %12477 = vst [vmem:[#allocation108_spill] sm:$0xff] %v9629_v0  ;;  %v9631_v5 = vpop.permute.xlu1 %2258 }
 0x427   :  { %12478 = vst [vmem:[#allocation109_spill] sm:$0xff] %v9631_v5  ;;  %v8091_v5 = vld [vmem:[#allocation13 + $0x48] sm:$0xff]  }
 0x428   :  { %6799 = vmatprep.subr.bf16.mxu0 %v8091_v5 }
 0x429   :  { %v9633_v20 = vpop.permute.xlu0 %2242  ;;  %6800 = vmatpush3.bf16.msra.mxu0 %v8091_v5  ;;  %v8096_v5 = vld [vmem:[#allocation13 + $0x70] sm:$0xff]  }
 0x42a   :  { %12479 = vst [vmem:[#allocation110_spill] sm:$0xff] %v9633_v20  ;;  %v9635_v15 = vpop.permute.xlu1 %2266 }
 0x42b   :  { %12480 = vst [vmem:[#allocation111_spill] sm:$0xff] %v9635_v15 }
 0x42d   :  { %v9637_v45 = vpop.permute.xlu0 %2254 }
 0x42e   :  { %12481 = vst [vmem:[#allocation112_spill] sm:$0xff] %v9637_v45  ;;  %v9639_v40 = vpop.permute.xlu1 %2274  ;;  %v8092_v45 = vld [vmem:[#allocation13 + $0x50] sm:$0xff]  }
 0x42f   :  { %12482 = vst [vmem:[#allocation113_spill] sm:$0xff] %v9639_v40  ;;  %6801 = vmatprep.subr.bf16.mxu0 %v8092_v45  ;;  %v8093_v40 = vld [vmem:[#allocation13 + $0x58] sm:$0xff]  }
 0x430   :  { %6802 = vmatpush3.bf16.msra.mxu0 %v8092_v45 }
 0x431   :  { %v9641_v37 = vpop.permute.xlu0 %2262  ;;  %6803 = vmatprep.subr.bf16.mxu0 %v8093_v40 }
 0x432   :  { %12483 = vst [vmem:[#allocation114_spill] sm:$0xff] %v9641_v37  ;;  %v9643_v26 = vpop.permute.xlu1 %2282 }
 0x433   :  { %12484 = vst [vmem:[#allocation115_spill] sm:$0xff] %v9643_v26 }
 0x434   :  { %6804 = vmatpush3.bf16.msra.mxu0 %v8093_v40 }
 0x435   :  { %v9645_v14 = vpop.permute.xlu0 %2270 }
 0x436   :  { %12485 = vst [vmem:[#allocation116_spill] sm:$0xff] %v9645_v14  ;;  %v9647_v46 = vpop.permute.xlu1 %2290 }
 0x437   :  { %12486 = vst [vmem:[#allocation117_spill] sm:$0xff] %v9647_v46  ;;  %v8094_v46 = vld [vmem:[#allocation13 + $0x60] sm:$0xff]  }
 0x438   :  { %6805 = vmatprep.subr.bf16.mxu0 %v8094_v46 }
 0x439   :  { %v9649_v20 = vpop.permute.xlu0 %2278  ;;  %6806 = vmatpush3.bf16.msra.mxu0 %v8094_v46 }
 0x43a   :  { %12487 = vst [vmem:[#allocation118_spill] sm:$0xff] %v9649_v20  ;;  %v9651_v15 = vpop.permute.xlu1 %2298  ;;  %v8095_v20 = vld [vmem:[#allocation13 + $0x68] sm:$0xff]  }
 0x43b   :  { %12488 = vst [vmem:[#allocation119_spill] sm:$0xff] %v9651_v15  ;;  %6807 = vmatprep.subr.bf16.mxu0 %v8095_v20 }
 0x43d   :  { %v9653_v37 = vpop.permute.xlu0 %2286  ;;  %6808 = vmatpush3.bf16.msra.mxu0 %v8095_v20 }
 0x43e   :  { %12489 = vst [vmem:[#allocation120_spill] sm:$0xff] %v9653_v37  ;;  %v9655_v26 = vpop.permute.xlu1 %2508  ;;  %6809 = vmatprep.subr.bf16.mxu0 %v8096_v5 }
 0x43f   :  { %12490 = vst [vmem:[#allocation121_spill] sm:$0xff] %v9655_v26  ;;  %v8097_v26 = vld [vmem:[#allocation13 + $0x78] sm:$0xff]  }
 0x441   :  { %v9657_v39 = vpop.permute.xlu0 %2294  ;;  %6810 = vmatpush3.bf16.msra.mxu0 %v8096_v5 }
 0x442   :  { %12491 = vst [vmem:[#allocation122_spill] sm:$0xff] %v9657_v39  ;;  %v9659_v14 = vpop.permute.xlu1 %2512  ;;  %6811 = vmatprep.subr.bf16.mxu0 %v8097_v26  ;;  %v9669_v39 = vld [vmem:[#allocation13] sm:$0xff]  }
 0x443   :  { %12492 = vst [vmem:[#allocation123_spill] sm:$0xff] %v9659_v14 }
 0x445   :  { %v9661_v0 = vpop.permute.xlu0 %2504  ;;  %6812 = vmatpush3.bf16.msra.mxu0 %v8097_v26 }
 0x446   :  { %12493 = vst [vmem:[#allocation124_spill] sm:$0xff] %v9661_v0  ;;  %v9663_v45 = vpop.permute.xlu1 %2520  ;;  %6829 = vmatprep.subr.bf16.mxu0 %v9669_v39 }
 0x447   :  { %12494 = vst [vmem:[#allocation125_spill] sm:$0xff] %v9663_v45 }
 0x449   :  { %v9665_v37 = vpop.permute.xlu0 %2516 }
 0x44a   :  { %12495 = vst [vmem:[#allocation126_spill] sm:$0xff] %v9665_v37  ;;  %v9667_v40 = vpop.permute.xlu1 %2528 }
 0x44b   :  { %12496 = vst [vmem:[#allocation127_spill] sm:$0xff] %v9667_v40 }
 0x44d   :  { %v9672_v46 = vpop.permute.xlu0 %2524 }
 0x44e   :  { %12497 = vst [vmem:[#allocation128_spill] sm:$0xff] %v9672_v46  ;;  %v9674_v20 = vpop.permute.xlu1 %2536 }
 0x44f   :  { %12498 = vst [vmem:[#allocation129_spill] sm:$0xff] %v9674_v20 }
 0x451   :  { %v9676_v0 = vpop.permute.xlu0 %2532 }
 0x452   :  { %12499 = vst [vmem:[#allocation130_spill] sm:$0xff] %v9676_v0  ;;  %v9678_v45 = vpop.permute.xlu1 %2544 }
 0x453   :  { %12500 = vst [vmem:[#allocation131_spill] sm:$0xff] %v9678_v45 }
 0x455   :  { %v9680_v5 = vpop.permute.xlu0 %2540 }
 0x456   :  { %12501 = vst [vmem:[#allocation132_spill] sm:$0xff] %v9680_v5  ;;  %v9682_v48 = vpop.permute.xlu1 %2552 }
 0x457   :  { %12502 = vst [vmem:[#allocation133_spill] sm:$0xff] %v9682_v48 }
 0x459   :  { %v9684_v42 = vpop.permute.xlu0 %2548 }
 0x45a   :  { %12503 = vst [vmem:[#allocation134_spill] sm:$0xff] %v9684_v42  ;;  %v9686_v40 = vpop.permute.xlu1 %2560 }
 0x45b   :  { %12504 = vst [vmem:[#allocation135_spill] sm:$0xff] %v9686_v40 }
 0x45d   :  { %v9688_v26 = vpop.permute.xlu0 %2556 }
 0x45e   :  { %12505 = vst [vmem:[#allocation136_spill] sm:$0xff] %v9688_v26  ;;  %v9690_v1 = vpop.permute.xlu1 %2770 }
 0x45f   :  { %12506 = vst [vmem:[#allocation137_spill] sm:$0xff] %v9690_v1 }
 0x461   :  { %v9692_v47 = vpop.permute.xlu0 %2564 }
 0x462   :  { %12507 = vst [vmem:[#allocation138_spill] sm:$0xff] %v9692_v47  ;;  %v9694_v46 = vpop.permute.xlu1 %2778 }
 0x463   :  { %12508 = vst [vmem:[#allocation139_spill] sm:$0xff] %v9694_v46 }
 0x465   :  { %v9696_v45 = vpop.permute.xlu0 %2774 }
 0x466   :  { %12509 = vst [vmem:[#allocation140_spill] sm:$0xff] %v9696_v45  ;;  %v9698_v5 = vpop.permute.xlu1 %2782 }
 0x467   :  { %12510 = vst [vmem:[#allocation141_spill] sm:$0xff] %v9698_v5 }
 0x469   :  { %v9700_v48 = vpop.permute.xlu0 %2786 }
 0x46a   :  { %12511 = vst [vmem:[#allocation142_spill] sm:$0xff] %v9700_v48  ;;  %v9702_v42 = vpop.permute.xlu1 %2790 }
 0x46b   :  { %12512 = vst [vmem:[#allocation143_spill] sm:$0xff] %v9702_v42 }
 0x46d   :  { %v9705_v44 = vpop.permute.xlu0 %2794 }
 0x46e   :  { %12513 = vst [vmem:[#allocation144_spill] sm:$0xff] %v9705_v44  ;;  %v9707_v47 = vpop.permute.xlu1 %2798 }
 0x46f   :  { %12514 = vst [vmem:[#allocation145_spill] sm:$0xff] %v9707_v47 }
 0x4c4   :  { %v708_v20 = vpop.f32.mrb[6].mxu0 }
 0x4c5   :  { %v709_v0 = vadd.f32 1e-06, %v708_v20  ;;  %v6796_v3 = vpop.f32.mrb[7].mxu0 }
 0x4c7   :  { %8242 = vrsqrt.f32 %v709_v0  ;;  %v9714_v0 = vld [vmem:[#allocation10] ss:$0 sm:$0xff] }
 0x4d1   :  { %v8243_v40 = vpop.eup %8242 }
 0x4d2   :  { %v720_v26 = vrot.slane %v8243_v40, %v9317_v57 }
 0x4d4   :  { %v721_v12 = vcombine.high %v720_v26, %v720_v26  ;;  %v728_v20 = vrot.slane %v720_v26, %v9317_v57  ;;  %v9725_v26 = vpop.permute.xlu0 %2802 }
 0x4d5   :  { %12515 = vst [vmem:[#allocation146_spill] sm:$0xff] %v9725_v26 }
 0x4d6   :  { %v735_v3 = vrot.slane %v721_v12, %v9317_v57  ;;  %v9712_v61 = vrot.slane %v728_v20, %v9323_v60  ;;  %v9727_v12 = vpop.permute.xlu1 %2806  ;;  %v9729_v20 = vld [vmem:[#allocation11] ss:$0 sm:$0xff] }
 0x4d7   :  { %12516 = vst [vmem:[#allocation147_spill] sm:$0xff] %v9727_v12 }
 0x4d8   :  { %v9717_v37 = vrot.slane %v735_v3, %v9323_v60  ;;  %v747_v40 = vmul.f32 %v9712_v61, %v9334_v10  ;;  %v748_v14 = vmul.f32 %v9712_v61, %v9342_v19  ;;  %v749_v59 = vmul.f32 %v9712_v61, %v9351_v31 }
 0x4d9   :  { %v750_v57 = vmul.f32 %v9712_v61, %v9359_v51  ;;  %v751_v3 = vmul.f32 %v9712_v61, %v9368_v62  ;;  %v752_v10 = vmul.f32 %v9712_v61, %v9377_v21  ;;  %v753_v19 = vmul.f32 %v9712_v61, %v9386_v52 }
 0x4da   :  { %v770_v31 = vmul.f32 %v9714_v0, %v747_v40  ;;  %v771_v60 = vmul.f32 %v9714_v0, %v748_v14  ;;  %v772_v38 = vmul.f32 %v9714_v0, %v749_v59  ;;  %v754_v28 = vmul.f32 %v9717_v37, %v9337_v13 }
 0x4db   :  { %v773_v51 = vmul.f32 %v9714_v0, %v750_v57  ;;  %v774_v15 = vmul.f32 %v9714_v0, %v751_v3  ;;  %v775_v62 = vmul.f32 %v9714_v0, %v752_v10  ;;  %v776_v21 = vmul.f32 %v9714_v0, %v753_v19  ;;  %v9776_v19 = vpop.permute.xlu0 %2810 }
 0x4dc   :  { %v9749_v9 = vadd.f32 %v9729_v20, %v770_v31  ;;  %v9752_v52 = vadd.f32 %v9729_v20, %v771_v60  ;;  %v9755_v14 = vadd.f32 %v9729_v20, %v772_v38  ;;  %v777_v59 = vmul.f32 %v9714_v0, %v754_v28  ;;  %12517 = vst [vmem:[#allocation148_spill] sm:$0xff] %v9776_v19  ;;  %v9778_v31 = vpop.permute.xlu1 %2814 }
 0x4dd   :  { %v9759_v13 = vadd.f32 %v9729_v20, %v773_v51  ;;  %v9762_v57 = vadd.f32 %v9729_v20, %v774_v15  ;;  %v9765_v40 = vadd.f32 %v9729_v20, %v775_v62  ;;  %v9768_v3 = vadd.f32 %v9729_v20, %v776_v21  ;;  %12518 = vst [vmem:[#allocation149_spill] sm:$0xff] %v9778_v31 }
 0x4de   :  { %v809_v60 = vsub.f32 0.0, %v9749_v9  ;;  %v810_v10 = vsub.f32 0.0, %v9752_v52  ;;  %v811_v38 = vsub.f32 0.0, %v9755_v14  ;;  %v9774_v28 = vadd.f32 %v9729_v20, %v777_v59 }
 0x4df   :  { %v812_v15 = vsub.f32 0.0, %v9759_v13  ;;  %v813_v51 = vsub.f32 0.0, %v9762_v57  ;;  %v814_v62 = vsub.f32 0.0, %v9765_v40  ;;  %v815_v21 = vsub.f32 0.0, %v9768_v3 }
 0x4e0   :  { %v826_v50 = vmul.f32 1.442695, %v809_v60  ;;  %v828_v36 = vmul.f32 1.442695, %v810_v10  ;;  %v830_v6 = vmul.f32 1.442695, %v811_v38  ;;  %v755_v43 = vmul.f32 %v9717_v37, %v9339_v16 }
 0x4e1   :  { %v832_v59 = vmul.f32 1.442695, %v812_v15  ;;  %v834_v29 = vmul.f32 1.442695, %v813_v51  ;;  %v836_v63 = vmul.f32 1.442695, %v814_v62  ;;  %v756_v18 = vmul.f32 %v9717_v37, %v9344_v22  ;;  %v9798_v22 = vpop.permute.xlu0 %2818 }
 0x4e2   :  { %8244 = vpow2.f32 %v826_v50  ;;  %v838_v58 = vmul.f32 1.442695, %v815_v21  ;;  %v816_v7 = vsub.f32 0.0, %v9774_v28  ;;  %v778_v4 = vmul.f32 %v9714_v0, %v755_v43  ;;  %12519 = vst [vmem:[#allocation150_spill] sm:$0xff] %v9798_v22  ;;  %v9802_v43 = vpop.permute.xlu1 %2822 }
 0x4e3   :  { %8246 = vpow2.f32 %v828_v36  ;;  %v779_v60 = vmul.f32 %v9714_v0, %v756_v18  ;;  %v757_v10 = vmul.f32 %v9717_v37, %v9353_v35  ;;  %v758_v16 = vmul.f32 %v9717_v37, %v9361_v53  ;;  %12520 = vst [vmem:[#allocation151_spill] sm:$0xff] %v9802_v43 }
 0x4e4   :  { %8248 = vpow2.f32 %v830_v6  ;;  %v840_v38 = vmul.f32 1.442695, %v816_v7  ;;  %v9796_v15 = vadd.f32 %v9729_v20, %v778_v4  ;;  %v759_v50 = vmul.f32 %v9717_v37, %v9370_v2 }
 0x4e5   :  { %8250 = vpow2.f32 %v832_v59  ;;  %v9805_v18 = vadd.f32 %v9729_v20, %v779_v60  ;;  %v780_v35 = vmul.f32 %v9714_v0, %v757_v10  ;;  %v781_v53 = vmul.f32 %v9714_v0, %v758_v16  ;;  %v9822_v59 = vpop.permute.xlu0 %2826 }
 0x4e6   :  { %8252 = vpow2.f32 %v834_v29  ;;  %v817_v36 = vsub.f32 0.0, %v9796_v15  ;;  %v782_v51 = vmul.f32 %v9714_v0, %v759_v50  ;;  %v760_v62 = vmul.f32 %v9717_v37, %v9379_v25  ;;  %12521 = vst [vmem:[#allocation152_spill] sm:$0xff] %v9822_v59  ;;  %v9826_v10 = vpop.permute.xlu1 %2830 }
 0x4e7   :  { %8254 = vpow2.f32 %v836_v63  ;;  %v818_v4 = vsub.f32 0.0, %v9805_v18  ;;  %v9812_v7 = vadd.f32 %v9729_v20, %v780_v35  ;;  %v9815_v2 = vadd.f32 %v9729_v20, %v781_v53  ;;  %12522 = vst [vmem:[#allocation153_spill] sm:$0xff] %v9826_v10 }
 0x4e8   :  { %8256 = vpow2.f32 %v838_v58  ;;  %v842_v6 = vmul.f32 1.442695, %v817_v36  ;;  %v761_v60 = vmul.f32 %v9717_v37, %v9388_v55  ;;  %v746_v25 = vmul.f32 %v9712_v61, %v9332_v8 }
 0x4e9   :  { %8258 = vpow2.f32 %v840_v38  ;;  %v844_v29 = vmul.f32 1.442695, %v818_v4  ;;  %v819_v21 = vsub.f32 0.0, %v9812_v7  ;;  %v820_v63 = vsub.f32 0.0, %v9815_v2 }
 0x4ea   :  { %8260 = vpow2.f32 %v842_v6  ;;  %v783_v50 = vmul.f32 %v9714_v0, %v760_v62  ;;  %v9832_v36 = vadd.f32 %v9729_v20, %v782_v51  ;;  %v784_v4 = vmul.f32 %v9714_v0, %v761_v60  ;;  %v9841_v51 = vpop.permute.xlu1 %3040 }
 0x4eb   :  { %8262 = vpow2.f32 %v844_v29  ;;  %v846_v58 = vmul.f32 1.442695, %v819_v21  ;;  %v848_v16 = vmul.f32 1.442695, %v820_v63  ;;  %v769_v6 = vmul.f32 %v9714_v0, %v746_v25  ;;  %v9839_v63 = vpop.permute.xlu0 %3036  ;;  %12524 = vst [vmem:[#allocation155_spill] sm:$0xff] %v9841_v51 }
 0x4ec   :  { %v8245_v38 = vpop.eup %8244  ;;  %v9837_v62 = vadd.f32 %v9729_v20, %v783_v50  ;;  %12523 = vst [vmem:[#allocation154_spill] sm:$0xff] %v9839_v63  ;;  %v9845_v0 = vadd.f32 %v9729_v20, %v784_v4 }
 0x4ed   :  { %v8247_v35 = vpop.eup %8246  ;;  %v857_v53 = vadd.f32 1.0, %v8245_v38  ;;  %8264 = vpow2.f32 %v846_v58 }
 0x4ee   :  { %v8249_v55 = vpop.eup %8248  ;;  %v858_v37 = vadd.f32 1.0, %v8247_v35  ;;  %8266 = vpow2.f32 %v848_v16  ;;  %v821_v16 = vsub.f32 0.0, %v9832_v36  ;;  %v9848_v35 = vadd.f32 %v9729_v20, %v769_v6  ;;  %v9855_v6 = vpop.permute.xlu1 %3044 }
 0x4ef   :  { %v8251_v29 = vpop.eup %8250  ;;  %8268 = vrcp.f32 %v857_v53  ;;  %v859_v21 = vadd.f32 1.0, %v8249_v55  ;;  %v823_v4 = vsub.f32 0.0, %v9845_v0  ;;  %v9853_v20 = vpop.permute.xlu0 %3048  ;;  %12526 = vst [vmem:[#allocation157_spill] sm:$0xff] %v9855_v6 }
 0x4f0   :  { %v8253_v8 = vpop.eup %8252  ;;  %8270 = vrcp.f32 %v858_v37  ;;  %v860_v61 = vadd.f32 1.0, %v8251_v29  ;;  %v822_v29 = vsub.f32 0.0, %v9837_v62  ;;  %v850_v54 = vmul.f32 1.442695, %v821_v16  ;;  %12525 = vst [vmem:[#allocation156_spill] sm:$0xff] %v9853_v20 }
 0x4f1   :  { %v8255_v58 = vpop.eup %8254  ;;  %8272 = vrcp.f32 %v859_v21  ;;  %v861_v60 = vadd.f32 1.0, %v8253_v8  ;;  %v854_v16 = vmul.f32 1.442695, %v823_v4 }
 0x4f2   :  { %v8257_v25 = vpop.eup %8256  ;;  %8274 = vrcp.f32 %v860_v61  ;;  %v862_v38 = vadd.f32 1.0, %v8255_v58  ;;  %v808_v58 = vsub.f32 0.0, %v9848_v35  ;;  %v9874_v4 = vpop.permute.xlu1 %3052 }
 0x4f3   :  { %v8259_v50 = vpop.eup %8258  ;;  %8276 = vrcp.f32 %v861_v60  ;;  %v863_v53 = vadd.f32 1.0, %v8257_v25  ;;  %12529 = vst [vmem:[#allocation160_spill] sm:$0xff] %v9874_v4 }
 0x4f4   :  { %v8261_v55 = vpop.eup %8260  ;;  %8278 = vrcp.f32 %v862_v38  ;;  %v864_v37 = vadd.f32 1.0, %v8259_v50  ;;  %v852_v50 = vmul.f32 1.442695, %v822_v29 }
 0x4f5   :  { %v8263_v21 = vpop.eup %8262  ;;  %8280 = vrcp.f32 %v863_v53  ;;  %v865_v8 = vadd.f32 1.0, %v8261_v55 }
 0x4f6   :  { %8282 = vrcp.f32 %v864_v37  ;;  %v866_v61 = vadd.f32 1.0, %v8263_v21  ;;  %v824_v21 = vmul.f32 1.442695, %v808_v58 }
 0x4f7   :  { %v8265_v60 = vpop.eup %8264  ;;  %8284 = vrcp.f32 %v865_v8 }
 0x4f8   :  { %v8267_v25 = vpop.eup %8266  ;;  %8286 = vrcp.f32 %v866_v61  ;;  %v867_v38 = vadd.f32 1.0, %v8265_v60 }
 0x4f9   :  { %v8269_v33 = vpop.eup %8268  ;;  %v868_v53 = vadd.f32 1.0, %v8267_v25  ;;  %8288 = vpow2.f32 %v850_v54 }
 0x4fa   :  { %v8271_v55 = vpop.eup %8270  ;;  %v9858_v37 = vmul.f32 %v8269_v33, %v9749_v9  ;;  %8290 = vrcp.f32 %v867_v38  ;;  %v9872_v9 = vpop.permute.xlu0 %3056 }
 0x4fb   :  { %v8273_v30 = vpop.eup %8272  ;;  %v9862_v32 = vmul.f32 %v8271_v55, %v9752_v52  ;;  %8292 = vrcp.f32 %v868_v53  ;;  %12528 = vst [vmem:[#allocation159_spill] sm:$0xff] %v9872_v9 }
 0x4fc   :  { %v8275_v8 = vpop.eup %8274  ;;  %v9866_v29 = vmul.f32 %v9690_v1, %v9858_v37  ;;  %v9869_v54 = vmul.f32 %v8273_v30, %v9755_v14  ;;  %8294 = vpow2.f32 %v852_v50  ;;  %v12209_v33 = vrot.slane %v9858_v37, 1 }
 0x4fd   :  { %v8277_v61 = vpop.eup %8276  ;;  %v9878_v52 = vmul.f32 %v9696_v45, %v9862_v32  ;;  %v9881_v58 = vmul.f32 %v8275_v8, %v9759_v13  ;;  %8296 = vpow2.f32 %v854_v16  ;;  %v1488_v60 = vrot.slane %v9862_v32, 1 }
 0x4fe   :  { %12527 = vst [vmem:[#allocation158_spill] sm:$0xff] %v9866_v29  ;;  %v8279_v30 = vpop.eup %8278  ;;  %v9886_v14 = vmul.f32 %v9694_v46, %v9869_v54  ;;  %v9889_v25 = vmul.f32 %v8277_v61, %v9762_v57  ;;  %8298 = vpow2.f32 %v824_v21  ;;  %v1489_v38 = vrot.slane %v9869_v54, 1 }
 0x4ff   :  { %12530 = vst [vmem:[#allocation161_spill] sm:$0xff] %v9878_v52  ;;  %12531 = vst [vmem:[#allocation162_spill] sm:$0xff] %v9881_v58  ;;  %v8281_v50 = vpop.eup %8280  ;;  %v9896_v13 = vmul.f32 %v9698_v5, %v9881_v58  ;;  %v9899_v16 = vmul.f32 %v8279_v30, %v9765_v40  ;;  %v9905_v57 = vsel %vm1502_vm2, %v12209_v33, %v1488_v60  ;;  %v9938_v30 = vpop.permute.xlu0 %3064 }
 0x500   :  { %12532 = vst [vmem:[#allocation163_spill] sm:$0xff] %v9886_v14  ;;  %12533 = vst [vmem:[#allocation164_spill] sm:$0xff] %v9889_v25  ;;  %v8283_v55 = vpop.eup %8282  ;;  %v9909_v21 = vmul.f32 %v9700_v48, %v9889_v25  ;;  %v9912_v8 = vmul.f32 %v8281_v50, %v9768_v3  ;;  %v9916_v61 = vmul.f32 %v9839_v63, %v9905_v57  ;;  %v9940_v5 = vpop.permute.xlu1 %3060 }
 0x501   :  { %12534 = vst [vmem:[#allocation165_spill] sm:$0xff] %v9896_v13  ;;  %12535 = vst [vmem:[#allocation166_spill] sm:$0xff] %v9899_v16  ;;  %v8285_v40 = vpop.eup %8284  ;;  %v9922_v53 = vmul.f32 %v9702_v42, %v9899_v16  ;;  %v9925_v33 = vmul.f32 %v8283_v55, %v9774_v28  ;;  %v9929_v48 = vsel %vm1502_vm2, %v1488_v60, %v1489_v38 }
 0x502   :  { %12536 = vst [vmem:[#allocation167_spill] sm:$0xff] %v9909_v21  ;;  %12537 = vst [vmem:[#allocation168_spill] sm:$0xff] %v9916_v61  ;;  %v8287_v3 = vpop.eup %8286  ;;  %v9933_v50 = vmul.f32 %v9705_v44, %v9912_v8  ;;  %v9936_v63 = vmul.f32 %v8285_v40, %v9796_v15  ;;  %v9953_v44 = vmul.f32 %v9841_v51, %v9929_v48  ;;  %v12601_v21 = vld [vmem:[#allocation61_spill] sm:$0xff]  ;;  %v927_v13 = vrot.slane %v9912_v8, 7 }
 0x503   :  { %12538 = vst [vmem:[#allocation169_spill] sm:$0xff] %v9922_v53  ;;  %12539 = vst [vmem:[#allocation170_spill] sm:$0xff] %v9925_v33  ;;  %v8289_v42 = vpop.eup %8288  ;;  %v9946_v60 = vmul.f32 %v9707_v47, %v9925_v33  ;;  %v9949_v55 = vmul.f32 %v8287_v3, %v9805_v18  ;;  %v9961_v28 = vmul.f32 %v9623_v41, %v9929_v48  ;;  %v1490_v47 = vrot.slane %v9881_v58, 1 }
 0x504   :  { %12540 = vst [vmem:[#allocation171_spill] sm:$0xff] %v9929_v48  ;;  %12541 = vst [vmem:[#allocation172_spill] sm:$0xff] %v9933_v50  ;;  %v8291_v15 = vpop.eup %8290  ;;  %v9957_v40 = vmul.f32 %v9725_v26, %v9936_v63  ;;  %v869_v46 = vadd.f32 1.0, %v8289_v42  ;;  %v1491_v41 = vrot.slane %v9889_v25, 1  ;;  %v929_v48 = vrot.slane %v9936_v63, 7 }
 0x505   :  { %12542 = vst [vmem:[#allocation173_spill] sm:$0xff] %v9936_v63  ;;  %12543 = vst [vmem:[#allocation174_spill] sm:$0xff] %v9938_v30  ;;  %v8293_v45 = vpop.eup %8292  ;;  %v9968_v3 = vmul.f32 %v9727_v12, %v9949_v55  ;;  %v9971_v51 = vmul.f32 %v8291_v15, %v9812_v7  ;;  %v9981_v18 = vsel %vm1502_vm2, %v1489_v38, %v1490_v47 }
 0x506   :  { %12544 = vst [vmem:[#allocation175_spill] sm:$0xff] %v9940_v5  ;;  %12545 = vst [vmem:[#allocation176_spill] sm:$0xff] %v9946_v60  ;;  %v8295_v26 = vpop.eup %8294  ;;  %v9976_v1 = vmul.f32 %v8293_v45, %v9815_v2  ;;  %8300 = vrcp.f32 %v869_v46  ;;  %v9991_v45 = vmul.f32 %v9627_v49, %v9981_v18  ;;  %v9999_v42 = vsel %vm1502_vm2, %v1490_v47, %v1491_v41 }
 0x507   :  { %12546 = vst [vmem:[#allocation177_spill] sm:$0xff] %v9949_v55  ;;  %12547 = vst [vmem:[#allocation178_spill] sm:$0xff] %v9953_v44  ;;  %v8297_v50 = vpop.eup %8296  ;;  %v9987_v7 = vmul.f32 %v9776_v19, %v9971_v51  ;;  %v870_v15 = vadd.f32 1.0, %v8295_v26  ;;  %v10003_v12 = vmul.f32 %v9855_v6, %v9981_v18  ;;  %v10005_v19 = vpop.permute.xlu0 %3072  ;;  %v10011_v61 = vmul.f32 %v9853_v20, %v9999_v42 }
 0x508   :  { %12548 = vst [vmem:[#allocation179_spill] sm:$0xff] %v9957_v40  ;;  %12549 = vst [vmem:[#allocation180_spill] sm:$0xff] %v9961_v28  ;;  %v8299_v46 = vpop.eup %8298  ;;  %v9995_v2 = vmul.f32 %v9778_v31, %v9976_v1  ;;  %v871_v38 = vadd.f32 1.0, %v8297_v50  ;;  %v10007_v26 = vpop.permute.xlu1 %3068  ;;  %v1492_v31 = vrot.slane %v9899_v16, 1  ;;  %v1493_v6 = vrot.slane %v9912_v8, 1  ;;  %v12612_v28 = vld [vmem:[#allocation58_spill] sm:$0xff] }
 0x509   :  { %12550 = vst [vmem:[#allocation181_spill] sm:$0xff] %v9968_v3  ;;  %12551 = vst [vmem:[#allocation182_spill] sm:$0xff] %v9971_v51  ;;  %8302 = vrcp.f32 %v870_v15  ;;  %v856_v49 = vadd.f32 1.0, %v8299_v46  ;;  %v1494_v46 = vrot.slane %v9925_v33, 1  ;;  %v1495_v20 = vrot.slane %v9936_v63, 1 }
 0x50a   :  { %12552 = vst [vmem:[#allocation183_spill] sm:$0xff] %v9976_v1  ;;  %12553 = vst [vmem:[#allocation184_spill] sm:$0xff] %v9981_v18  ;;  %8304 = vrcp.f32 %v871_v38  ;;  %v10025_v44 = vsel %vm1502_vm2, %v1492_v31, %v1493_v6  ;;  %v10029_v47 = vsel %vm1502_vm2, %v1491_v41, %v1492_v31  ;;  %v1496_v38 = vrot.slane %v9949_v55, 1 }
 0x50b   :  { %12554 = vst [vmem:[#allocation185_spill] sm:$0xff] %v9987_v7  ;;  %12555 = vst [vmem:[#allocation186_spill] sm:$0xff] %v9991_v45  ;;  %8306 = vrcp.f32 %v856_v49  ;;  %v1497_v50 = vrot.slane %v9971_v51, 1  ;;  %v10035_v49 = vmul.f32 %v9872_v9, %v10025_v44  ;;  %v10039_v15 = vmul.f32 %v9874_v4, %v10029_v47  ;;  %v10065_v7 = vpop.permute.xlu0 %3080 }
 0x50c   :  { %12556 = vst [vmem:[#allocation187_spill] sm:$0xff] %v9995_v2  ;;  %12557 = vst [vmem:[#allocation188_spill] sm:$0xff] %v10003_v12  ;;  %v10043_v12 = vsel %vm1502_vm2, %v1494_v46, %v1495_v20  ;;  %v10047_v41 = vsel %vm1502_vm2, %v1493_v6, %v1494_v46  ;;  %v10067_v6 = vpop.permute.xlu1 %3076  ;;  %v1498_v2 = vrot.slane %v9976_v1, 1 }
 0x50d   :  { %12558 = vst [vmem:[#allocation189_spill] sm:$0xff] %v10005_v19  ;;  %12559 = vst [vmem:[#allocation190_spill] sm:$0xff] %v10007_v26  ;;  %v10051_v31 = vmul.f32 %v9938_v30, %v10043_v12  ;;  %v10055_v9 = vmul.f32 %v9940_v5, %v10047_v41  ;;  %v10059_v4 = vsel %vm1502_vm2, %v1496_v38, %v1497_v50 }
 0x50e   :  { %12560 = vst [vmem:[#allocation191_spill] sm:$0xff] %v10011_v61  ;;  %12561 = vst [vmem:[#allocation192_spill] sm:$0xff] %v10035_v49  ;;  %v10063_v61 = vsel %vm1502_vm2, %v1495_v20, %v1496_v38  ;;  %v10073_v30 = vmul.f32 %v10005_v19, %v10059_v4  ;;  %v10089_v19 = vsel %vm1502_vm2, %v1497_v50, %v1498_v2 }
 0x50f   :  { %12562 = vst [vmem:[#allocation193_spill] sm:$0xff] %v10039_v15  ;;  %12563 = vst [vmem:[#allocation194_spill] sm:$0xff] %v10051_v31  ;;  %v10077_v5 = vmul.f32 %v10007_v26, %v10063_v61  ;;  %v1157_v50 = vmul.f32 %v9447_v17, %v9858_v37  ;;  %v8099_v31 = vld [vmem:[#allocation13 + $0x8] sm:$0xff]  }
 0x510   :  { %12564 = vst [vmem:[#allocation195_spill] sm:$0xff] %v10055_v9  ;;  %12565 = vst [vmem:[#allocation196_spill] sm:$0xff] %v10059_v4  ;;  %v8301_v40 = vpop.eup %8300  ;;  %v10105_v46 = vpop.permute.xlu1 %3084 }
 0x511   :  { %12566 = vst [vmem:[#allocation197_spill] sm:$0xff] %v10065_v7  ;;  %12567 = vst [vmem:[#allocation198_spill] sm:$0xff] %v10067_v6  ;;  %v10083_v38 = vmul.f32 %v8301_v40, %v9832_v36  ;;  %v10101_v36 = vmul.f32 %v10067_v6, %v10089_v19  ;;  %v10103_v40 = vpop.permute.xlu0 %3088 }
 0x512   :  { %12568 = vst [vmem:[#allocation199_spill] sm:$0xff] %v10073_v30  ;;  %12569 = vst [vmem:[#allocation200_spill] sm:$0xff] %v10077_v5 }
 0x513   :  { %12570 = vst [vmem:[#allocation201_spill] sm:$0xff] %v10083_v38  ;;  %12571 = vst [vmem:[#allocation202_spill] sm:$0xff] %v10089_v19  ;;  %v8303_v15 = vpop.eup %8302  ;;  %v1499_v26 = vrot.slane %v10083_v38, 1  ;;  %v10094_v3 = vmul.f32 %v9798_v22, %v10083_v38  ;;  %v10229_v53 = vmul.f32 %v12601_v21, %v10083_v38  ;;  %v12618_v19 = vld [vmem:[#allocation126_spill] sm:$0xff] }
 0x514   :  { %v8305_v49 = vpop.eup %8304  ;;  %v10097_v20 = vmul.f32 %v8303_v15, %v9837_v62  ;;  %12574 = vst [vmem:[#allocation205_spill] sm:$0xff] %v10101_v36  ;;  %12575 = vst [vmem:[#allocation206_spill] sm:$0xff] %v10103_v40  ;;  %v1158_v62 = vmul.f32 %v9452_v23, %v9862_v32  ;;  %v1159_v15 = vmul.f32 %v9483_v24, %v9869_v54 }
 0x515   :  { %12572 = vst [vmem:[#allocation203_spill] sm:$0xff] %v10094_v3  ;;  %12576 = vst [vmem:[#allocation207_spill] sm:$0xff] %v10105_v46  ;;  %v8307_v5 = vpop.eup %8306  ;;  %v10110_v30 = vmul.f32 %v8305_v49, %v9845_v0  ;;  %v10114_v22 = vsel %vm1502_vm2, %v1498_v2, %v1499_v26  ;;  %v10170_v36 = vpop.permute.xlu0 %3096 }
 0x516   :  { %12573 = vst [vmem:[#allocation204_spill] sm:$0xff] %v10097_v20  ;;  %12578 = vst [vmem:[#allocation209_spill] sm:$0xff] %v10114_v22  ;;  %v10122_v6 = vmul.f32 %v9802_v43, %v10097_v20  ;;  %v10125_v17 = vmul.f32 %v8307_v5, %v9848_v35  ;;  %v10129_v0 = vmul.f32 %v10065_v7, %v10114_v22  ;;  %v1500_v2 = vrot.slane %v10097_v20, 1  ;;  %v12594_v7 = vld [vmem:[#allocation46_spill] sm:$0xff] }
 0x517   :  { %12577 = vst [vmem:[#allocation208_spill] sm:$0xff] %v10110_v30  ;;  %v10134_v49 = vmul.f32 %v9822_v59, %v10110_v30  ;;  %v1501_v23 = vrot.slane %v10110_v30, 1  ;;  %v1155_v24 = vmul.f32 %v9469_v34, %v10110_v30  ;;  %v1160_v43 = vmul.f32 %v9457_v27, %v9881_v58  ;;  %12585 = vst [vmem:[#allocation216_spill] sm:$0xff] %v10170_v36 }
 0x518   :  { %12579 = vst [vmem:[#allocation210_spill] sm:$0xff] %v10122_v6  ;;  %12580 = vst [vmem:[#allocation211_spill] sm:$0xff] %v10129_v0  ;;  %v10145_v35 = vmul.f32 %v9826_v10, %v10125_v17  ;;  %v10151_v59 = vsel %vm1502_vm2, %v1499_v26, %v1500_v2  ;;  %v1486_v5 = vrot.slane %v10125_v17, 1  ;;  %v1156_v10 = vmul.f32 %v9477_v11, %v10125_v17  ;;  %v12599_v6 = vld [vmem:[#allocation50_spill] sm:$0xff] }
 0x519   :  { %12581 = vst [vmem:[#allocation212_spill] sm:$0xff] %v10134_v49  ;;  %v10155_v34 = vsel %vm1502_vm2, %v1500_v2, %v1501_v23  ;;  %v10159_v27 = vmul.f32 %v10105_v46, %v10151_v59  ;;  %v10172_v2 = vpop.permute.xlu1 %3092  ;;  %v12587_v0 = vrot.slane %v9858_v37, 1  ;;  %v1168_v60 = vmul.f32 %v12599_v6, %v9976_v1  ;;  %v12607_v6 = vld [vmem:[#allocation54_spill] sm:$0xff] }
 0x51a   :  { %12582 = vst [vmem:[#allocation213_spill] sm:$0xff] %v10145_v35  ;;  %v10168_v26 = vmul.f32 %v10103_v40, %v10155_v34  ;;  %12586 = vst [vmem:[#allocation217_spill] sm:$0xff] %v10172_v2  ;;  %v10182_v11 = vsel %vm1502_vm2, %v1501_v23, %v1486_v5  ;;  %v1171_v9 = vpack.c.bf16 %v1156_v10, %v1155_v24  ;;  %v8100_v24 = vld [vmem:[#allocation13 + $0x10] sm:$0xff]   ;;  %v12592_v10 = vld [vmem:[#allocation53_spill] sm:$0xff]  ;;  %v920_v23 = vrot.slane %v10125_v17, 7 }
 0x51b   :  { %12583 = vst [vmem:[#allocation214_spill] sm:$0xff] %v10159_v27  ;;  %v10178_v46 = vsel %vm1502_vm2, %v1486_v5, %v12587_v0  ;;  %12589 = vst [vmem:[#allocation219_spill] sm:$0xff] %v10182_v11  ;;  %v1172_v40 = vpack.c.bf16 %v1158_v62, %v1157_v50  ;;  %v10192_v35 = vmul.f32 %v10172_v2, %v10182_v11  ;;  %v12593_v62 = vld [vmem:[#allocation45_spill] sm:$0xff]  ;;  %v921_v2 = vrot.slane %v9858_v37, 7 }
 0x51c   :  { %12584 = vst [vmem:[#allocation215_spill] sm:$0xff] %v10168_v26  ;;  %12588 = vst [vmem:[#allocation218_spill] sm:$0xff] %v10178_v46  ;;  %v10188_v49 = vmul.f32 %v10170_v36, %v10178_v46  ;;  %6813 = vmatprep.mubr.bf16.mxu0 %v1171_v9  ;;  %v1173_v0 = vpack.c.bf16 %v1160_v43, %v1159_v15  ;;  %v1161_v50 = vmul.f32 %v12592_v10, %v9889_v25  ;;  %v12595_v43 = vld [vmem:[#allocation57_spill] sm:$0xff] }
 0x51d   :  { %12591 = vst [vmem:[#allocation221_spill] sm:$0xff] %v10192_v35  ;;  %6814 = vmatmul.mubr.bf16.vlgmr.msra.gmra.mrb[8].mxu0 %v1172_v40  ;;  %v1162_v5 = vmul.f32 %v12593_v62, %v9899_v16  ;;  %v1164_v36 = vmul.f32 %v12594_v7, %v9925_v33  ;;  %v1165_v9 = vmul.f32 %v12595_v43, %v9936_v63  ;;  %v12596_v40 = vld [vmem:[#allocation48_spill] sm:$0xff]  ;;  %v922_v10 = vrot.slane %v9862_v32, 7  ;;  %v12597_v7 = vld [vmem:[#allocation55_spill] sm:$0xff]  ;;  %v12670_v63 = vld [vmem:[#allocation122_spill] sm:$0xff] }
 0x51e   :  { %12590 = vst [vmem:[#allocation220_spill] sm:$0xff] %v10188_v49  ;;  %6830 = vmatpush3.bf16.msra.mxu0 %v9669_v39  ;;  %6817 = vmatprep.mubr.bf16.mxu0 %v1173_v0  ;;  %v1166_v15 = vmul.f32 %v12596_v40, %v9949_v55  ;;  %v935_v0 = vrot.slane %v10110_v30, 7  ;;  %v1163_v62 = vmul.f32 %v12597_v7, %v9912_v8  ;;  %v923_v43 = vrot.slane %v9869_v54, 7  ;;  %v8101_v35 = vld [vmem:[#allocation13 + $0x18] sm:$0xff]   ;;  %v12598_v49 = vld [vmem:[#allocation59_spill] sm:$0xff] }
 0x51f   :  { %6831 = vmatprep.subr.bf16.mxu0 %v8099_v31  ;;  %v924_v40 = vrot.slane %v9881_v58, 7  ;;  %v1174_v39 = vpack.c.bf16 %v1162_v5, %v1161_v50  ;;  %v1167_v27 = vmul.f32 %v12598_v49, %v9971_v51  ;;  %v12603_v5 = vld [vmem:[#allocation52_spill] sm:$0xff] }
 0x520   :  { %v1175_v26 = vpack.c.bf16 %v1164_v36, %v1163_v62  ;;  %v1176_v3 = vpack.c.bf16 %v1166_v15, %v1165_v9  ;;  %v10233_v50 = vsel %vm938_vm3, %v935_v0, %v920_v23  ;;  %v10237_v36 = vsel %vm938_vm3, %v921_v2, %v922_v10 }
 0x521   :  { %12602 = vst [vmem:[#allocation222_spill] sm:$0xff] %v10233_v50  ;;  %v10241_v62 = vsel %vm938_vm3, %v920_v23, %v921_v2  ;;  %v10245_v9 = vmul.f32 %v12603_v5, %v10097_v20  ;;  %v950_v15 = vsel %vm938_vm3, %v923_v43, %v924_v40  ;;  %v8102_v2 = vld [vmem:[#allocation13 + $0x20] sm:$0xff]   ;;  %v928_v5 = vrot.slane %v9925_v33, 7 }
 0x522   :  { %6832 = vmatpush3.bf16.msra.mxu0 %v8099_v31  ;;  %v12600_v31 = vrot.slane %v10097_v20, 7  ;;  %v10264_v49 = vmul.f32 %v12607_v6, %v10233_v50  ;;  %v1177_v52 = vpack.c.bf16 %v1168_v60, %v1167_v27  ;;  %v12613_v6 = vld [vmem:[#allocation67_spill] sm:$0xff]  ;;  %v10320_v4 = vmul.f32 %v12618_v19, %v950_v15  ;;  %v12626_v19 = vld [vmem:[#allocation62_spill] sm:$0xff] }
 0x523   :  { %6833 = vmatprep.subr.bf16.mxu0 %v8100_v24  ;;  %v10283_v18 = vmul.f32 %v12613_v6, %v950_v15  ;;  %v8103_v27 = vld [vmem:[#allocation13 + $0x28] sm:$0xff]  }
 0x524   :  { %v10225_v7 = vsel %vm938_vm3, %v12600_v31, %v935_v0  ;;  %v925_v0 = vrot.slane %v9889_v25, 7  ;;  %v12604_v31 = vld [vmem:[#allocation103_spill] sm:$0xff]  ;;  %12619 = vst [vmem:[#allocation227_spill] sm:$0xff] %v10320_v4 }
 0x525   :  { %6818 = vmatmul.mubr.bf16.gmra.mrb[12].mxu0 %v1174_v39  ;;  %v951_v39 = vsel %vm938_vm3, %v922_v10, %v923_v43  ;;  %v10254_v21 = vmul.f32 %v12604_v31, %v10178_v46  ;;  %v12608_v10 = vld [vmem:[#allocation56_spill] sm:$0xff]  ;;  %v12609_v31 = vld [vmem:[#allocation65_spill] sm:$0xff] }
 0x526   :  { %6834 = vmatpush3.bf16.msra.mxu0 %v8100_v24  ;;  %6821 = vmatprep.mubr.bf16.mxu0 %v1175_v26  ;;  %v12606_v26 = vld [vmem:[#allocation63_spill] sm:$0xff]  ;;  %v926_v24 = vrot.slane %v9899_v16, 7  ;;  %v10268_v43 = vmul.f32 %v12608_v10, %v10241_v62  ;;  %v10272_v14 = vmul.f32 %v12609_v31, %v10237_v36  ;;  %v10280_v45 = vmul.f32 %v12612_v28, %v951_v39  ;;  %v12614_v28 = vld [vmem:[#allocation96_spill] sm:$0xff]  ;;  %v12666_v16 = vld [vmem:[#allocation209_spill] sm:$0xff] }
 0x527   :  { %12605 = vst [vmem:[#allocation223_spill] sm:$0xff] %v10254_v21  ;;  %6835 = vmatprep.subr.bf16.mxu0 %v8101_v35  ;;  %v10258_v23 = vmul.f32 %v12606_v26, %v10225_v7  ;;  %v12610_v26 = vld [vmem:[#allocation119_spill] sm:$0xff]  ;;  %v1178_v10 = vpack.c.bf16 %v10245_v9, %v10229_v53  ;;  %v10289_v31 = vsel %vm938_vm3, %v924_v40, %v925_v0  ;;  %v931_v53 = vrot.slane %v9971_v51, 7  ;;  %v12664_v51 = vld [vmem:[#allocation202_spill] sm:$0xff] }
 0x528   :  { %v10277_v29 = vmul.f32 %v12610_v26, %v10182_v11  ;;  %v930_v26 = vrot.slane %v9949_v55, 7  ;;  %v10295_v60 = vsel %vm938_vm3, %v925_v0, %v926_v24  ;;  %v932_v9 = vrot.slane %v9976_v1, 7  ;;  %v12662_v1 = vld [vmem:[#allocation196_spill] sm:$0xff] }
 0x529   :  { %v1067_v40 = vpack.c.bf16 %v10264_v49, %v10258_v23  ;;  %v10308_v46 = vmul.f32 %v12614_v28, %v951_v39  ;;  %v10312_v0 = vsel %vm938_vm3, %v926_v24, %v927_v13  ;;  %v933_v49 = vrot.slane %v10083_v38, 7  ;;  %v12620_v23 = vld [vmem:[#allocation60_spill] sm:$0xff]  ;;  %v12630_v28 = vld [vmem:[#allocation85_spill] sm:$0xff] }
 0x52a   :  { %12611 = vst [vmem:[#allocation224_spill] sm:$0xff] %v10277_v29  ;;  %6836 = vmatpush3.bf16.msra.mxu0 %v8101_v35  ;;  %v10299_v35 = vsel %vm938_vm3, %v927_v13, %v928_v5  ;;  %v12616_v29 = vld [vmem:[#allocation123_spill] sm:$0xff]  ;;  %v10325_v6 = vmul.f32 %v12620_v23, %v10289_v31  ;;  %v12622_v13 = vld [vmem:[#allocation69_spill] sm:$0xff]  ;;  %v12624_v24 = vld [vmem:[#allocation72_spill] sm:$0xff] }
 0x52b   :  { %6837 = vmatprep.subr.bf16.mxu0 %v8102_v2  ;;  %12615 = vst [vmem:[#allocation225_spill] sm:$0xff] %v10308_v46  ;;  %v10317_v22 = vmul.f32 %v12616_v29, %v951_v39  ;;  %v10333_v11 = vmul.f32 %v12624_v24, %v10299_v35  ;;  %v8104_v39 = vld [vmem:[#allocation13 + $0x30] sm:$0xff]   ;;  %v10337_v29 = vmul.f32 %v12626_v19, %v10312_v0 }
 0x52c   :  { %12621 = vst [vmem:[#allocation228_spill] sm:$0xff] %v10325_v6  ;;  %v10353_v24 = vsel %vm938_vm3, %v930_v26, %v931_v53  ;;  %v12628_v23 = vld [vmem:[#allocation92_spill] sm:$0xff] }
 0x52d   :  { %6822 = vmatmul.mubr.bf16.gmra.mrb[16].mxu0 %v1176_v3  ;;  %12617 = vst [vmem:[#allocation226_spill] sm:$0xff] %v10317_v22  ;;  %v10329_v3 = vmul.f32 %v12622_v13, %v10295_v60  ;;  %12625 = vst [vmem:[#allocation230_spill] sm:$0xff] %v10333_v11  ;;  %v10349_v13 = vsel %vm938_vm3, %v931_v53, %v932_v9  ;;  %v10357_v19 = vmul.f32 %v12628_v23, %v10151_v59  ;;  %v12635_v53 = vld [vmem:[#allocation87_spill] sm:$0xff] }
 0x52e   :  { %6838 = vmatpush3.bf16.msra.mxu0 %v8102_v2  ;;  %6825 = vmatprep.mubr.bf16.mxu0 %v1177_v52  ;;  %12627 = vst [vmem:[#allocation231_spill] sm:$0xff] %v10337_v29  ;;  %v10341_v52 = vsel %vm938_vm3, %v929_v48, %v930_v26  ;;  %v10345_v2 = vsel %vm938_vm3, %v928_v5, %v929_v48  ;;  %v12632_v29 = vld [vmem:[#allocation94_spill] sm:$0xff]  ;;  %v12634_v5 = vrot.slane %v10097_v20, 7 }
 0x52f   :  { %12623 = vst [vmem:[#allocation229_spill] sm:$0xff] %v10329_v3  ;;  %6839 = vmatprep.subr.bf16.mxu0 %v8103_v27  ;;  %12629 = vst [vmem:[#allocation232_spill] sm:$0xff] %v10357_v19  ;;  %v10361_v11 = vmul.f32 %v12630_v28, %v10155_v34  ;;  %v10365_v48 = vmul.f32 %v12632_v29, %v10233_v50  ;;  %v10375_v26 = vsel %vm938_vm3, %v932_v9, %v933_v49  ;;  %v12636_v28 = vld [vmem:[#allocation89_spill] sm:$0xff]  ;;  %v12638_v50 = vld [vmem:[#allocation91_spill] sm:$0xff] }
 0x530   :  { %v10371_v3 = vsel %vm938_vm3, %v933_v49, %v12634_v5  ;;  %v10379_v23 = vmul.f32 %v12635_v53, %v10241_v62  ;;  %v10383_v6 = vmul.f32 %v12636_v28, %v10237_v36  ;;  %v10388_v4 = vmul.f32 %v12638_v50, %v950_v15  ;;  %v12640_v5 = vld [vmem:[#allocation98_spill] sm:$0xff]  ;;  %v12641_v9 = vld [vmem:[#allocation93_spill] sm:$0xff]  ;;  %v12643_v29 = vld [vmem:[#allocation100_spill] sm:$0xff] }
 0x531   :  { %12631 = vst [vmem:[#allocation233_spill] sm:$0xff] %v10361_v11  ;;  %12633 = vst [vmem:[#allocation234_spill] sm:$0xff] %v10365_v48  ;;  %v10392_v56 = vmul.f32 %v12640_v5, %v10289_v31  ;;  %v10396_v49 = vmul.f32 %v12641_v9, %v10295_v60  ;;  %v8105_v53 = vld [vmem:[#allocation13 + $0x38] sm:$0xff]   ;;  %v10404_v15 = vmul.f32 %v12643_v29, %v10312_v0  ;;  %v12644_v50 = vld [vmem:[#allocation95_spill] sm:$0xff] }
 0x532   :  { %12637 = vst [vmem:[#allocation235_spill] sm:$0xff] %v10383_v6  ;;  %6840 = vmatpush3.bf16.msra.mxu0 %v8103_v27  ;;  %12639 = vst [vmem:[#allocation236_spill] sm:$0xff] %v10388_v4  ;;  %v10408_v5 = vmul.f32 %v12644_v50, %v10299_v35  ;;  %v12645_v19 = vld [vmem:[#allocation102_spill] sm:$0xff]  ;;  %v12646_v28 = vld [vmem:[#allocation97_spill] sm:$0xff] }
 0x533   :  { %12642 = vst [vmem:[#allocation237_spill] sm:$0xff] %v10396_v49  ;;  %6841 = vmatprep.subr.bf16.mxu0 %v8104_v39  ;;  %v10414_v11 = vmul.f32 %v12645_v19, %v10345_v2  ;;  %v10418_v48 = vmul.f32 %v12646_v28, %v10341_v52  ;;  %v12647_v27 = vld [vmem:[#allocation104_spill] sm:$0xff]  ;;  %v12648_v29 = vld [vmem:[#allocation99_spill] sm:$0xff]  ;;  %v12649_v9 = vld [vmem:[#allocation106_spill] sm:$0xff] }
 0x534   :  { %v10422_v6 = vmul.f32 %v12647_v27, %v10353_v24  ;;  %v10428_v46 = vmul.f32 %v12648_v29, %v10349_v13  ;;  %v10432_v19 = vmul.f32 %v12649_v9, %v10375_v26  ;;  %v12650_v4 = vld [vmem:[#allocation101_spill] sm:$0xff]  ;;  %v12651_v27 = vld [vmem:[#allocation108_spill] sm:$0xff]  ;;  %v12656_v9 = vld [vmem:[#allocation114_spill] sm:$0xff] }
 0x535   :  { %6826 = vmatmul.mubr.bf16.gmra.mrb[20].mxu0 %v1178_v10  ;;  %v10436_v28 = vmul.f32 %v12650_v4, %v10371_v3  ;;  %v10444_v29 = vmul.f32 %v12651_v27, %v10225_v7  ;;  %v8106_v49 = vld [vmem:[#allocation13 + $0x80] sm:$0xff]   ;;  %v12654_v50 = vld [vmem:[#allocation112_spill] sm:$0xff]  ;;  %v10480_v55 = vmul.f32 %v12656_v9, %v10025_v44  ;;  %v12658_v4 = vld [vmem:[#allocation111_spill] sm:$0xff] }
 0x536   :  { %6842 = vmatpush3.bf16.msra.mxu0 %v8104_v39  ;;  %6845 = vmatprep.mubr.bf16.mxu0 %v1067_v40  ;;  %v12652_v39 = vld [vmem:[#allocation110_spill] sm:$0xff]  ;;  %v10472_v25 = vmul.f32 %v12654_v50, %v9999_v42  ;;  %v12655_v27 = vld [vmem:[#allocation109_spill] sm:$0xff]  ;;  %v10484_v40 = vmul.f32 %v12658_v4, %v10047_v41  ;;  %v12665_v4 = vld [vmem:[#allocation115_spill] sm:$0xff] }
 0x537   :  { %6843 = vmatprep.subr.bf16.mxu0 %v8105_v53  ;;  %v10468_v58 = vmul.f32 %v12652_v39, %v9905_v57  ;;  %v10476_v10 = vmul.f32 %v12655_v27, %v10029_v47  ;;  %12657 = vst [vmem:[#allocation239_spill] sm:$0xff] %v10480_v55  ;;  %v12660_v39 = vld [vmem:[#allocation116_spill] sm:$0xff]  ;;  %v8107_v50 = vld [vmem:[#allocation13 + $0x88] sm:$0xff]   ;;  %v12661_v27 = vld [vmem:[#allocation113_spill] sm:$0xff]  ;;  %v10502_v33 = vmul.f32 %v12665_v4, %v12664_v51 }
 0x538   :  { %12659 = vst [vmem:[#allocation240_spill] sm:$0xff] %v10484_v40  ;;  %v10488_v20 = vmul.f32 %v12660_v39, %v10043_v12  ;;  %v10494_v30 = vmul.f32 %v12661_v27, %v10063_v61  ;;  %v12663_v9 = vld [vmem:[#allocation118_spill] sm:$0xff]  ;;  %v12668_v27 = vld [vmem:[#allocation117_spill] sm:$0xff]  ;;  %v10525_v55 = vmul.f32 %v12670_v63, %v10155_v34  ;;  %v8108_v4 = vld [vmem:[#allocation13 + $0x90] sm:$0xff]  }
 0x539   :  { %12653 = vst [vmem:[#allocation238_spill] sm:$0xff] %v10468_v58  ;;  %v10498_v38 = vmul.f32 %v12663_v9, %v12662_v1  ;;  %v10514_v58 = vmul.f32 %v12668_v27, %v10151_v59  ;;  %v12669_v9 = vpack.c.bf16 %v10272_v14, %v10268_v43  ;;  %v12672_v59 = vpack.c.bf16 %v10283_v18, %v10280_v45  ;;  %v12673_v43 = vld [vmem:[#allocation121_spill] sm:$0xff]  ;;  %v12678_v18 = vld [vmem:[#allocation128_spill] sm:$0xff]  ;;  %v12682_v14 = vld [vmem:[#allocation130_spill] sm:$0xff] }
 0x53a   :  { %6844 = vmatpush3.bf16.msra.mxu0 %v8105_v53  ;;  %v12667_v53 = vld [vmem:[#allocation120_spill] sm:$0xff]  ;;  %v10550_v45 = vmul.f32 %v12678_v18, %v10295_v60  ;;  %v12689_v34 = vld [vmem:[#allocation134_spill] sm:$0xff]  ;;  %v12695_v22 = vld [vmem:[#allocation229_spill] sm:$0xff] }
 0x53b   :  { %6861 = vmatprep.subr.bf16.mxu0 %v8106_v49  ;;  %v10510_v21 = vmul.f32 %v12667_v53, %v12666_v16  ;;  %v12671_v53 = vld [vmem:[#allocation124_spill] sm:$0xff]  ;;  %v10578_v18 = vmul.f32 %v12689_v34, %v10349_v13 }
 0x53c   :  { %v10529_v40 = vmul.f32 %v12671_v53, %v10241_v62  ;;  %v12675_v62 = vld [vmem:[#allocation224_spill] sm:$0xff]  ;;  %12679 = vst [vmem:[#allocation202_spill] sm:$0xff] %v10550_v45  ;;  %v12684_v53 = vld [vmem:[#allocation129_spill] sm:$0xff] }
 0x53d   :  { %6846 = vmatmul.mubr.bf16.vlgmr.msra.gmra.mrb[8].mxu0 %v12669_v9  ;;  %v10538_v9 = vmul.f32 %v12673_v43, %v10237_v36  ;;  %v10560_v43 = vmul.f32 %v12682_v14, %v10299_v35  ;;  %v10564_v27 = vmul.f32 %v12684_v53, %v10345_v2  ;;  %v12690_v35 = vld [vmem:[#allocation133_spill] sm:$0xff]  ;;  %v12691_v60 = vld [vmem:[#allocation136_spill] sm:$0xff]  ;;  %v12698_v53 = vld [vmem:[#allocation231_spill] sm:$0xff] }
 0x53e   :  { %6862 = vmatpush3.bf16.msra.mxu0 %v8106_v49  ;;  %6849 = vmatprep.mubr.bf16.mxu0 %v12672_v59  ;;  %v12676_v49 = vld [vmem:[#allocation125_spill] sm:$0xff]  ;;  %v12680_v59 = vld [vmem:[#allocation127_spill] sm:$0xff]  ;;  %v10582_v14 = vmul.f32 %v12690_v35, %v10375_v26  ;;  %v12694_v34 = vld [vmem:[#allocation228_spill] sm:$0xff] }
 0x53f   :  { %6863 = vmatprep.subr.bf16.mxu0 %v8107_v50  ;;  %v10546_v63 = vmul.f32 %v12676_v49, %v10289_v31  ;;  %v10554_v36 = vmul.f32 %v12680_v59, %v10312_v0  ;;  %12683 = vst [vmem:[#allocation224_spill] sm:$0xff] %v10560_v43  ;;  %12685 = vst [vmem:[#allocation241_spill] sm:$0xff] %v10564_v27  ;;  %v12686_v31 = vld [vmem:[#allocation132_spill] sm:$0xff]  ;;  %v12688_v0 = vld [vmem:[#allocation131_spill] sm:$0xff]  ;;  %v1070_v35 = vpack.c.bf16 %v12695_v22, %v12694_v34 }
 0x540   :  { %v10568_v49 = vmul.f32 %v12686_v31, %v10341_v52  ;;  %v10574_v59 = vmul.f32 %v12688_v0, %v10353_v24  ;;  %v12692_v0 = vld [vmem:[#allocation135_spill] sm:$0xff]  ;;  %v8109_v39 = vld [vmem:[#allocation13 + $0x98] sm:$0xff]   ;;  %v12696_v31 = vld [vmem:[#allocation222_spill] sm:$0xff] }
 0x541   :  { %12677 = vst [vmem:[#allocation196_spill] sm:$0xff] %v10546_v63  ;;  %12681 = vst [vmem:[#allocation209_spill] sm:$0xff] %v10554_v36  ;;  %v10590_v63 = vmul.f32 %v12691_v60, %v10371_v3  ;;  %v10594_v45 = vmul.f32 %v12692_v0, %v10225_v7  ;;  %v12697_v36 = vld [vmem:[#allocation138_spill] sm:$0xff]  ;;  %v12700_v34 = vld [vmem:[#allocation64_spill] sm:$0xff] }
 0x542   :  { %12687 = vst [vmem:[#allocation242_spill] sm:$0xff] %v10568_v49  ;;  %6864 = vmatpush3.bf16.msra.mxu0 %v8107_v50  ;;  %v10602_v43 = vmul.f32 %v12697_v36, %v12696_v31  ;;  %v12699_v27 = vld [vmem:[#allocation230_spill] sm:$0xff]  ;;  %v1061_v50 = vmul.f32 %v12700_v34, %v10345_v2  ;;  %v12704_v2 = vld [vmem:[#allocation68_spill] sm:$0xff] }
 0x543   :  { %12693 = vst [vmem:[#allocation243_spill] sm:$0xff] %v10594_v45  ;;  %6865 = vmatprep.subr.bf16.mxu0 %v8108_v4  ;;  %v1071_v60 = vpack.c.bf16 %v12699_v27, %v12698_v53  ;;  %v8110_v22 = vld [vmem:[#allocation13 + $0xa0] sm:$0xff]   ;;  %v12703_v53 = vld [vmem:[#allocation76_spill] sm:$0xff]  ;;  %v8111_v7 = vld [vmem:[#allocation13 + $0xa8] sm:$0xff]   ;;  %v1065_v34 = vmul.f32 %v12704_v2, %v10375_v26 }
 0x544   :  { %v12701_v31 = vld [vmem:[#allocation74_spill] sm:$0xff]  ;;  %v1064_v49 = vmul.f32 %v12703_v53, %v10349_v13 }
 0x545   :  { %6850 = vmatmul.mubr.bf16.gmra.mrb[12].mxu0 %v1070_v35  ;;  %v1062_v36 = vmul.f32 %v12701_v31, %v10341_v52  ;;  %v12702_v0 = vld [vmem:[#allocation66_spill] sm:$0xff] }
 0x546   :  { %6866 = vmatpush3.bf16.msra.mxu0 %v8108_v4  ;;  %6853 = vmatprep.mubr.bf16.mxu0 %v1071_v60  ;;  %v1063_v27 = vmul.f32 %v12702_v0, %v10353_v24  ;;  %v8112_v60 = vld [vmem:[#allocation13 + $0xb0] sm:$0xff]   ;;  %v12705_v52 = vld [vmem:[#allocation78_spill] sm:$0xff] }
 0x547   :  { %6867 = vmatprep.subr.bf16.mxu0 %v8109_v39  ;;  %v1072_v35 = vpack.c.bf16 %v1062_v36, %v1061_v50  ;;  %v1066_v31 = vmul.f32 %v12705_v52, %v10371_v3  ;;  %v12706_v24 = vld [vmem:[#allocation219_spill] sm:$0xff]  ;;  %v12707_v0 = vld [vmem:[#allocation70_spill] sm:$0xff]  ;;  %v8113_v36 = vld [vmem:[#allocation13 + $0xb8] sm:$0xff]  }
 0x548   :  { %v1073_v4 = vpack.c.bf16 %v1064_v49, %v1063_v27  ;;  %v1583_v45 = vmul.f32 %v12707_v0, %v12706_v24  ;;  %v12708_v13 = vld [vmem:[#allocation218_spill] sm:$0xff]  ;;  %v12711_v27 = vld [vmem:[#allocation171_spill] sm:$0xff]  ;;  %v12713_v24 = vld [vmem:[#allocation184_spill] sm:$0xff] }
 0x549   :  { %v1074_v49 = vpack.c.bf16 %v1066_v31, %v1065_v34  ;;  %v12714_v52 = vld [vmem:[#allocation82_spill] sm:$0xff] }
 0x54a   :  { %6868 = vmatpush3.bf16.msra.mxu0 %v8109_v39  ;;  %v12709_v39 = vld [vmem:[#allocation80_spill] sm:$0xff]  ;;  %v1587_v2 = vmul.f32 %v12714_v52, %v12713_v24 }
 0x54b   :  { %6869 = vmatprep.subr.bf16.mxu0 %v8110_v22  ;;  %v1584_v53 = vmul.f32 %v12709_v39, %v12708_v13 }
 0x54d   :  { %6854 = vmatmul.mubr.bf16.gmra.mrb[16].mxu0 %v1072_v35  ;;  %v1599_v50 = vpack.c.bf16 %v1584_v53, %v1583_v45  ;;  %v12712_v35 = vld [vmem:[#allocation73_spill] sm:$0xff]  ;;  %v8115_v45 = vld [vmem:[#allocation13 + $0xc8] sm:$0xff]   ;;  %v12716_v53 = vld [vmem:[#allocation84_spill] sm:$0xff] }
 0x54e   :  { %6870 = vmatpush3.bf16.msra.mxu0 %v8110_v22  ;;  %6857 = vmatprep.mubr.bf16.mxu0 %v1073_v4  ;;  %v12710_v22 = vld [vmem:[#allocation71_spill] sm:$0xff]  ;;  %v1586_v3 = vmul.f32 %v12712_v35, %v12711_v27  ;;  %v8114_v4 = vld [vmem:[#allocation13 + $0xc0] sm:$0xff]  }
 0x54f   :  { %6871 = vmatprep.subr.bf16.mxu0 %v8111_v7  ;;  %v1585_v26 = vmul.f32 %v12710_v22, %v9905_v57  ;;  %v8116_v57 = vld [vmem:[#allocation13 + $0xd0] sm:$0xff]   ;;  %v12718_v27 = vld [vmem:[#allocation86_spill] sm:$0xff] }
 0x550   :  { %v1591_v24 = vmul.f32 %v12718_v27, %v10047_v41  ;;  %v12722_v41 = vld [vmem:[#allocation90_spill] sm:$0xff] }
 0x551   :  { %v1600_v34 = vpack.c.bf16 %v1586_v3, %v1585_v26  ;;  %v8117_v26 = vld [vmem:[#allocation13 + $0xd8] sm:$0xff]  }
 0x552   :  { %6872 = vmatpush3.bf16.msra.mxu0 %v8111_v7  ;;  %v12715_v7 = vld [vmem:[#allocation75_spill] sm:$0xff] }
 0x553   :  { %6873 = vmatprep.subr.bf16.mxu0 %v8112_v60  ;;  %v1588_v13 = vmul.f32 %v12715_v7, %v9999_v42  ;;  %v12719_v42 = vld [vmem:[#allocation79_spill] sm:$0xff] }
 0x555   :  { %6858 = vmatmul.mubr.bf16.gmra.mrb[20].mxu0 %v1074_v49  ;;  %v1601_v31 = vpack.c.bf16 %v1588_v13, %v1587_v2  ;;  %v12717_v49 = vld [vmem:[#allocation77_spill] sm:$0xff] }
 0x556   :  { %6874 = vmatpush3.bf16.msra.mxu0 %v8112_v60  ;;  %6877 = vmatprep.mubr.bf16.mxu0 %v1599_v50  ;;  %v1589_v60 = vmul.f32 %v12716_v53, %v10029_v47  ;;  %v1590_v50 = vmul.f32 %v12717_v49, %v10025_v44  ;;  %v12720_v47 = vld [vmem:[#allocation88_spill] sm:$0xff]  ;;  %v12721_v44 = vld [vmem:[#allocation81_spill] sm:$0xff] }
 0x557   :  { %6875 = vmatprep.subr.bf16.mxu0 %v8113_v36  ;;  %v1593_v13 = vmul.f32 %v12720_v47, %v10063_v61  ;;  %v8121_v61 = vld [vmem:[#allocation13 + $0xf8] sm:$0xff]  }
 0x558   :  { %v1602_v2 = vpack.c.bf16 %v1590_v50, %v1589_v60  ;;  %v8119_v50 = vld [vmem:[#allocation13 + $0xe8] sm:$0xff]   ;;  %v12878_v47 = vld [vmem:[#allocation61_spill] sm:$0xff] }
 0x55a   :  { %6876 = vmatpush3.bf16.msra.mxu0 %v8113_v36  ;;  %v1592_v36 = vmul.f32 %v12719_v42, %v10043_v12  ;;  %v12723_v12 = vld [vmem:[#allocation83_spill] sm:$0xff] }
 0x55b   :  { %6893 = vmatprep.subr.bf16.mxu0 %v8114_v4 }
 0x55c   :  { %v1603_v3 = vpack.c.bf16 %v1592_v36, %v1591_v24  ;;  %v8120_v24 = vld [vmem:[#allocation13 + $0xf0] sm:$0xff]  }
 0x55d   :  { %6878 = vmatmul.mubr.bf16.vlgmr.msra.gmra.mrb[8].mxu0 %v1600_v34  ;;  %v1594_v34 = vmul.f32 %v12721_v44, %v12662_v1  ;;  %v12724_v1 = vld [vmem:[#allocation233_spill] sm:$0xff]  ;;  %v12725_v36 = vld [vmem:[#allocation232_spill] sm:$0xff] }
 0x55e   :  { %6894 = vmatpush3.bf16.msra.mxu0 %v8114_v4  ;;  %6881 = vmatprep.mubr.bf16.mxu0 %v1601_v31  ;;  %v8118_v4 = vld [vmem:[#allocation13 + $0xe0] sm:$0xff]   ;;  %v1595_v31 = vmul.f32 %v12722_v41, %v12664_v51 }
 0x55f   :  { %6895 = vmatprep.subr.bf16.mxu0 %v8115_v45  ;;  %v1604_v60 = vpack.c.bf16 %v1594_v34, %v1593_v13  ;;  %v12727_v51 = vld [vmem:[#allocation234_spill] sm:$0xff]  ;;  %v12730_v13 = vld [vmem:[#allocation235_spill] sm:$0xff] }
 0x562   :  { %6896 = vmatpush3.bf16.msra.mxu0 %v8115_v45  ;;  %v1596_v45 = vmul.f32 %v12723_v12, %v12666_v16  ;;  %v12728_v16 = vpack.c.bf16 %v10379_v23, %v12727_v51  ;;  %v8125_v23 = vld [vmem:[#allocation13 + $0x118] sm:$0xff]   ;;  %v12743_v51 = vld [vmem:[#allocation162_spill] sm:$0xff] }
 0x563   :  { %6897 = vmatprep.subr.bf16.mxu0 %v8116_v57 }
 0x565   :  { %6882 = vmatmul.mubr.bf16.gmra.mrb[12].mxu0 %v1602_v2  ;;  %v12726_v2 = vpack.c.bf16 %v12724_v1, %v12725_v36  ;;  %v12737_v1 = vpack.c.bf16 %v10422_v6, %v10418_v48  ;;  %v12738_v36 = vpack.c.bf16 %v10432_v19, %v10428_v46  ;;  %v8130_v6 = vld [vmem:[#allocation13 + $0x140] sm:$0xff]   ;;  %v8131_v19 = vld [vmem:[#allocation13 + $0x148] sm:$0xff]   ;;  %v12741_v46 = vpack.c.bf16 %v9869_v54, %v9862_v32  ;;  %v12742_v48 = vld [vmem:[#allocation164_spill] sm:$0xff] }
 0x566   :  { %6898 = vmatpush3.bf16.msra.mxu0 %v8116_v57  ;;  %6885 = vmatprep.mubr.bf16.mxu0 %v1603_v3  ;;  %v1605_v57 = vpack.c.bf16 %v1596_v45, %v1595_v31  ;;  %v8123_v3 = vld [vmem:[#allocation13 + $0x108] sm:$0xff]   ;;  %v12732_v31 = vld [vmem:[#allocation236_spill] sm:$0xff]  ;;  %v8134_v32 = vld [vmem:[#allocation13 + $0x160] sm:$0xff]  }
 0x567   :  { %6899 = vmatprep.subr.bf16.mxu0 %v8117_v26  ;;  %v12733_v45 = vpack.c.bf16 %v10392_v56, %v12732_v31  ;;  %v8127_v56 = vld [vmem:[#allocation13 + $0x128] sm:$0xff]  }
 0x568   :  { %v8135_v54 = vld [vmem:[#allocation13 + $0x168] sm:$0xff]  }
 0x56a   :  { %6900 = vmatpush3.bf16.msra.mxu0 %v8117_v26  ;;  %v8122_v26 = vld [vmem:[#allocation13 + $0x100] sm:$0xff]  }
 0x56b   :  { %6901 = vmatprep.subr.bf16.mxu0 %v8118_v4 }
 0x56d   :  { %6886 = vmatmul.mubr.bf16.gmra.mrb[16].mxu0 %v1604_v60  ;;  %v8124_v60 = vld [vmem:[#allocation13 + $0x110] sm:$0xff]  }
 0x56e   :  { %6902 = vmatpush3.bf16.msra.mxu0 %v8118_v4  ;;  %6889 = vmatprep.mubr.bf16.mxu0 %v1605_v57  ;;  %v12729_v4 = vld [vmem:[#allocation225_spill] sm:$0xff] }
 0x56f   :  { %6903 = vmatprep.subr.bf16.mxu0 %v8119_v50  ;;  %v12731_v34 = vpack.c.bf16 %v12729_v4, %v12730_v13  ;;  %v12750_v13 = vld [vmem:[#allocation182_spill] sm:$0xff] }
 0x572   :  { %6904 = vmatpush3.bf16.msra.mxu0 %v8119_v50  ;;  %v12734_v50 = vld [vmem:[#allocation237_spill] sm:$0xff] }
 0x573   :  { %6905 = vmatprep.subr.bf16.mxu0 %v8120_v24  ;;  %v12735_v57 = vpack.c.bf16 %v10404_v15, %v12734_v50  ;;  %v8128_v15 = vld [vmem:[#allocation13 + $0x130] sm:$0xff]   ;;  %v8137_v50 = vld [vmem:[#allocation13 + $0x178] sm:$0xff]  }
 0x575   :  { %6890 = vmatmul.mubr.bf16.gmra.mrb[20].mxu0 %v12726_v2  ;;  %v12740_v2 = vpack.c.bf16 %v9858_v37, %v10125_v17  ;;  %v8133_v17 = vld [vmem:[#allocation13 + $0x158] sm:$0xff]   ;;  %v12745_v37 = vld [vmem:[#allocation166_spill] sm:$0xff] }
 0x576   :  { %6906 = vmatpush3.bf16.msra.mxu0 %v8120_v24  ;;  %6909 = vmatprep.mubr.bf16.mxu0 %v12728_v16  ;;  %v12736_v24 = vpack.c.bf16 %v10414_v11, %v10408_v5  ;;  %v8129_v11 = vld [vmem:[#allocation13 + $0x138] sm:$0xff]   ;;  %v12739_v5 = vpack.c.bf16 %v10444_v29, %v10436_v28  ;;  %v12744_v16 = vpack.c.bf16 %v12742_v48, %v12743_v51  ;;  %v8132_v29 = vld [vmem:[#allocation13 + $0x150] sm:$0xff]  }
 0x577   :  { %6907 = vmatprep.subr.bf16.mxu0 %v8121_v61  ;;  %v12746_v28 = vpack.c.bf16 %v9912_v8, %v12745_v37  ;;  %v8136_v8 = vld [vmem:[#allocation13 + $0x170] sm:$0xff]   ;;  %v8141_v48 = vld [vmem:[#allocation13 + $0x198] sm:$0xff]   ;;  %v8142_v37 = vld [vmem:[#allocation13 + $0x1a0] sm:$0xff]  }
 0x578   :  { %v12766_v51 = vld [vmem:[#allocation240_spill] sm:$0xff] }
 0x57a   :  { %6908 = vmatpush3.bf16.msra.mxu0 %v8121_v61  ;;  %v8126_v61 = vld [vmem:[#allocation13 + $0x120] sm:$0xff]  }
 0x57b   :  { %6925 = vmatprep.subr.bf16.mxu0 %v8122_v26 }
 0x57d   :  { %6910 = vmatmul.mubr.bf16.vlgmr.msra.gmra.mrb[8].mxu0 %v12731_v34  ;;  %v12751_v34 = vld [vmem:[#allocation177_spill] sm:$0xff] }
 0x57e   :  { %6926 = vmatpush3.bf16.msra.mxu0 %v8122_v26  ;;  %6913 = vmatprep.mubr.bf16.mxu0 %v12733_v45  ;;  %v12747_v26 = vld [vmem:[#allocation173_spill] sm:$0xff]  ;;  %v12752_v31 = vpack.c.bf16 %v12750_v13, %v12751_v34 }
 0x57f   :  { %6927 = vmatprep.subr.bf16.mxu0 %v8123_v3  ;;  %v12753_v45 = vld [vmem:[#allocation201_spill] sm:$0xff] }
 0x582   :  { %6928 = vmatpush3.bf16.msra.mxu0 %v8123_v3  ;;  %v12748_v3 = vld [vmem:[#allocation170_spill] sm:$0xff] }
 0x583   :  { %6929 = vmatprep.subr.bf16.mxu0 %v8124_v60  ;;  %v12749_v4 = vpack.c.bf16 %v12747_v26, %v12748_v3  ;;  %v8144_v26 = vld [vmem:[#allocation13 + $0x1b0] sm:$0xff]   ;;  %v12773_v3 = vpack.c.bf16 %v10538_v9, %v10529_v40  ;;  %v8149_v40 = vld [vmem:[#allocation13 + $0x1d8] sm:$0xff]  }
 0x584   :  { %v12780_v9 = vld [vmem:[#allocation224_spill] sm:$0xff] }
 0x585   :  { %6914 = vmatmul.mubr.bf16.gmra.mrb[12].mxu0 %v12735_v57  ;;  %v12756_v57 = vld [vmem:[#allocation208_spill] sm:$0xff] }
 0x586   :  { %6930 = vmatpush3.bf16.msra.mxu0 %v8124_v60  ;;  %6917 = vmatprep.mubr.bf16.mxu0 %v12736_v24  ;;  %v12754_v60 = vld [vmem:[#allocation183_spill] sm:$0xff]  ;;  %v12757_v24 = vld [vmem:[#allocation204_spill] sm:$0xff] }
 0x587   :  { %6931 = vmatprep.subr.bf16.mxu0 %v8125_v23 }
 0x58a   :  { %6932 = vmatpush3.bf16.msra.mxu0 %v8125_v23  ;;  %v12755_v23 = vpack.c.bf16 %v12753_v45, %v12754_v60  ;;  %v12784_v45 = vld [vmem:[#allocation241_spill] sm:$0xff] }
 0x58b   :  { %6933 = vmatprep.subr.bf16.mxu0 %v8126_v61 }
 0x58d   :  { %6918 = vmatmul.mubr.bf16.gmra.mrb[16].mxu0 %v12737_v1  ;;  %v12760_v1 = vld [vmem:[#allocation223_spill] sm:$0xff] }
 0x58e   :  { %6934 = vmatpush3.bf16.msra.mxu0 %v8126_v61  ;;  %6921 = vmatprep.mubr.bf16.mxu0 %v12738_v36  ;;  %v12758_v61 = vpack.c.bf16 %v12756_v57, %v12757_v24  ;;  %v12787_v57 = vpack.c.bf16 %v10590_v63, %v10582_v14  ;;  %v8152_v24 = vld [vmem:[#allocation13 + $0x1f0] sm:$0xff]   ;;  %v8155_v63 = vld [vmem:[#allocation13 + $0x208] sm:$0xff]   ;;  %v12793_v14 = vld [vmem:[#allocation165_spill] sm:$0xff] }
 0x58f   :  { %6935 = vmatprep.subr.bf16.mxu0 %v8127_v56 }
 0x592   :  { %6936 = vmatpush3.bf16.msra.mxu0 %v8127_v56  ;;  %v12759_v56 = vld [vmem:[#allocation238_spill] sm:$0xff] }
 0x593   :  { %6937 = vmatprep.subr.bf16.mxu0 %v8128_v15  ;;  %v12761_v36 = vpack.c.bf16 %v12759_v56, %v12760_v1  ;;  %v12788_v56 = vld [vmem:[#allocation243_spill] sm:$0xff] }
 0x594   :  { %v12789_v1 = vpack.c.bf16 %v10602_v43, %v12788_v56  ;;  %v8156_v43 = vld [vmem:[#allocation13 + $0x210] sm:$0xff]  }
 0x595   :  { %6922 = vmatmul.mubr.bf16.gmra.mrb[20].mxu0 %v12739_v5  ;;  %v12762_v5 = vld [vmem:[#allocation186_spill] sm:$0xff]  ;;  %v12830_v56 = vld [vmem:[#allocation211_spill] sm:$0xff] }
 0x596   :  { %6938 = vmatpush3.bf16.msra.mxu0 %v8128_v15  ;;  %6941 = vmatprep.mubr.bf16.mxu0 %v12740_v2  ;;  %v8138_v15 = vld [vmem:[#allocation13 + $0x180] sm:$0xff]   ;;  %v12763_v2 = vld [vmem:[#allocation180_spill] sm:$0xff] }
 0x597   :  { %6939 = vmatprep.subr.bf16.mxu0 %v8129_v11 }
 0x59a   :  { %6940 = vmatpush3.bf16.msra.mxu0 %v8129_v11  ;;  %v8139_v11 = vld [vmem:[#allocation13 + $0x188] sm:$0xff]  }
 0x59b   :  { %6957 = vmatprep.subr.bf16.mxu0 %v8130_v6 }
 0x59d   :  { %6942 = vmatmul.mubr.bf16.vlgmr.msra.gmra.mrb[8].mxu0 %v12741_v46  ;;  %v8140_v46 = vld [vmem:[#allocation13 + $0x190] sm:$0xff]  }
 0x59e   :  { %6958 = vmatpush3.bf16.msra.mxu0 %v8130_v6  ;;  %6945 = vmatprep.mubr.bf16.mxu0 %v12744_v16  ;;  %v12764_v6 = vpack.c.bf16 %v12762_v5, %v12763_v2  ;;  %v12767_v16 = vld [vmem:[#allocation239_spill] sm:$0xff]  ;;  %v12796_v2 = vld [vmem:[#allocation169_spill] sm:$0xff] }
 0x59f   :  { %6959 = vmatprep.subr.bf16.mxu0 %v8131_v19 }
 0x5a2   :  { %6960 = vmatpush3.bf16.msra.mxu0 %v8131_v19  ;;  %v12765_v19 = vpack.c.bf16 %v10476_v10, %v10472_v25  ;;  %v8143_v25 = vld [vmem:[#allocation13 + $0x1a8] sm:$0xff]   ;;  %v12770_v10 = vpack.c.bf16 %v10502_v33, %v10498_v38  ;;  %v8146_v33 = vld [vmem:[#allocation13 + $0x1c0] sm:$0xff]  }
 0x5a3   :  { %6961 = vmatprep.subr.bf16.mxu0 %v8132_v29  ;;  %v12775_v38 = vld [vmem:[#allocation226_spill] sm:$0xff] }
 0x5a5   :  { %6946 = vmatmul.mubr.bf16.gmra.mrb[12].mxu0 %v12746_v28  ;;  %v12771_v28 = vpack.c.bf16 %v10514_v58, %v10510_v21  ;;  %v8147_v58 = vld [vmem:[#allocation13 + $0x1c8] sm:$0xff]  }
 0x5a6   :  { %6962 = vmatpush3.bf16.msra.mxu0 %v8132_v29  ;;  %6949 = vmatprep.mubr.bf16.mxu0 %v12749_v4  ;;  %v12768_v29 = vpack.c.bf16 %v12766_v51, %v12767_v16  ;;  %v12774_v21 = vld [vmem:[#allocation227_spill] sm:$0xff]  ;;  %v12800_v51 = vld [vmem:[#allocation172_spill] sm:$0xff] }
 0x5a7   :  { %6963 = vmatprep.subr.bf16.mxu0 %v8133_v17  ;;  %v12776_v4 = vpack.c.bf16 %v12774_v21, %v12775_v38  ;;  %v8161_v21 = vld [vmem:[#allocation13 + $0x238] sm:$0xff]  }
 0x5a8   :  { %v12811_v38 = vld [vmem:[#allocation213_spill] sm:$0xff] }
 0x5aa   :  { %6964 = vmatpush3.bf16.msra.mxu0 %v8133_v17  ;;  %v12769_v17 = vpack.c.bf16 %v10494_v30, %v10488_v20  ;;  %v8145_v30 = vld [vmem:[#allocation13 + $0x1b8] sm:$0xff]   ;;  %v12772_v20 = vpack.c.bf16 %v12675_v62, %v10525_v55  ;;  %v8148_v55 = vld [vmem:[#allocation13 + $0x1d0] sm:$0xff]  }
 0x5ab   :  { %6965 = vmatprep.subr.bf16.mxu0 %v8134_v32  ;;  %v12781_v62 = vld [vmem:[#allocation209_spill] sm:$0xff] }
 0x5ac   :  { %v12782_v34 = vpack.c.bf16 %v12780_v9, %v12781_v62  ;;  %v12818_v9 = vld [vmem:[#allocation191_spill] sm:$0xff]  ;;  %v12819_v62 = vld [vmem:[#allocation188_spill] sm:$0xff] }
 0x5ad   :  { %6950 = vmatmul.mubr.bf16.gmra.mrb[16].mxu0 %v12752_v31  ;;  %v12783_v31 = vld [vmem:[#allocation242_spill] sm:$0xff] }
 0x5ae   :  { %6966 = vmatpush3.bf16.msra.mxu0 %v8134_v32  ;;  %6953 = vmatprep.mubr.bf16.mxu0 %v12755_v23  ;;  %v12777_v32 = vld [vmem:[#allocation202_spill] sm:$0xff]  ;;  %v12785_v60 = vpack.c.bf16 %v12783_v31, %v12784_v45  ;;  %v12821_v31 = vld [vmem:[#allocation192_spill] sm:$0xff]  ;;  %v12822_v45 = vld [vmem:[#allocation193_spill] sm:$0xff] }
 0x5af   :  { %6967 = vmatprep.subr.bf16.mxu0 %v8135_v54  ;;  %v8150_v23 = vld [vmem:[#allocation13 + $0x1e0] sm:$0xff]  }
 0x5b2   :  { %6968 = vmatpush3.bf16.msra.mxu0 %v8135_v54  ;;  %v12778_v54 = vld [vmem:[#allocation196_spill] sm:$0xff] }
 0x5b3   :  { %6969 = vmatprep.subr.bf16.mxu0 %v8136_v8  ;;  %v12779_v13 = vpack.c.bf16 %v12777_v32, %v12778_v54  ;;  %v12814_v54 = vld [vmem:[#allocation178_spill] sm:$0xff] }
 0x5b5   :  { %6954 = vmatmul.mubr.bf16.gmra.mrb[20].mxu0 %v12758_v61  ;;  %v8153_v61 = vld [vmem:[#allocation13 + $0x1f8] sm:$0xff]  }
 0x5b6   :  { %6970 = vmatpush3.bf16.msra.mxu0 %v8136_v8  ;;  %6973 = vmatprep.mubr.bf16.mxu0 %v12761_v36  ;;  %v8151_v8 = vld [vmem:[#allocation13 + $0x1e8] sm:$0xff]   ;;  %v12790_v36 = vld [vmem:[#allocation161_spill] sm:$0xff] }
 0x5b7   :  { %6971 = vmatprep.subr.bf16.mxu0 %v8137_v50 }
 0x5ba   :  { %6972 = vmatpush3.bf16.msra.mxu0 %v8137_v50  ;;  %v12786_v50 = vpack.c.bf16 %v10578_v18, %v10574_v59  ;;  %v8154_v18 = vld [vmem:[#allocation13 + $0x200] sm:$0xff]   ;;  %v12794_v59 = vld [vmem:[#allocation163_spill] sm:$0xff] }
 0x5bb   :  { %6989 = vmatprep.subr.bf16.mxu0 %v8138_v15  ;;  %v12795_v5 = vpack.c.bf16 %v12793_v14, %v12794_v59  ;;  %v12837_v14 = vld [vmem:[#allocation221_spill] sm:$0xff] }
 0x5bd   :  { %6974 = vmatmul.mubr.bf16.vlgmr.msra.gmra.mrb[8].mxu0 %v12764_v6  ;;  %v12797_v6 = vld [vmem:[#allocation167_spill] sm:$0xff] }
 0x5be   :  { %6990 = vmatpush3.bf16.msra.mxu0 %v8138_v15  ;;  %6977 = vmatprep.mubr.bf16.mxu0 %v12765_v19  ;;  %v12791_v15 = vld [vmem:[#allocation158_spill] sm:$0xff]  ;;  %v12798_v19 = vpack.c.bf16 %v12796_v2, %v12797_v6  ;;  %v3351_v6 = vld [vmem:[#allocation16 + $0x8] sm:$0xff] }
 0x5bf   :  { %6991 = vmatprep.subr.bf16.mxu0 %v8139_v11  ;;  %v3350_v2 = vld [vmem:[#allocation16] sm:$0xff] }
 0x5c2   :  { %6992 = vmatpush3.bf16.msra.mxu0 %v8139_v11  ;;  %v12792_v11 = vpack.c.bf16 %v12790_v36, %v12791_v15  ;;  %v12833_v15 = vld [vmem:[#allocation215_spill] sm:$0xff] }
 0x5c3   :  { %6993 = vmatprep.subr.bf16.mxu0 %v8140_v46 }
 0x5c5   :  { %6978 = vmatmul.mubr.bf16.gmra.mrb[12].mxu0 %v12768_v29  ;;  %v12802_v29 = vld [vmem:[#allocation181_spill] sm:$0xff] }
 0x5c6   :  { %6994 = vmatpush3.bf16.msra.mxu0 %v8140_v46  ;;  %6981 = vmatprep.mubr.bf16.mxu0 %v12769_v17  ;;  %v8157_v46 = vld [vmem:[#allocation13 + $0x218] sm:$0xff]   ;;  %v12803_v17 = vld [vmem:[#allocation179_spill] sm:$0xff] }
 0x5c7   :  { %6995 = vmatprep.subr.bf16.mxu0 %v8141_v48 }
 0x5ca   :  { %6996 = vmatpush3.bf16.msra.mxu0 %v8141_v48  ;;  %v12799_v48 = vld [vmem:[#allocation176_spill] sm:$0xff] }
 0x5cb   :  { %6997 = vmatprep.subr.bf16.mxu0 %v8142_v37  ;;  %v12801_v16 = vpack.c.bf16 %v12799_v48, %v12800_v51  ;;  %v3354_v51 = vld [vmem:[#allocation16 + $0x20] sm:$0xff] }
 0x5cd   :  { %6982 = vmatmul.mubr.bf16.gmra.mrb[16].mxu0 %v12770_v10  ;;  %v8159_v10 = vld [vmem:[#allocation13 + $0x228] sm:$0xff]  }
 0x5ce   :  { %6998 = vmatpush3.bf16.msra.mxu0 %v8142_v37  ;;  %6985 = vmatprep.mubr.bf16.mxu0 %v12771_v28  ;;  %v12804_v37 = vpack.c.bf16 %v12802_v29, %v12803_v17  ;;  %v12805_v28 = vld [vmem:[#allocation187_spill] sm:$0xff]  ;;  %v3356_v17 = vld [vmem:[#allocation16 + $0x30] sm:$0xff] }
 0x5cf   :  { %6999 = vmatprep.subr.bf16.mxu0 %v8143_v25 }
 0x5d2   :  { %7000 = vmatpush3.bf16.msra.mxu0 %v8143_v25  ;;  %v8158_v25 = vld [vmem:[#allocation13 + $0x220] sm:$0xff]  }
 0x5d3   :  { %7001 = vmatprep.subr.bf16.mxu0 %v8144_v26 }
 0x5d5   :  { %6986 = vmatmul.mubr.bf16.gmra.mrb[20].mxu0 %v12772_v20  ;;  %v12808_v20 = vld [vmem:[#allocation210_spill] sm:$0xff] }
 0x5d6   :  { %7002 = vmatpush3.bf16.msra.mxu0 %v8144_v26  ;;  %7005 = vmatprep.mubr.bf16.mxu0 %v12773_v3  ;;  %v12806_v26 = vld [vmem:[#allocation185_spill] sm:$0xff]  ;;  %v12809_v3 = vld [vmem:[#allocation203_spill] sm:$0xff] }
 0x5d7   :  { %7003 = vmatprep.subr.bf16.mxu0 %v8145_v30 }
 0x5da   :  { %7004 = vmatpush3.bf16.msra.mxu0 %v8145_v30  ;;  %v12807_v30 = vpack.c.bf16 %v12805_v28, %v12806_v26  ;;  %v3359_v28 = vld [vmem:[#allocation16 + $0x48] sm:$0xff] }
 0x5db   :  { %7021 = vmatprep.subr.bf16.mxu0 %v8146_v33 }
 0x5dd   :  { %7006 = vmatmul.mubr.bf16.vlgmr.msra.gmra.mrb[8].mxu0 %v12776_v4  ;;  %v12812_v4 = vld [vmem:[#allocation212_spill] sm:$0xff] }
 0x5de   :  { %7022 = vmatpush3.bf16.msra.mxu0 %v8146_v33  ;;  %7009 = vmatprep.mubr.bf16.mxu0 %v12779_v13  ;;  %v12810_v33 = vpack.c.bf16 %v12808_v20, %v12809_v3  ;;  %v12813_v32 = vpack.c.bf16 %v12811_v38, %v12812_v4  ;;  %v12815_v13 = vld [vmem:[#allocation168_spill] sm:$0xff]  ;;  %v3361_v20 = vld [vmem:[#allocation16 + $0x58] sm:$0xff]  ;;  %v3362_v38 = vld [vmem:[#allocation16 + $0x60] sm:$0xff] }
 0x5df   :  { %7023 = vmatprep.subr.bf16.mxu0 %v8147_v58  ;;  %v3363_v4 = vld [vmem:[#allocation16 + $0x68] sm:$0xff] }
 0x5e2   :  { %7024 = vmatpush3.bf16.msra.mxu0 %v8147_v58  ;;  %v8160_v58 = vld [vmem:[#allocation13 + $0x230] sm:$0xff]  }
 0x5e3   :  { %7025 = vmatprep.subr.bf16.mxu0 %v8148_v55 }
 0x5e5   :  { %7010 = vmatmul.mubr.bf16.gmra.mrb[12].mxu0 %v12782_v34  ;;  %v12820_v34 = vpack.c.bf16 %v12818_v9, %v12819_v62  ;;  %v3444_v9 = vld [vmem:[#allocation17 + $0x20] sm:$0xff]  ;;  %v3445_v62 = vld [vmem:[#allocation17 + $0x28] sm:$0xff] }
 0x5e6   :  { %7026 = vmatpush3.bf16.msra.mxu0 %v8148_v55  ;;  %7013 = vmatprep.mubr.bf16.mxu0 %v12785_v60  ;;  %v12816_v55 = vpack.c.bf16 %v12814_v54, %v12815_v13  ;;  %v12823_v60 = vpack.c.bf16 %v12821_v31, %v12822_v45  ;;  %v3443_v54 = vld [vmem:[#allocation17 + $0x18] sm:$0xff]  ;;  %v10833_v45 = vpack.c.bf16 %v3445_v62, %v3444_v9 }
 0x5e7   :  { %7027 = vmatprep.subr.bf16.mxu0 %v8149_v40  ;;  %v3365_v31 = vld [vmem:[#allocation16 + $0x78] sm:$0xff] }
 0x5ea   :  { %7028 = vmatpush3.bf16.msra.mxu0 %v8149_v40  ;;  %v12817_v40 = vmov 0.0|0.0  }
 0x5eb   :  { %7029 = vmatprep.subr.bf16.mxu0 %v8150_v23 }
 0x5ed   :  { %7014 = vmatmul.mubr.bf16.gmra.mrb[16].mxu0 %v12786_v50 }
 0x5ee   :  { %7030 = vmatpush3.bf16.msra.mxu0 %v8150_v23  ;;  %7017 = vmatprep.mubr.bf16.mxu0 %v12787_v57  ;;  %v12824_v23 = vld [vmem:[#allocation194_spill] sm:$0xff]  ;;  %v12827_v57 = vld [vmem:[#allocation199_spill] sm:$0xff] }
 0x5ef   :  { %7031 = vmatprep.subr.bf16.mxu0 %v8151_v8 }
 0x5f2   :  { %7032 = vmatpush3.bf16.msra.mxu0 %v8151_v8  ;;  %v12825_v8 = vld [vmem:[#allocation195_spill] sm:$0xff] }
 0x5f3   :  { %7033 = vmatprep.subr.bf16.mxu0 %v8152_v24  ;;  %v12826_v50 = vpack.c.bf16 %v12824_v23, %v12825_v8  ;;  %v3446_v23 = vld [vmem:[#allocation17 + $0x30] sm:$0xff]  ;;  %v3447_v8 = vld [vmem:[#allocation17 + $0x38] sm:$0xff] }
 0x5f5   :  { %7018 = vmatmul.mubr.bf16.gmra.mrb[20].mxu0 %v12789_v1  ;;  %v12831_v1 = vld [vmem:[#allocation205_spill] sm:$0xff] }
 0x5f6   :  { %7034 = vmatpush3.bf16.msra.mxu0 %v8152_v24  ;;  %7037 = vmatprep.mubr.bf16.mxu0 %v12792_v11  ;;  %v12828_v24 = vld [vmem:[#allocation200_spill] sm:$0xff]  ;;  %v12832_v36 = vpack.c.bf16 %v12830_v56, %v12831_v1  ;;  %v12834_v11 = vld [vmem:[#allocation214_spill] sm:$0xff]  ;;  %v3451_v1 = vld [vmem:[#allocation17 + $0x58] sm:$0xff] }
 0x5f7   :  { %7035 = vmatprep.subr.bf16.mxu0 %v8153_v61  ;;  %v3450_v56 = vld [vmem:[#allocation17 + $0x50] sm:$0xff] }
 0x5fa   :  { %7036 = vmatpush3.bf16.msra.mxu0 %v8153_v61  ;;  %v12829_v61 = vpack.c.bf16 %v12827_v57, %v12828_v24  ;;  %v3448_v57 = vld [vmem:[#allocation17 + $0x40] sm:$0xff]  ;;  %v3449_v24 = vld [vmem:[#allocation17 + $0x48] sm:$0xff] }
 0x5fb   :  { %7053 = vmatprep.subr.bf16.mxu0 %v8154_v18 }
 0x5fd   :  { %7038 = vmatmul.mubr.bf16.vlgmr.msra.gmra.mrb[8].mxu0 %v12795_v5  ;;  %v12839_v5 = vmov 0.0  }
 0x5fe   :  { %7054 = vmatpush3.bf16.msra.mxu0 %v8154_v18  ;;  %7041 = vmatprep.mubr.bf16.mxu0 %v12798_v19  ;;  %v12835_v18 = vpack.c.bf16 %v12833_v15, %v12834_v11  ;;  %v3352_v19 = vld [vmem:[#allocation16 + $0x10] sm:$0xff]  ;;  %v3452_v15 = vld [vmem:[#allocation17 + $0x60] sm:$0xff]  ;;  %v3453_v11 = vld [vmem:[#allocation17 + $0x68] sm:$0xff] }
 0x5ff   :  { %7055 = vmatprep.subr.bf16.mxu0 %v8155_v63 }
 0x602   :  { %7056 = vmatpush3.bf16.msra.mxu0 %v8155_v63  ;;  %v12836_v63 = vld [vmem:[#allocation220_spill] sm:$0xff] }
 0x603   :  { %7057 = vmatprep.subr.bf16.mxu0 %v8156_v43  ;;  %v12838_v59 = vpack.c.bf16 %v12836_v63, %v12837_v14  ;;  %v3454_v63 = vld [vmem:[#allocation17 + $0x70] sm:$0xff]  ;;  %v3455_v14 = vld [vmem:[#allocation17 + $0x78] sm:$0xff] }
 0x605   :  { %7042 = vmatmul.mubr.bf16.gmra.mrb[12].mxu0 %v12801_v16  ;;  %v3355_v16 = vld [vmem:[#allocation16 + $0x28] sm:$0xff] }
 0x606   :  { %7058 = vmatpush3.bf16.msra.mxu0 %v8156_v43  ;;  %7045 = vmatprep.mubr.bf16.mxu0 %v12804_v37  ;;  %v10800_v43 = vpack.c.bf16 %v3351_v6, %v3350_v2  ;;  %v10807_v29 = vpack.c.bf16 %v3355_v16, %v3354_v51  ;;  %v3357_v37 = vld [vmem:[#allocation16 + $0x38] sm:$0xff] }
 0x607   :  { %7059 = vmatprep.subr.bf16.mxu0 %v8157_v46  ;;  %v6132_v6 = vld [vmem:[#allocation14] ss:$0 sm:$0xff] }
 0x60a   :  { %7060 = vmatpush3.bf16.msra.mxu0 %v8157_v46  ;;  %v3353_v46 = vld [vmem:[#allocation16 + $0x18] sm:$0xff] }
 0x60b   :  { %7061 = vmatprep.subr.bf16.mxu0 %v8158_v25  ;;  %v10803_v48 = vpack.c.bf16 %v3353_v46, %v3352_v19 }
 0x60d   :  { %7046 = vmatmul.mubr.bf16.gmra.mrb[16].mxu0 %v12807_v30  ;;  %v3360_v30 = vld [vmem:[#allocation16 + $0x50] sm:$0xff] }
 0x60e   :  { %7062 = vmatpush3.bf16.msra.mxu0 %v8158_v25  ;;  %7049 = vmatprep.mubr.bf16.mxu0 %v12810_v33  ;;  %v3358_v25 = vld [vmem:[#allocation16 + $0x40] sm:$0xff]  ;;  %v10819_v3 = vpack.c.bf16 %v3361_v20, %v3360_v30 }
 0x60f   :  { %7063 = vmatprep.subr.bf16.mxu0 %v8159_v10  ;;  %v10815_v26 = vpack.c.bf16 %v3359_v28, %v3358_v25  ;;  %v3440_v33 = vld [vmem:[#allocation17] sm:$0xff] }
 0x612   :  { %7064 = vmatpush3.bf16.msra.mxu0 %v8159_v10  ;;  %v10812_v10 = vpack.c.bf16 %v3357_v37, %v3356_v17 }
 0x613   :  { %7065 = vmatprep.subr.bf16.mxu0 %v8160_v58 }
 0x615   :  { %7050 = vmatmul.mubr.bf16.gmra.mrb[20].mxu0 %v12813_v32 }
 0x616   :  { %7066 = vmatpush3.bf16.msra.mxu0 %v8160_v58  ;;  %7069 = vmatprep.mubr.bf16.mxu0 %v12816_v55  ;;  %v3441_v58 = vld [vmem:[#allocation17 + $0x8] sm:$0xff]  ;;  %v10828_v55 = vpack.c.bf16 %v3363_v4, %v3362_v38 }
 0x617   :  { %7067 = vmatprep.subr.bf16.mxu0 %v8161_v21  ;;  %v10822_v32 = vpack.c.bf16 %v3441_v58, %v3440_v33 }
 0x619   :  { %7667 = vmatpush3.bf16.msra.mxu1 %v10822_v32 }
 0x61a   :  { %7068 = vmatpush3.bf16.msra.mxu0 %v8161_v21  ;;  %v3442_v21 = vld [vmem:[#allocation17 + $0x10] sm:$0xff]  ;;  %7668 = vmatprep.subr.bf16.mxu1 %v12817_v40 }
 0x61b   :  { %7641 = vmatprep.subr.bf16.mxu0 %v12817_v40  ;;  %v10825_v13 = vpack.c.bf16 %v3443_v54, %v3442_v21 }
 0x61d   :  { %7070 = vmatmul.mubr.bf16.vlgmr.msra.gmra.mrb[8].mxu0 %v12820_v34  ;;  %v3364_v34 = vld [vmem:[#allocation16 + $0x70] sm:$0xff]  ;;  %7670 = vmatpush3.bf16.msra.mxu1 %v10825_v13 }
 0x61e   :  { %7073 = vmatprep.mubr.bf16.mxu0 %v12823_v60  ;;  %7643 = vmatpush3.bf16.msra.mxu0 %v10800_v43  ;;  %v10836_v60 = vpack.c.bf16 %v3365_v31, %v3364_v34 }
 0x61f   :  { %7644 = vmatprep.subr.bf16.mxu0 %v12817_v40  ;;  %7671 = vmatprep.subr.bf16.mxu1 %v12817_v40 }
 0x621   :  { %7673 = vmatpush3.bf16.msra.mxu1 %v10833_v45 }
 0x622   :  { %7646 = vmatpush3.bf16.msra.mxu0 %v10803_v48  ;;  %7674 = vmatprep.subr.bf16.mxu1 %v12817_v40 }
 0x623   :  { %7647 = vmatprep.subr.bf16.mxu0 %v12817_v40 }
 0x625   :  { %7074 = vmatmul.mubr.bf16.gmra.mrb[12].mxu0 %v12826_v50  ;;  %v10841_v50 = vpack.c.bf16 %v3447_v8, %v3446_v23 }
 0x626   :  { %7077 = vmatprep.mubr.bf16.mxu0 %v12829_v61  ;;  %7649 = vmatpush3.bf16.msra.mxu0 %v10807_v29  ;;  %v10846_v61 = vpack.c.bf16 %v3449_v24, %v3448_v57 }
 0x627   :  { %7650 = vmatprep.subr.bf16.mxu0 %v12817_v40  ;;  %7676 = vmatpush3.bf16.msra.mxu1 %v10841_v50 }
 0x628   :  { %7677 = vmatprep.subr.bf16.mxu1 %v12817_v40 }
 0x62a   :  { %7652 = vmatpush3.bf16.msra.mxu0 %v10812_v10 }
 0x62b   :  { %7653 = vmatprep.subr.bf16.mxu0 %v12817_v40  ;;  %7679 = vmatpush3.bf16.msra.mxu1 %v10846_v61 }
 0x62c   :  { %7680 = vmatprep.subr.bf16.mxu1 %v12817_v40 }
 0x62d   :  { %7078 = vmatmul.mubr.bf16.gmra.mrb[16].mxu0 %v12832_v36  ;;  %v10850_v36 = vpack.c.bf16 %v3451_v1, %v3450_v56 }
 0x62e   :  { %7081 = vmatprep.mubr.bf16.mxu0 %v12835_v18  ;;  %7655 = vmatpush3.bf16.msra.mxu0 %v10815_v26  ;;  %v10854_v18 = vpack.c.bf16 %v3453_v11, %v3452_v15 }
 0x62f   :  { %7656 = vmatprep.subr.bf16.mxu0 %v12817_v40  ;;  %7682 = vmatpush3.bf16.msra.mxu1 %v10850_v36 }
 0x630   :  { %7683 = vmatprep.subr.bf16.mxu1 %v12817_v40 }
 0x632   :  { %7658 = vmatpush3.bf16.msra.mxu0 %v10819_v3 }
 0x633   :  { %7659 = vmatprep.subr.bf16.mxu0 %v12817_v40  ;;  %7685 = vmatpush3.bf16.msra.mxu1 %v10854_v18 }
 0x634   :  { %7686 = vmatprep.subr.bf16.mxu1 %v12817_v40 }
 0x635   :  { %7082 = vmatmul.mubr.bf16.gmra.mrb[20].mxu0 %v12838_v59  ;;  %v10858_v59 = vpack.c.bf16 %v3455_v14, %v3454_v63 }
 0x636   :  { %7117 = vmatprep.mubr.msk.f32.mxu0 %vm8821_vm0, %v12839_v5  ;;  %7661 = vmatpush3.bf16.msra.mxu0 %v10828_v55 }
 0x637   :  { %7662 = vmatprep.subr.bf16.mxu0 %v12817_v40  ;;  %7688 = vmatpush3.bf16.msra.mxu1 %v10858_v59 }
 0x638   :  { %7689 = vmatprep.subr.bf16.mxu1 %v12817_v40 }
 0x63a   :  { %7664 = vmatpush3.bf16.msra.mxu0 %v10836_v60 }
 0x6f0   :  { %v7071_v2 = vpop.f32.mrb[8].mxu0 }
 0x6f1   :  { %v3222_v19 = vpop.f32.mrb[9].mxu0  ;;  %v10867_v37 = vadd.f32 %v7071_v2, %v6132_v6 }
 0x6f2   :  { %v7072_v46 = vpop.f32.mrb[10].mxu0  ;;  %v10863_v16 = vadd.f32 %v6132_v6, %v3222_v19 }
 0x6f3   :  { %v3225_v51 = vpop.f32.mrb[11].mxu0  ;;  %v10871_v28 = vadd.f32 %v7072_v46, %v6132_v6 }
 0x6f4   :  { %v10865_v17 = vadd.f32 %v6132_v6, %v3225_v51 }
 0x6f6   :  { %v3324_v25 = vadd.f32 %v10865_v17, %v10863_v16 }
 0x6f8   :  { %v3325_v30 = vadd.f32 %v3324_v25, %v10867_v37  ;;  %v7075_v20 = vpop.f32.mrb[12].mxu0 }
 0x6f9   :  { %v3238_v33 = vpop.f32.mrb[13].mxu0  ;;  %v10881_v34 = vadd.f32 %v7075_v20, %v6132_v6 }
 0x6fa   :  { %v10874_v58 = vadd.f32 %v6132_v6, %v3238_v33  ;;  %v3326_v21 = vadd.f32 %v3325_v30, %v10871_v28  ;;  %v7076_v38 = vpop.f32.mrb[14].mxu0 }
 0x6fb   :  { %v3241_v4 = vpop.f32.mrb[15].mxu0  ;;  %v10884_v56 = vadd.f32 %v7076_v38, %v6132_v6 }
 0x6fc   :  { %v3327_v54 = vadd.f32 %v3326_v21, %v10874_v58  ;;  %v10878_v9 = vadd.f32 %v6132_v6, %v3241_v4 }
 0x6fe   :  { %v3328_v62 = vadd.f32 %v3327_v54, %v10878_v9 }
 0x700   :  { %v7079_v31 = vpop.f32.mrb[16].mxu0  ;;  %v3329_v8 = vadd.f32 %v3328_v62, %v10881_v34 }
 0x701   :  { %v3254_v23 = vpop.f32.mrb[17].mxu0  ;;  %v10891_v63 = vadd.f32 %v7079_v31, %v6132_v6 }
 0x702   :  { %v7080_v57 = vpop.f32.mrb[18].mxu0  ;;  %v10886_v1 = vadd.f32 %v6132_v6, %v3254_v23  ;;  %v3330_v11 = vadd.f32 %v3329_v8, %v10884_v56 }
 0x703   :  { %v3257_v24 = vpop.f32.mrb[19].mxu0  ;;  %v10895_v2 = vadd.f32 %v7080_v57, %v6132_v6 }
 0x704   :  { %v10888_v15 = vadd.f32 %v6132_v6, %v3257_v24  ;;  %v3331_v25 = vrot.slane %v3330_v11, 4 }
 0x706   :  { %v3337_v14 = vadd.f32 %v10888_v15, %v10886_v1  ;;  %v3332_v54 = vadd.f32 %v3331_v25, %v3330_v11 }
 0x708   :  { %v3338_v19 = vadd.f32 %v3337_v14, %v10891_v63  ;;  %v7083_v46 = vpop.f32.mrb[20].mxu0  ;;  %v3333_v57 = vrot.slane %v3332_v54, 2 }
 0x709   :  { %v3270_v51 = vpop.f32.mrb[21].mxu0  ;;  %v10904_v62 = vadd.f32 %v7083_v46, %v6132_v6 }
 0x70a   :  { %v10898_v30 = vadd.f32 %v6132_v6, %v3270_v51  ;;  %v3339_v20 = vadd.f32 %v3338_v19, %v10895_v2  ;;  %v7084_v33 = vpop.f32.mrb[22].mxu0  ;;  %v3334_v19 = vadd.f32 %v3333_v57, %v3332_v54 }
 0x70b   :  { %v3273_v21 = vpop.f32.mrb[23].mxu0  ;;  %v10907_v23 = vadd.f32 %v7084_v33, %v6132_v6 }
 0x70c   :  { %v3340_v38 = vadd.f32 %v3339_v20, %v10898_v30  ;;  %v10902_v4 = vadd.f32 %v6132_v6, %v3273_v21  ;;  %v3335_v20 = vrot.slane %v3334_v19, 1 }
 0x70e   :  { %v3341_v31 = vadd.f32 %v3340_v38, %v10902_v4  ;;  %v3336_v44 = vadd.f32 %v3335_v20, %v3334_v19 }
 0x710   :  { %v3342_v8 = vadd.f32 %v3341_v31, %v10904_v62 }
 0x712   :  { %v3343_v24 = vadd.f32 %v3342_v8, %v10907_v23 }
 0x714   :  { %v3344_v14 = vrot.slane %v3343_v24, 4 }
 0x716   :  { %v3345_v51 = vadd.f32 %v3344_v14, %v3343_v24 }
 0x718   :  { %v3346_v12 = vrot.slane %v3345_v51, 2 }
 0x71a   :  { %v3347_v41 = vadd.f32 %v3346_v12, %v3345_v51 }
 0x71c   :  { %v3348_v21 = vrot.slane %v3347_v41, 1 }
 0x71e   :  { %v3349_v11 = vadd.f32 %v3348_v21, %v3347_v41  ;;  %v12840_v41 = vld [vmem:[#allocation40_spill] sm:$0xff] }
 0x720   :  { %v3368_v46 = vsel %vm318_vm1, %v3349_v11, %v3336_v44 }
 0x721   :  { %7118 = vmatmul.mubr.f32.vlgmr.msra.gmra.mrb[24].mxu0 %v3368_v46 }
 0x7f4   :  { %v3436_v25 = vpop.f32.mrb[24].mxu0 }
 0x7f5   :  { %v7119_v6 = vpop.f32.mrb[25].mxu0  ;;  %7153 = vmatmul.mubr.f32.vlgmr.msra.gmra.mrb[0].mxu1 %v3436_v25 }
 0x7f6   :  { %7691 = vmatpush3.bf16.msra.mxu1 %v10800_v43  ;;  %7187 = vmatprep.mubr.msk.f32.mxu1 %vm8821_vm0, %v12839_v5 }
 0x7f7   :  { %7692 = vmatprep.subr.bf16.mxu1 %v12817_v40 }
 0x7fa   :  { %7694 = vmatpush3.bf16.msra.mxu1 %v10803_v48 }
 0x7fb   :  { %7695 = vmatprep.subr.bf16.mxu1 %v12817_v40 }
 0x7fe   :  { %7697 = vmatpush3.bf16.msra.mxu1 %v10807_v29 }
 0x7ff   :  { %7698 = vmatprep.subr.bf16.mxu1 %v12817_v40 }
 0x802   :  { %7700 = vmatpush3.bf16.msra.mxu1 %v10812_v10 }
 0x803   :  { %7701 = vmatprep.subr.bf16.mxu1 %v12817_v40 }
 0x806   :  { %7703 = vmatpush3.bf16.msra.mxu1 %v10815_v26  ;;  %v12841_v26 = vld [vmem:[#allocation41_spill] sm:$0xff] }
 0x807   :  { %7704 = vmatprep.subr.bf16.mxu1 %v12817_v40 }
 0x80a   :  { %7706 = vmatpush3.bf16.msra.mxu1 %v10819_v3 }
 0x80b   :  { %7707 = vmatprep.subr.bf16.mxu1 %v12817_v40 }
 0x80e   :  { %7709 = vmatpush3.bf16.msra.mxu1 %v10828_v55 }
 0x80f   :  { %7710 = vmatprep.subr.bf16.mxu1 %v12817_v40 }
 0x812   :  { %7712 = vmatpush3.bf16.msra.mxu1 %v10836_v60 }
 0x813   :  { %7713 = vmatprep.subr.bf16.mxu1 %v12817_v40 }
 0x8c8   :  { %v3522_v44 = vpop.f32.mrb[0].mxu1 }
 0x8c9   :  { %v3533_v12 = vrot.slane %v3522_v44, %v12840_v41  ;;  %v7154_v43 = vpop.f32.mrb[1].mxu1 }
 0x8cb   :  { %v3534_v48 = vcombine.high %v3533_v12, %v3533_v12  ;;  %v3541_v29 = vrot.slane %v3533_v12, %v12840_v41 }
 0x8cd   :  { %v3548_v10 = vrot.slane %v3534_v48, %v12840_v41  ;;  %v3552_v3 = vrot.slane %v3541_v29, %v12841_v26 }
 0x8cf   :  { %v3556_v33 = vrot.slane %v3548_v10, %v12841_v26  ;;  %v10936_v55 = vsub.f32 %v10863_v16, %v3552_v3  ;;  %v10939_v60 = vsub.f32 %v10865_v17, %v3552_v3  ;;  %v10948_v31 = vsub.f32 %v10867_v37, %v3552_v3 }
 0x8d0   :  { %v10958_v17 = vsub.f32 %v10871_v28, %v3552_v3  ;;  %v10978_v51 = vsub.f32 %v10878_v9, %v3552_v3  ;;  %v10988_v46 = vsub.f32 %v10881_v34, %v3552_v3  ;;  %v10998_v12 = vsub.f32 %v10884_v56, %v3552_v3 }
 0x8d1   :  { %v10942_v38 = vsub.f32 %v10886_v1, %v3556_v33  ;;  %v10945_v54 = vsub.f32 %v10888_v15, %v3556_v33  ;;  %v10951_v8 = vsub.f32 %v10891_v63, %v3556_v33  ;;  %v3575_v57 = vmul.f32 %v10936_v55, %v10936_v55 }
 0x8d2   :  { %v3576_v16 = vmul.f32 %v10939_v60, %v10939_v60  ;;  %v10961_v1 = vsub.f32 %v10895_v2, %v3556_v33  ;;  %v10968_v63 = vsub.f32 %v10874_v58, %v3552_v3  ;;  %v10971_v24 = vsub.f32 %v10898_v30, %v3556_v33 }
 0x8d3   :  { %v3583_v15 = vmul.f32 %v10942_v38, %v10942_v38  ;;  %v3584_v37 = vmul.f32 %v10945_v54, %v10945_v54  ;;  %v3577_v14 = vmul.f32 %v10948_v31, %v10948_v31  ;;  %v3585_v28 = vmul.f32 %v10951_v8, %v10951_v8 }
 0x8d4   :  { %v3591_v2 = vadd.f32 %v3576_v16, %v3575_v57  ;;  %v10981_v20 = vsub.f32 %v10902_v4, %v3556_v33  ;;  %v3578_v58 = vmul.f32 %v10958_v17, %v10958_v17  ;;  %v3586_v30 = vmul.f32 %v10961_v1, %v10961_v1 }
 0x8d5   :  { %v3604_v19 = vadd.f32 %v3584_v37, %v3583_v15  ;;  %v10991_v25 = vsub.f32 %v10904_v62, %v3556_v33  ;;  %v3579_v9 = vmul.f32 %v10968_v63, %v10968_v63  ;;  %v3587_v4 = vmul.f32 %v10971_v24, %v10971_v24 }
 0x8d6   :  { %v3592_v21 = vadd.f32 %v3591_v2, %v3577_v14  ;;  %v11001_v43 = vsub.f32 %v10907_v23, %v3556_v33  ;;  %v3580_v34 = vmul.f32 %v10978_v51, %v10978_v51  ;;  %v3588_v62 = vmul.f32 %v10981_v20, %v10981_v20 }
 0x8d7   :  { %v3605_v11 = vadd.f32 %v3604_v19, %v3585_v28  ;;  %v3581_v10 = vmul.f32 %v10988_v46, %v10988_v46  ;;  %v3589_v57 = vmul.f32 %v10991_v25, %v10991_v25  ;;  %v3582_v23 = vmul.f32 %v10998_v12, %v10998_v12 }
 0x8d8   :  { %v3593_v6 = vadd.f32 %v3592_v21, %v3578_v58  ;;  %v3590_v3 = vmul.f32 %v11001_v43, %v11001_v43 }
 0x8d9   :  { %v3606_v44 = vadd.f32 %v3605_v11, %v3586_v30 }
 0x8da   :  { %v3594_v48 = vadd.f32 %v3593_v6, %v3579_v9 }
 0x8db   :  { %v3607_v29 = vadd.f32 %v3606_v44, %v3587_v4 }
 0x8dc   :  { %v3595_v16 = vadd.f32 %v3594_v48, %v3580_v34  ;;  %v11033_v48 = vld [vmem:[#allocation22] sm:$0xff]  }
 0x8dd   :  { %v3608_v56 = vadd.f32 %v3607_v29, %v3588_v62 }
 0x8de   :  { %v3596_v33 = vadd.f32 %v3595_v16, %v3581_v10 }
 0x8df   :  { %v3609_v15 = vadd.f32 %v3608_v56, %v3589_v57 }
 0x8e0   :  { %v3597_v37 = vadd.f32 %v3596_v33, %v3582_v23 }
 0x8e1   :  { %v3610_v14 = vadd.f32 %v3609_v15, %v3590_v3 }
 0x8e2   :  { %v3598_v28 = vrot.slane %v3597_v37, 4 }
 0x8e3   :  { %v3611_v2 = vrot.slane %v3610_v14, 4 }
 0x8e4   :  { %v3599_v19 = vadd.f32 %v3598_v28, %v3597_v37  ;;  %v11040_v37 = vld [vmem:[#allocation19] ss:$0 sm:$0xff] }
 0x8e5   :  { %v3612_v58 = vadd.f32 %v3611_v2, %v3610_v14 }
 0x8e6   :  { %v3600_v30 = vrot.slane %v3599_v19, 2 }
 0x8e7   :  { %v3613_v21 = vrot.slane %v3612_v58, 2 }
 0x8e8   :  { %v3601_v11 = vadd.f32 %v3600_v30, %v3599_v19 }
 0x8e9   :  { %v3614_v9 = vadd.f32 %v3613_v21, %v3612_v58  ;;  %v11048_v58 = vld [vmem:[#allocation20] ss:$0 sm:$0xff] }
 0x8ea   :  { %v3602_v4 = vrot.slane %v3601_v11, 1 }
 0x8eb   :  { %v3615_v6 = vrot.slane %v3614_v9, 1 }
 0x8ec   :  { %v3603_v44 = vadd.f32 %v3602_v4, %v3601_v11 }
 0x8ed   :  { %v3616_v34 = vadd.f32 %v3615_v6, %v3614_v9 }
 0x8ef   :  { %v3619_v62 = vsel %vm318_vm1, %v3616_v34, %v3603_v44 }
 0x8f0   :  { %7188 = vmatmul.mubr.f32.vlgmr.msra.gmra.mrb[2].mxu1 %v3619_v62 }
 0x8f1   :  { %7715 = vmatpush3.bf16.msra.mxu1 %v10822_v32  ;;  %7222 = vmatprep.mubr.msk.f32.mxu1 %vm8821_vm0, %v12839_v5 }
 0x8f2   :  { %7716 = vmatprep.subr.bf16.mxu1 %v12817_v40 }
 0x8f5   :  { %7718 = vmatpush3.bf16.msra.mxu1 %v10825_v13  ;;  %v8162_v13 = vld [vmem:[#allocation22 + $0x40] sm:$0xff]  }
 0x8f6   :  { %7719 = vmatprep.subr.bf16.mxu1 %v12817_v40 }
 0x8f9   :  { %7721 = vmatpush3.bf16.msra.mxu1 %v10833_v45  ;;  %v8163_v45 = vld [vmem:[#allocation22 + $0x48] sm:$0xff]  }
 0x8fa   :  { %7722 = vmatprep.subr.bf16.mxu1 %v12817_v40 }
 0x8fd   :  { %7724 = vmatpush3.bf16.msra.mxu1 %v10841_v50  ;;  %v8164_v50 = vld [vmem:[#allocation22 + $0x50] sm:$0xff]  }
 0x8fe   :  { %7725 = vmatprep.subr.bf16.mxu1 %v12817_v40 }
 0x901   :  { %7727 = vmatpush3.bf16.msra.mxu1 %v10846_v61  ;;  %v8165_v61 = vld [vmem:[#allocation22 + $0x58] sm:$0xff]  }
 0x902   :  { %7728 = vmatprep.subr.bf16.mxu1 %v12817_v40 }
 0x905   :  { %7730 = vmatpush3.bf16.msra.mxu1 %v10850_v36  ;;  %v8166_v36 = vld [vmem:[#allocation22 + $0x60] sm:$0xff]  }
 0x906   :  { %7731 = vmatprep.subr.bf16.mxu1 %v12817_v40 }
 0x909   :  { %7733 = vmatpush3.bf16.msra.mxu1 %v10854_v18  ;;  %v8168_v18 = vld [vmem:[#allocation22 + $0x70] sm:$0xff]  }
 0x90a   :  { %7734 = vmatprep.subr.bf16.mxu1 %v12817_v40  ;;  %v8167_v40 = vld [vmem:[#allocation22 + $0x68] sm:$0xff]  }
 0x90d   :  { %7736 = vmatpush3.bf16.msra.mxu1 %v10858_v59  ;;  %v8169_v59 = vld [vmem:[#allocation22 + $0x78] sm:$0xff]  }
 0x90e   :  { %7225 = vmatprep.subr.bf16.mxu1 %v8162_v13 }
 0x9c3   :  { %v3687_v5 = vpop.f32.mrb[2].mxu1 }
 0x9c4   :  { %v7189_v32 = vpop.f32.mrb[3].mxu1  ;;  %7223 = vmatmul.mubr.f32.vlgmr.msra.gmra.mrb[4].mxu1 %v3687_v5 }
 0x9c5   :  { %7226 = vmatpush3.bf16.msra.mxu1 %v8162_v13 }
 0x9c6   :  { %7227 = vmatprep.subr.bf16.mxu1 %v8163_v45 }
 0x9c9   :  { %7228 = vmatpush3.bf16.msra.mxu1 %v8163_v45 }
 0x9ca   :  { %7229 = vmatprep.subr.bf16.mxu1 %v8164_v50 }
 0x9cd   :  { %7230 = vmatpush3.bf16.msra.mxu1 %v8164_v50 }
 0x9ce   :  { %7231 = vmatprep.subr.bf16.mxu1 %v8165_v61 }
 0x9d1   :  { %7232 = vmatpush3.bf16.msra.mxu1 %v8165_v61 }
 0x9d2   :  { %7233 = vmatprep.subr.bf16.mxu1 %v8166_v36 }
 0x9d5   :  { %7234 = vmatpush3.bf16.msra.mxu1 %v8166_v36 }
 0x9d6   :  { %7235 = vmatprep.subr.bf16.mxu1 %v8167_v40 }
 0x9d9   :  { %7236 = vmatpush3.bf16.msra.mxu1 %v8167_v40 }
 0x9da   :  { %7237 = vmatprep.subr.bf16.mxu1 %v8168_v18 }
 0x9dd   :  { %7238 = vmatpush3.bf16.msra.mxu1 %v8168_v18 }
 0x9de   :  { %7239 = vmatprep.subr.bf16.mxu1 %v8169_v59 }
 0x9e1   :  { %7240 = vmatpush3.bf16.msra.mxu1 %v8169_v59 }
 0x9e2   :  { %7257 = vmatprep.subr.bf16.mxu1 %v11033_v48 }
 0xa97   :  { %v3757_v29 = vpop.f32.mrb[4].mxu1 }
 0xa98   :  { %v3758_v10 = vadd.f32 1e-06, %v3757_v29  ;;  %v7224_v57 = vpop.f32.mrb[5].mxu1 }
 0xa9a   :  { %8308 = vrsqrt.f32 %v3758_v10 }
 0xaa4   :  { %v8309_v16 = vpop.eup %8308 }
 0xaa5   :  { %v3769_v56 = vrot.slane %v8309_v16, %v12840_v41 }
 0xaa7   :  { %v3770_v23 = vcombine.high %v3769_v56, %v3769_v56  ;;  %v3777_v3 = vrot.slane %v3769_v56, %v12840_v41 }
 0xaa9   :  { %v3784_v33 = vrot.slane %v3770_v23, %v12840_v41  ;;  %v3788_v15 = vrot.slane %v3777_v3, %v12841_v26 }
 0xaab   :  { %v11043_v14 = vrot.slane %v3784_v33, %v12841_v26  ;;  %v3795_v28 = vmul.f32 %v3788_v15, %v10936_v55  ;;  %v3796_v2 = vmul.f32 %v3788_v15, %v10939_v60  ;;  %v3797_v19 = vmul.f32 %v3788_v15, %v10948_v31 }
 0xaac   :  { %v3798_v30 = vmul.f32 %v3788_v15, %v10958_v17  ;;  %v3799_v21 = vmul.f32 %v3788_v15, %v10968_v63  ;;  %v3800_v41 = vmul.f32 %v3788_v15, %v10978_v51  ;;  %v3801_v11 = vmul.f32 %v3788_v15, %v10988_v46 }
 0xaad   :  { %v3810_v26 = vmul.f32 %v11043_v14, %v11001_v43  ;;  %v3818_v9 = vmul.f32 %v11040_v37, %v3795_v28  ;;  %v3819_v55 = vmul.f32 %v11040_v37, %v3796_v2  ;;  %v3820_v60 = vmul.f32 %v11040_v37, %v3797_v19 }
 0xaae   :  { %v3821_v31 = vmul.f32 %v11040_v37, %v3798_v30  ;;  %v3822_v4 = vmul.f32 %v11040_v37, %v3799_v21  ;;  %v3823_v17 = vmul.f32 %v11040_v37, %v3800_v41  ;;  %v3824_v63 = vmul.f32 %v11040_v37, %v3801_v11 }
 0xaaf   :  { %v3833_v51 = vmul.f32 %v11040_v37, %v3810_v26  ;;  %v11065_v46 = vadd.f32 %v11048_v58, %v3818_v9  ;;  %v11068_v43 = vadd.f32 %v11048_v58, %v3819_v55  ;;  %v11071_v6 = vadd.f32 %v11048_v58, %v3820_v60 }
 0xab0   :  { %v11074_v44 = vadd.f32 %v11048_v58, %v3821_v31  ;;  %v11077_v34 = vadd.f32 %v11048_v58, %v3822_v4  ;;  %v11080_v62 = vadd.f32 %v11048_v58, %v3823_v17  ;;  %v11083_v5 = vadd.f32 %v11048_v58, %v3824_v63 }
 0xab1   :  { %v11086_v32 = vadd.f32 %v11048_v58, %v3833_v51  ;;  %v3857_v13 = vsub.f32 0.0, %v11065_v46  ;;  %v3858_v45 = vsub.f32 0.0, %v11068_v43  ;;  %v3859_v50 = vsub.f32 0.0, %v11071_v6 }
 0xab2   :  { %v3860_v61 = vsub.f32 0.0, %v11074_v44  ;;  %v3861_v36 = vsub.f32 0.0, %v11077_v34  ;;  %v3862_v40 = vsub.f32 0.0, %v11080_v62  ;;  %v3863_v18 = vsub.f32 0.0, %v11083_v5 }
 0xab3   :  { %v3872_v59 = vsub.f32 0.0, %v11086_v32  ;;  %v3873_v29 = vmul.f32 1.442695, %v3857_v13  ;;  %v3875_v10 = vmul.f32 1.442695, %v3858_v45  ;;  %v3802_v57 = vmul.f32 %v3788_v15, %v10998_v12 }
 0xab4   :  { %v3877_v16 = vmul.f32 1.442695, %v3859_v50  ;;  %v3879_v56 = vmul.f32 1.442695, %v3860_v61  ;;  %v3803_v23 = vmul.f32 %v11043_v14, %v10942_v38  ;;  %v3881_v33 = vmul.f32 1.442695, %v3861_v36 }
 0xab5   :  { %8310 = vpow2.f32 %v3873_v29  ;;  %v3903_v3 = vmul.f32 1.442695, %v3872_v59  ;;  %v3883_v28 = vmul.f32 1.442695, %v3862_v40  ;;  %v3825_v2 = vmul.f32 %v11040_v37, %v3802_v57 }
 0xab6   :  { %8312 = vpow2.f32 %v3875_v10  ;;  %v3826_v19 = vmul.f32 %v11040_v37, %v3803_v23  ;;  %v3804_v30 = vmul.f32 %v11043_v14, %v10945_v54  ;;  %v3885_v21 = vmul.f32 1.442695, %v3863_v18 }
 0xab7   :  { %8314 = vpow2.f32 %v3903_v3  ;;  %v3805_v12 = vmul.f32 %v11043_v14, %v10951_v8  ;;  %v3806_v38 = vmul.f32 %v11043_v14, %v10961_v1  ;;  %v11108_v15 = vadd.f32 %v11048_v58, %v3825_v2 }
 0xab8   :  { %8316 = vpow2.f32 %v3877_v16  ;;  %v11111_v41 = vadd.f32 %v11048_v58, %v3826_v19  ;;  %v3827_v11 = vmul.f32 %v11040_v37, %v3804_v30  ;;  %v3807_v60 = vmul.f32 %v11043_v14, %v10971_v24 }
 0xab9   :  { %8318 = vpow2.f32 %v3879_v56  ;;  %v3828_v54 = vmul.f32 %v11040_v37, %v3805_v12  ;;  %v3829_v26 = vmul.f32 %v11040_v37, %v3806_v38  ;;  %v3864_v8 = vsub.f32 0.0, %v11108_v15 }
 0xaba   :  { %8320 = vpow2.f32 %v3881_v33  ;;  %v3865_v9 = vsub.f32 0.0, %v11111_v41  ;;  %v11119_v1 = vadd.f32 %v11048_v58, %v3827_v11  ;;  %v3808_v51 = vmul.f32 %v11043_v14, %v10981_v20 }
 0xabb   :  { %8322 = vpow2.f32 %v3883_v28  ;;  %v11122_v55 = vadd.f32 %v11048_v58, %v3828_v54  ;;  %v3887_v31 = vmul.f32 1.442695, %v3864_v8  ;;  %v11131_v45 = vadd.f32 %v11048_v58, %v3829_v26 }
 0xabc   :  { %8324 = vpow2.f32 %v3885_v21  ;;  %v3889_v4 = vmul.f32 1.442695, %v3865_v9  ;;  %v3866_v17 = vsub.f32 0.0, %v11119_v1  ;;  %v3809_v50 = vmul.f32 %v11043_v14, %v10991_v25 }
 0xabd   :  { %v3867_v63 = vsub.f32 0.0, %v11122_v55  ;;  %8326 = vpow2.f32 %v3887_v31  ;;  %v3830_v36 = vmul.f32 %v11040_v37, %v3807_v60  ;;  %v3831_v59 = vmul.f32 %v11040_v37, %v3808_v51 }
 0xabe   :  { %v3891_v13 = vmul.f32 1.442695, %v3866_v17  ;;  %8328 = vpow2.f32 %v3889_v4  ;;  %v3832_v10 = vmul.f32 %v11040_v37, %v3809_v50  ;;  %v3868_v25 = vsub.f32 0.0, %v11131_v45 }
 0xabf   :  { %v8311_v61 = vpop.eup %8310  ;;  %v3893_v24 = vmul.f32 1.442695, %v3867_v63  ;;  %v11140_v23 = vadd.f32 %v11048_v58, %v3830_v36  ;;  %v11143_v28 = vadd.f32 %v11048_v58, %v3831_v59 }
 0xac0   :  { %v8313_v40 = vpop.eup %8312  ;;  %v3905_v18 = vadd.f32 1.0, %v8311_v61  ;;  %8330 = vpow2.f32 %v3891_v13  ;;  %v11146_v19 = vadd.f32 %v11048_v58, %v3832_v10  ;;  %v3895_v12 = vmul.f32 1.442695, %v3868_v25  ;;  %v12846_v25 = vld [vmem:[#allocation47_spill] sm:$0xff] }
 0xac1   :  { %v8315_v29 = vpop.eup %8314  ;;  %v3906_v20 = vadd.f32 1.0, %v8313_v40  ;;  %8332 = vpow2.f32 %v3893_v24  ;;  %v3869_v11 = vsub.f32 0.0, %v11140_v23  ;;  %v3870_v26 = vsub.f32 0.0, %v11143_v28 }
 0xac2   :  { %v8317_v57 = vpop.eup %8316  ;;  %v3920_v16 = vadd.f32 1.0, %v8315_v29  ;;  %8334 = vrcp.f32 %v3905_v18  ;;  %v3871_v60 = vsub.f32 0.0, %v11146_v19 }
 0xac3   :  { %v8319_v14 = vpop.eup %8318  ;;  %v3907_v56 = vadd.f32 1.0, %v8317_v57  ;;  %8336 = vrcp.f32 %v3906_v20  ;;  %v3897_v63 = vmul.f32 1.442695, %v3869_v11  ;;  %v3899_v50 = vmul.f32 1.442695, %v3870_v26  ;;  %v12845_v57 = vld [vmem:[#allocation42_spill] sm:$0xff] }
 0xac4   :  { %v8321_v3 = vpop.eup %8320  ;;  %8338 = vrcp.f32 %v3920_v16  ;;  %v3908_v33 = vadd.f32 1.0, %v8319_v14  ;;  %v3901_v36 = vmul.f32 1.442695, %v3871_v60 }
 0xac5   :  { %v8323_v2 = vpop.eup %8322  ;;  %8340 = vrcp.f32 %v3907_v56  ;;  %v3909_v37 = vadd.f32 1.0, %v8321_v3 }
 0xac6   :  { %v8325_v30 = vpop.eup %8324  ;;  %8342 = vrcp.f32 %v3908_v33  ;;  %v3910_v21 = vadd.f32 1.0, %v8323_v2  ;;  %v12848_v33 = vld [vmem:[#allocation43_spill] sm:$0xff] }
 0xac7   :  { %8344 = vrcp.f32 %v3909_v37  ;;  %v3911_v38 = vadd.f32 1.0, %v8325_v30  ;;  %v8327_v54 = vpop.eup %8326 }
 0xac8   :  { %8346 = vrcp.f32 %v3910_v21  ;;  %v8329_v8 = vpop.eup %8328  ;;  %v3912_v9 = vadd.f32 1.0, %v8327_v54  ;;  %v12849_v21 = vld [vmem:[#allocation51_spill] sm:$0xff]  ;;  %v12850_v54 = vld [vmem:[#allocation44_spill] sm:$0xff] }
 0xac9   :  { %8348 = vrcp.f32 %v3911_v38  ;;  %v3913_v58 = vadd.f32 1.0, %v8329_v8 }
 0xaca   :  { %v8331_v31 = vpop.eup %8330  ;;  %8350 = vpow2.f32 %v3895_v12 }
 0xacb   :  { %v8333_v4 = vpop.eup %8332  ;;  %8352 = vrcp.f32 %v3912_v9  ;;  %v3914_v17 = vadd.f32 1.0, %v8331_v31 }
 0xacc   :  { %v8335_v51 = vpop.eup %8334  ;;  %8354 = vrcp.f32 %v3913_v58  ;;  %v3915_v13 = vadd.f32 1.0, %v8333_v4 }
 0xacd   :  { %v8337_v61 = vpop.eup %8336  ;;  %v11152_v24 = vmul.f32 %v8335_v51, %v11065_v46  ;;  %8356 = vrcp.f32 %v3914_v17 }
 0xace   :  { %v8339_v40 = vpop.eup %8338  ;;  %v11155_v18 = vmul.f32 %v8337_v61, %v11068_v43  ;;  %8358 = vrcp.f32 %v3915_v13  ;;  %v12847_v43 = vld [vmem:[#allocation49_spill] sm:$0xff] }
 0xacf   :  { %12842 = vst [vmem:[#allocation228_spill] sm:$0xff] %v11152_v24  ;;  %v8341_v59 = vpop.eup %8340  ;;  %v11158_v29 = vmul.f32 %v8339_v40, %v11086_v32  ;;  %8360 = vpow2.f32 %v3897_v63  ;;  %v4042_v56 = vmul.f32 %v11152_v24, %v12847_v43  ;;  %v3969_v31 = vrot.slane %v11152_v24, 7  ;;  %v12851_v61 = vld [vmem:[#allocation53_spill] sm:$0xff] }
 0xad0   :  { %12843 = vst [vmem:[#allocation229_spill] sm:$0xff] %v11155_v18  ;;  %v8343_v20 = vpop.eup %8342  ;;  %v11161_v10 = vmul.f32 %v8341_v59, %v11071_v6  ;;  %v4043_v46 = vmul.f32 %v11155_v18, %v12845_v57  ;;  %8362 = vpow2.f32 %v3899_v50  ;;  %v3970_v58 = vrot.slane %v11155_v18, 7  ;;  %v8172_v50 = vld [vmem:[#allocation22 + $0x10] sm:$0xff]   ;;  %v12853_v57 = vld [vmem:[#allocation46_spill] sm:$0xff] }
 0xad1   :  { %12844 = vst [vmem:[#allocation222_spill] sm:$0xff] %v11158_v29  ;;  %v8345_v16 = vpop.eup %8344  ;;  %v4041_v14 = vmul.f32 %v11158_v29, %v12846_v25  ;;  %v11170_v3 = vmul.f32 %v8343_v20, %v11074_v44  ;;  %8364 = vpow2.f32 %v3901_v36  ;;  %v8171_v44 = vld [vmem:[#allocation22 + $0x8] sm:$0xff]   ;;  %v12852_v40 = vld [vmem:[#allocation45_spill] sm:$0xff] }
 0xad2   :  { %v8347_v32 = vpop.eup %8346  ;;  %v4044_v6 = vmul.f32 %v11161_v10, %v12848_v33  ;;  %v11175_v2 = vmul.f32 %v8345_v16, %v11077_v34  ;;  %v3971_v63 = vrot.slane %v11161_v10, 7  ;;  %v12856_v33 = vld [vmem:[#allocation55_spill] sm:$0xff] }
 0xad3   :  { %v8349_v37 = vpop.eup %8348  ;;  %v4057_v30 = vpack.c.bf16 %v4042_v56, %v4041_v14  ;;  %v4045_v12 = vmul.f32 %v11170_v3, %v12849_v21  ;;  %v11182_v8 = vmul.f32 %v8347_v32, %v11080_v62  ;;  %v3972_v43 = vrot.slane %v11170_v3, 7 }
 0xad4   :  { %v8351_v38 = vpop.eup %8350  ;;  %v4058_v11 = vpack.c.bf16 %v4044_v6, %v4043_v46  ;;  %v4046_v26 = vmul.f32 %v11175_v2, %v12850_v54  ;;  %v11185_v9 = vmul.f32 %v8349_v37, %v11083_v5  ;;  %v11210_v14 = vsel %vm938_vm3, %v3970_v58, %v3971_v63 }
 0xad5   :  { %v8353_v60 = vpop.eup %8352  ;;  %7241 = vmatprep.mubr.bf16.mxu1 %v4057_v30  ;;  %v3916_v34 = vadd.f32 1.0, %v8351_v38  ;;  %v4047_v36 = vmul.f32 %v11182_v8, %v12851_v61  ;;  %v3973_v56 = vrot.slane %v11175_v2, 7  ;;  %v8173_v38 = vld [vmem:[#allocation22 + $0x18] sm:$0xff]   ;;  %v3974_v61 = vrot.slane %v11182_v8, 7 }
 0xad6   :  { %v8355_v4 = vpop.eup %8354  ;;  %7242 = vmatmul.mubr.bf16.vlgmr.msra.gmra.mrb[8].mxu1 %v4058_v11  ;;  %v4059_v17 = vpack.c.bf16 %v4046_v26, %v4045_v12  ;;  %v11192_v62 = vmul.f32 %v8353_v60, %v11108_v15  ;;  %v4048_v59 = vmul.f32 %v11185_v9, %v12852_v40  ;;  %v12329_v15 = vrot.slane %v11158_v29, 7  ;;  %v12857_v26 = vld [vmem:[#allocation56_spill] sm:$0xff]  ;;  %v12858_v60 = vld [vmem:[#allocation65_spill] sm:$0xff] }
 0xad7   :  { %v8357_v51 = vpop.eup %8356  ;;  %7258 = vmatpush3.bf16.msra.mxu1 %v11033_v48  ;;  %v11195_v5 = vmul.f32 %v8355_v4, %v11111_v41  ;;  %8366 = vrcp.f32 %v3916_v34  ;;  %v11206_v41 = vsel %vm938_vm3, %v3969_v31, %v3970_v58  ;;  %v3997_v34 = vsel %vm938_vm3, %v3971_v63, %v3972_v43  ;;  %v12859_v58 = vld [vmem:[#allocation57_spill] sm:$0xff] }
 0xad8   :  { %v8359_v13 = vpop.eup %8358  ;;  %7245 = vmatprep.mubr.bf16.mxu1 %v4059_v17  ;;  %7259 = vmatprep.subr.bf16.mxu1 %v8171_v44  ;;  %12855 = vst [vmem:[#allocation231_spill] sm:$0xff] %v11206_v41  ;;  %v4049_v6 = vmul.f32 %v11192_v62, %v12856_v33  ;;  %v11217_v37 = vmul.f32 %v8357_v51, %v11119_v1  ;;  %v12860_v17 = vld [vmem:[#allocation48_spill] sm:$0xff]  ;;  %v3975_v63 = vrot.slane %v11185_v9, 7 }
 0xad9   :  { %v8361_v20 = vpop.eup %8360  ;;  %v4050_v48 = vmul.f32 %v11195_v5, %v12853_v57  ;;  %v11220_v30 = vmul.f32 %v8359_v13, %v11122_v55  ;;  %v4060_v12 = vpack.c.bf16 %v4048_v59, %v4047_v36  ;;  %v11228_v1 = vmul.f32 %v11210_v14, %v12858_v60  ;;  %v8174_v36 = vld [vmem:[#allocation22 + $0x20] sm:$0xff]  }
 0xada   :  { %v8363_v16 = vpop.eup %8362  ;;  %v3917_v25 = vadd.f32 1.0, %v8361_v20  ;;  %v11232_v55 = vsel %vm938_vm3, %v3972_v43, %v3973_v56  ;;  %v4051_v4 = vmul.f32 %v11217_v37, %v12859_v58  ;;  %v11244_v13 = vsel %vm938_vm3, %v12329_v15, %v3969_v31  ;;  %v12862_v59 = vld [vmem:[#allocation58_spill] sm:$0xff]  ;;  %v12863_v57 = vld [vmem:[#allocation67_spill] sm:$0xff]  ;;  %v8176_v15 = vld [vmem:[#allocation22 + $0x30] sm:$0xff]  }
 0xadb   :  { %v8365_v32 = vpop.eup %8364  ;;  %7260 = vmatpush3.bf16.msra.mxu1 %v8171_v44  ;;  %v3918_v21 = vadd.f32 1.0, %v8363_v16  ;;  %v4061_v54 = vpack.c.bf16 %v4050_v48, %v4049_v6  ;;  %v11224_v44 = vmul.f32 %v11206_v41, %v12857_v26  ;;  %v4052_v51 = vmul.f32 %v11220_v30, %v12860_v17  ;;  %12861 = vst [vmem:[#allocation230_spill] sm:$0xff] %v11244_v13  ;;  %v12864_v31 = vld [vmem:[#allocation54_spill] sm:$0xff]  ;;  %v12865_v6 = vld [vmem:[#allocation96_spill] sm:$0xff]  ;;  %v12866_v58 = vld [vmem:[#allocation123_spill] sm:$0xff] }
 0xadc   :  { %7261 = vmatprep.subr.bf16.mxu1 %v8172_v50  ;;  %8368 = vrcp.f32 %v3917_v25  ;;  %v3919_v11 = vadd.f32 1.0, %v8365_v32  ;;  %v11250_v20 = vmul.f32 %v3997_v34, %v12862_v59  ;;  %v11254_v48 = vmul.f32 %v11232_v55, %v12863_v57  ;;  %v12873_v60 = vld [vmem:[#allocation62_spill] sm:$0xff] }
 0xadd   :  { %8370 = vrcp.f32 %v3918_v21  ;;  %v3977_v16 = vrot.slane %v11195_v5, 7  ;;  %v11259_v25 = vmul.f32 %v11244_v13, %v12864_v31  ;;  %v4062_v32 = vpack.c.bf16 %v4052_v51, %v4051_v4  ;;  %v12882_v13 = vld [vmem:[#allocation74_spill] sm:$0xff] }
 0xade   :  { %7246 = vmatmul.mubr.bf16.gmra.mrb[12].mxu1 %v4060_v12  ;;  %8372 = vrcp.f32 %v3919_v11  ;;  %v11267_v21 = vmul.f32 %v3997_v34, %v12865_v6  ;;  %v11271_v12 = vsel %vm938_vm3, %v3973_v56, %v3974_v61  ;;  %v8175_v11 = vld [vmem:[#allocation22 + $0x28] sm:$0xff]   ;;  %v3979_v26 = vrot.slane %v11220_v30, 7 }
 0xadf   :  { %7262 = vmatpush3.bf16.msra.mxu1 %v8172_v50  ;;  %7249 = vmatprep.mubr.bf16.mxu1 %v4061_v54  ;;  %v3976_v50 = vrot.slane %v11192_v62, 7  ;;  %v11275_v54 = vsel %vm938_vm3, %v3974_v61, %v3975_v63  ;;  %v11286_v56 = vmul.f32 %v3997_v34, %v12866_v58  ;;  %v12868_v61 = vld [vmem:[#allocation126_spill] sm:$0xff]  ;;  %v4372_v57 = vrot.slane %v11152_v24, 1  ;;  %v12871_v6 = vld [vmem:[#allocation59_spill] sm:$0xff]  ;;  %v12872_v58 = vld [vmem:[#allocation69_spill] sm:$0xff] }
 0xae0   :  { %7263 = vmatprep.subr.bf16.mxu1 %v8173_v38  ;;  %v4373_v34 = vrot.slane %v11155_v18, 1 }
 0xae1   :  { %v8367_v40 = vpop.eup %8366  ;;  %12867 = vst [vmem:[#allocation219_spill] sm:$0xff] %v11286_v56  ;;  %v11290_v4 = vsel %vm938_vm3, %v3976_v50, %v3977_v16  ;;  %v12887_v56 = vld [vmem:[#allocation63_spill] sm:$0xff] }
 0xae2   :  { %v11264_v33 = vmul.f32 %v8367_v40, %v11131_v45  ;;  %v3978_v45 = vrot.slane %v11217_v37, 7  ;;  %v12870_v40 = vld [vmem:[#allocation60_spill] sm:$0xff] }
 0xae3   :  { %7264 = vmatpush3.bf16.msra.mxu1 %v8173_v38  ;;  %v11279_v38 = vsel %vm938_vm3, %v3975_v63, %v3976_v50  ;;  %v11295_v63 = vmul.f32 %v11232_v55, %v12868_v61  ;;  %v11299_v59 = vmul.f32 %v11271_v12, %v12870_v40  ;;  %v11310_v61 = vmul.f32 %v11275_v54, %v12872_v58 }
 0xae4   :  { %7265 = vmatprep.subr.bf16.mxu1 %v8174_v36  ;;  %v11314_v40 = vmul.f32 %v11279_v38, %v12873_v60  ;;  %v12875_v60 = vld [vmem:[#allocation50_spill] sm:$0xff] }
 0xae5   :  { %12869 = vst [vmem:[#allocation70_spill] sm:$0xff] %v11295_v63 }
 0xae6   :  { %v8369_v51 = vpop.eup %8368  ;;  %7250 = vmatmul.mubr.bf16.gmra.mrb[16].mxu1 %v4062_v32  ;;  %v4053_v32 = vmul.f32 %v11264_v33, %v12871_v6  ;;  %v11329_v6 = vsel %vm938_vm3, %v3977_v16, %v3978_v45 }
 0xae7   :  { %v8371_v31 = vpop.eup %8370  ;;  %7266 = vmatpush3.bf16.msra.mxu1 %v8174_v36  ;;  %v11304_v50 = vmul.f32 %v8369_v51, %v11140_v23  ;;  %v12874_v36 = vld [vmem:[#allocation72_spill] sm:$0xff]  ;;  %v11325_v51 = vsel %vm938_vm3, %v3978_v45, %v3979_v26  ;;  %v4374_v45 = vrot.slane %v11161_v10, 1 }
 0xae8   :  { %v8373_v43 = vpop.eup %8372  ;;  %7267 = vmatprep.subr.bf16.mxu1 %v8175_v11  ;;  %v11317_v17 = vmul.f32 %v8371_v31, %v11143_v28  ;;  %v11321_v23 = vmul.f32 %v11290_v4, %v12874_v36  ;;  %v3980_v28 = vrot.slane %v11264_v33, 7  ;;  %v12876_v31 = vrot.slane %v11158_v29, 1 }
 0xae9   :  { %v4054_v58 = vmul.f32 %v11304_v50, %v12875_v60  ;;  %v11334_v24 = vmul.f32 %v8373_v43, %v11146_v19  ;;  %v3981_v16 = vrot.slane %v11304_v50, 7  ;;  %v4375_v60 = vrot.slane %v11170_v3, 1  ;;  %v12879_v19 = vld [vmem:[#allocation52_spill] sm:$0xff] }
 0xaea   :  { %v11341_v36 = vsel %vm1502_vm2, %v12876_v31, %v4372_v57  ;;  %v4055_v42 = vmul.f32 %v11317_v17, %v12878_v47  ;;  %v3982_v53 = vrot.slane %v11317_v17, 7  ;;  %v12880_v47 = vld [vmem:[#allocation64_spill] sm:$0xff]  ;;  %v11360_v63 = vmul.f32 %v11325_v51, %v12882_v13  ;;  %v8177_v31 = vld [vmem:[#allocation22 + $0x38] sm:$0xff]  }
 0xaeb   :  { %12877 = vst [vmem:[#allocation218_spill] sm:$0xff] %v11341_v36  ;;  %v4063_v27 = vpack.c.bf16 %v4054_v58, %v4053_v32  ;;  %7268 = vmatpush3.bf16.msra.mxu1 %v8175_v11  ;;  %v4056_v43 = vmul.f32 %v11334_v24, %v12879_v19  ;;  %v3983_v49 = vrot.slane %v11334_v24, 7  ;;  %v11356_v18 = vmul.f32 %v11329_v6, %v12880_v47 }
 0xaec   :  { %7269 = vmatprep.subr.bf16.mxu1 %v8176_v15  ;;  %12883 = vst [vmem:[#allocation71_spill] sm:$0xff] %v11360_v63  ;;  %v11364_v11 = vsel %vm1502_vm2, %v4372_v57, %v4373_v34  ;;  %v12885_v58 = vrot.slane %v11158_v29, 7  ;;  %v11374_v47 = vmul.f32 %v11341_v36, %v12707_v0  ;;  %v4376_v13 = vrot.slane %v11175_v2, 1  ;;  %v12890_v36 = vld [vmem:[#allocation66_spill] sm:$0xff] }
 0xaed   :  { %12881 = vst [vmem:[#allocation80_spill] sm:$0xff] %v11356_v18  ;;  %12884 = vst [vmem:[#allocation171_spill] sm:$0xff] %v11364_v11  ;;  %7253 = vmatprep.mubr.bf16.mxu1 %v4063_v27  ;;  %v4064_v32 = vpack.c.bf16 %v4056_v43, %v4055_v42  ;;  %v11381_v27 = vsel %vm938_vm3, %v3980_v28, %v3981_v16  ;;  %v11385_v42 = vsel %vm938_vm3, %v3979_v26, %v3980_v28  ;;  %v12904_v18 = vld [vmem:[#allocation156_spill] sm:$0xff] }
 0xaee   :  { %v11370_v19 = vsel %vm938_vm3, %v3983_v49, %v12885_v58  ;;  %12886 = vst [vmem:[#allocation73_spill] sm:$0xff] %v11374_v47  ;;  %v4377_v57 = vrot.slane %v11182_v8, 1  ;;  %v11390_v0 = vsel %vm938_vm3, %v3981_v16, %v3982_v53  ;;  %v11394_v43 = vmul.f32 %v11364_v11, %v12709_v39  ;;  %v12900_v47 = vld [vmem:[#allocation107_spill] sm:$0xff] }
 0xaef   :  { %v4001_v41 = vmul.f32 %v11370_v19, %v12887_v56  ;;  %7254 = vmatmul.mubr.bf16.gmra.mrb[20].mxu1 %v4064_v32  ;;  %v11398_v56 = vsel %vm1502_vm2, %v4374_v45, %v4375_v60  ;;  %v11402_v58 = vsel %vm1502_vm2, %v4373_v34, %v4374_v45  ;;  %v11411_v39 = vsel %vm938_vm3, %v3982_v53, %v3983_v49  ;;  %v8178_v32 = vld [vmem:[#allocation22 + $0x80] sm:$0xff]   ;;  %v12891_v34 = vld [vmem:[#allocation76_spill] sm:$0xff] }
 0xaf0   :  { %12888 = vst [vmem:[#allocation184_spill] sm:$0xff] %v11394_v43  ;;  %12889 = vst [vmem:[#allocation82_spill] sm:$0xff] %v11398_v56  ;;  %7270 = vmatpush3.bf16.msra.mxu1 %v8176_v15  ;;  %v11415_v11 = vmul.f32 %v11385_v42, %v12890_v36  ;;  %v11419_v15 = vmul.f32 %v11381_v27, %v12891_v34  ;;  %v12892_v45 = vld [vmem:[#allocation68_spill] sm:$0xff]  ;;  %v11431_v49 = vmul.f32 %v11402_v58, %v12710_v22 }
 0xaf1   :  { %v4017_v26 = vpack.c.bf16 %v11259_v25, %v4001_v41  ;;  %7271 = vmatprep.subr.bf16.mxu1 %v8177_v31  ;;  %v4399_v25 = vsel %vm1502_vm2, %v4375_v60, %v4376_v13  ;;  %v11427_v53 = vmul.f32 %v11390_v0, %v12892_v45  ;;  %v11435_v36 = vmul.f32 %v11398_v56, %v12712_v35  ;;  %v12896_v41 = vld [vmem:[#allocation78_spill] sm:$0xff] }
 0xaf2   :  { %12894 = vst [vmem:[#allocation233_spill] sm:$0xff] %v11431_v49  ;;  %v11439_v34 = vsel %vm1502_vm2, %v4376_v13, %v4377_v57  ;;  %v11443_v60 = vmul.f32 %v11411_v39, %v12896_v41  ;;  %v4379_v45 = vrot.slane %v11192_v62, 1  ;;  %v4380_v16 = vrot.slane %v11195_v5, 1 }
 0xaf3   :  { %7273 = vmatprep.mubr.bf16.mxu1 %v4017_v26  ;;  %12893 = vst [vmem:[#allocation75_spill] sm:$0xff] %v11427_v53  ;;  %12895 = vst [vmem:[#allocation232_spill] sm:$0xff] %v11435_v36  ;;  %v4378_v26 = vrot.slane %v11185_v9, 1  ;;  %v11449_v22 = vmul.f32 %v4399_v25, %v12714_v52  ;;  %v4381_v35 = vrot.slane %v11217_v37, 1  ;;  %v4382_v28 = vrot.slane %v11220_v30, 1  ;;  %v8179_v36 = vld [vmem:[#allocation22 + $0x88] sm:$0xff]  }
 0xaf4   :  { %12897 = vst [vmem:[#allocation234_spill] sm:$0xff] %v11443_v60  ;;  %7272 = vmatpush3.bf16.msra.mxu1 %v8177_v31  ;;  %v4383_v13 = vrot.slane %v11264_v33, 1  ;;  %v11458_v49 = vmul.f32 %v11439_v34, %v12715_v7  ;;  %v11461_v31 = vmul.f32 %v4399_v25, %v12900_v47  ;;  %v4384_v52 = vrot.slane %v11304_v50, 1  ;;  %v12937_v46 = vld [vmem:[#allocation171_spill] sm:$0xff] }
 0xaf5   :  { %12898 = vst [vmem:[#allocation225_spill] sm:$0xff] %v11449_v22  ;;  %7289 = vmatprep.subr.bf16.mxu1 %v8178_v32  ;;  %v12902_v22 = vld [vmem:[#allocation157_spill] sm:$0xff]  ;;  %v11469_v63 = vmul.f32 %v11439_v34, %v12904_v18  ;;  %v4385_v56 = vrot.slane %v11317_v17, 1  ;;  %v4386_v41 = vrot.slane %v11334_v24, 1  ;;  %v12906_v7 = vpack.c.bf16 %v11228_v1, %v11224_v44 }
 0xaf6   :  { %12899 = vst [vmem:[#allocation235_spill] sm:$0xff] %v11458_v49  ;;  %12901 = vst [vmem:[#allocation236_spill] sm:$0xff] %v11461_v31  ;;  %v11465_v43 = vmul.f32 %v4399_v25, %v12902_v22  ;;  %v11480_v49 = vsel %vm1502_vm2, %v4378_v26, %v4379_v45  ;;  %v11484_v25 = vsel %vm1502_vm2, %v4377_v57, %v4378_v26  ;;  %v8180_v26 = vld [vmem:[#allocation22 + $0x90] sm:$0xff]  }
 0xaf7   :  { %12905 = vst [vmem:[#allocation164_spill] sm:$0xff] %v11469_v63  ;;  %7274 = vmatmul.mubr.bf16.vlgmr.msra.gmra.mrb[8].mxu1 %v12906_v7  ;;  %v11488_v18 = vsel %vm1502_vm2, %v4379_v45, %v4380_v16  ;;  %v12907_v44 = vpack.c.bf16 %v11254_v48, %v11250_v20  ;;  %v11495_v1 = vsel %vm1502_vm2, %v4380_v16, %v4381_v35  ;;  %v12908_v20 = vld [vmem:[#allocation89_spill] sm:$0xff]  ;;  %v12910_v16 = vld [vmem:[#allocation91_spill] sm:$0xff]  ;;  %v12912_v7 = vld [vmem:[#allocation98_spill] sm:$0xff] }
 0xaf8   :  { %12903 = vst [vmem:[#allocation237_spill] sm:$0xff] %v11465_v43  ;;  %7290 = vmatpush3.bf16.msra.mxu1 %v8178_v32  ;;  %v11499_v22 = vsel %vm1502_vm2, %v4382_v28, %v4383_v13  ;;  %v11503_v57 = vsel %vm1502_vm2, %v4381_v35, %v4382_v28  ;;  %v11507_v32 = vsel %vm1502_vm2, %v4383_v13, %v4384_v52  ;;  %v12914_v35 = vrot.slane %v11158_v29, 1  ;;  %v12919_v63 = vld [vmem:[#allocation95_spill] sm:$0xff]  ;;  %v12948_v29 = vld [vmem:[#allocation114_spill] sm:$0xff] }
 0xaf9   :  { %7277 = vmatprep.mubr.bf16.mxu1 %v12907_v44  ;;  %7291 = vmatprep.subr.bf16.mxu1 %v8179_v36  ;;  %v11511_v48 = vmul.f32 %v11210_v14, %v12908_v20  ;;  %v11515_v45 = vmul.f32 %v11232_v55, %v12910_v16  ;;  %v11519_v44 = vmul.f32 %v11271_v12, %v12912_v7  ;;  %v12915_v20 = vld [vmem:[#allocation93_spill] sm:$0xff]  ;;  %v12917_v55 = vld [vmem:[#allocation100_spill] sm:$0xff] }
 0xafa   :  { %v11523_v28 = vsel %vm1502_vm2, %v4384_v52, %v4385_v56  ;;  %v11529_v13 = vsel %vm1502_vm2, %v4386_v41, %v12914_v35  ;;  %v11533_v47 = vmul.f32 %v11275_v54, %v12915_v20  ;;  %v11537_v16 = vmul.f32 %v11279_v38, %v12917_v55  ;;  %v12921_v35 = vld [vmem:[#allocation102_spill] sm:$0xff]  ;;  %v12922_v55 = vld [vmem:[#allocation97_spill] sm:$0xff]  ;;  %v12924_v7 = vld [vmem:[#allocation104_spill] sm:$0xff] }
 0xafb   :  { %12909 = vst [vmem:[#allocation162_spill] sm:$0xff] %v11511_v48  ;;  %12911 = vst [vmem:[#allocation166_spill] sm:$0xff] %v11515_v45  ;;  %v11545_v43 = vmul.f32 %v11290_v4, %v12919_v63  ;;  %v11549_v53 = vmul.f32 %v11329_v6, %v12921_v35  ;;  %v11555_v60 = vmul.f32 %v11325_v51, %v12922_v55  ;;  %v12926_v52 = vld [vmem:[#allocation99_spill] sm:$0xff]  ;;  %v8181_v45 = vld [vmem:[#allocation22 + $0x98] sm:$0xff]  }
 0xafc   :  { %12913 = vst [vmem:[#allocation173_spill] sm:$0xff] %v11519_v44  ;;  %12916 = vst [vmem:[#allocation170_spill] sm:$0xff] %v11533_v47  ;;  %7292 = vmatpush3.bf16.msra.mxu1 %v8179_v36  ;;  %v11559_v48 = vmul.f32 %v11385_v42, %v12924_v7  ;;  %v11563_v63 = vmul.f32 %v11381_v27, %v12926_v52  ;;  %v12928_v35 = vld [vmem:[#allocation106_spill] sm:$0xff]  ;;  %v12930_v47 = vld [vmem:[#allocation101_spill] sm:$0xff]  ;;  %v11581_v52 = vsel %vm1502_vm2, %v4385_v56, %v4386_v41 }
 0xafd   :  { %12918 = vst [vmem:[#allocation182_spill] sm:$0xff] %v11537_v16  ;;  %12920 = vst [vmem:[#allocation177_spill] sm:$0xff] %v11545_v43  ;;  %7293 = vmatprep.subr.bf16.mxu1 %v8180_v26  ;;  %v11569_v20 = vmul.f32 %v11390_v0, %v12928_v35  ;;  %v11573_v55 = vmul.f32 %v11411_v39, %v12930_v47  ;;  %v12932_v16 = vld [vmem:[#allocation108_spill] sm:$0xff]  ;;  %v12934_v47 = vpack.c.bf16 %v11310_v61, %v11299_v59  ;;  %v8182_v36 = vld [vmem:[#allocation22 + $0xa0] sm:$0xff]  }
 0xafe   :  { %12923 = vst [vmem:[#allocation201_spill] sm:$0xff] %v11555_v60  ;;  %12925 = vst [vmem:[#allocation183_spill] sm:$0xff] %v11559_v48  ;;  %v11577_v7 = vmul.f32 %v11370_v19, %v12932_v16  ;;  %v12935_v35 = vpack.c.bf16 %v11321_v23, %v11314_v40  ;;  %v12936_v56 = vld [vmem:[#allocation103_spill] sm:$0xff]  ;;  %v12941_v40 = vld [vmem:[#allocation105_spill] sm:$0xff] }
 0xaff   :  { %12927 = vst [vmem:[#allocation208_spill] sm:$0xff] %v11563_v63  ;;  %12929 = vst [vmem:[#allocation204_spill] sm:$0xff] %v11569_v20  ;;  %7278 = vmatmul.mubr.bf16.gmra.mrb[12].mxu1 %v12934_v47  ;;  %v11611_v16 = vmul.f32 %v12937_v46, %v12936_v56  ;;  %v12942_v23 = vld [vmem:[#allocation82_spill] sm:$0xff]  ;;  %v12944_v59 = vld [vmem:[#allocation112_spill] sm:$0xff]  ;;  %v11631_v56 = vmul.f32 %v11480_v49, %v12948_v29 }
 0xb00   :  { %12931 = vst [vmem:[#allocation238_spill] sm:$0xff] %v11573_v55  ;;  %12933 = vst [vmem:[#allocation223_spill] sm:$0xff] %v11577_v7  ;;  %7294 = vmatpush3.bf16.msra.mxu1 %v8180_v26  ;;  %7281 = vmatprep.mubr.bf16.mxu1 %v12935_v35  ;;  %v12939_v26 = vld [vmem:[#allocation110_spill] sm:$0xff]  ;;  %v11619_v35 = vmul.f32 %v12942_v23, %v12941_v40  ;;  %v11623_v61 = vmul.f32 %v11439_v34, %v12944_v59  ;;  %v12946_v44 = vld [vmem:[#allocation109_spill] sm:$0xff] }
 0xb01   :  { %7295 = vmatprep.subr.bf16.mxu1 %v8181_v45  ;;  %12938 = vst [vmem:[#allocation186_spill] sm:$0xff] %v11611_v16  ;;  %v11615_v41 = vmul.f32 %v11402_v58, %v12939_v26  ;;  %v11627_v47 = vmul.f32 %v11484_v25, %v12946_v44  ;;  %12949 = vst [vmem:[#allocation226_spill] sm:$0xff] %v11631_v56  ;;  %v12950_v55 = vld [vmem:[#allocation111_spill] sm:$0xff]  ;;  %v12952_v7 = vld [vmem:[#allocation116_spill] sm:$0xff] }
 0xb02   :  { %12943 = vst [vmem:[#allocation240_spill] sm:$0xff] %v11619_v35  ;;  %12945 = vst [vmem:[#allocation239_spill] sm:$0xff] %v11623_v61  ;;  %v11635_v26 = vmul.f32 %v11488_v18, %v12950_v55  ;;  %v11639_v40 = vmul.f32 %v11495_v1, %v12952_v7  ;;  %v12954_v44 = vld [vmem:[#allocation113_spill] sm:$0xff]  ;;  %v12956_v29 = vld [vmem:[#allocation118_spill] sm:$0xff] }
 0xb03   :  { %12940 = vst [vmem:[#allocation180_spill] sm:$0xff] %v11615_v41  ;;  %12947 = vst [vmem:[#allocation227_spill] sm:$0xff] %v11627_v47  ;;  %v11647_v63 = vmul.f32 %v11503_v57, %v12954_v44  ;;  %v11651_v20 = vmul.f32 %v11499_v22, %v12956_v29  ;;  %v12958_v60 = vld [vmem:[#allocation115_spill] sm:$0xff]  ;;  %v12960_v59 = vld [vmem:[#allocation120_spill] sm:$0xff] }
 0xb04   :  { %12951 = vst [vmem:[#allocation202_spill] sm:$0xff] %v11635_v26  ;;  %12953 = vst [vmem:[#allocation196_spill] sm:$0xff] %v11639_v40  ;;  %7296 = vmatpush3.bf16.msra.mxu1 %v8181_v45  ;;  %v11659_v34 = vmul.f32 %v11507_v32, %v12958_v60  ;;  %v11663_v35 = vmul.f32 %v11523_v28, %v12960_v59  ;;  %v8183_v44 = vld [vmem:[#allocation22 + $0xa8] sm:$0xff]   ;;  %v12961_v45 = vld [vmem:[#allocation117_spill] sm:$0xff] }
 0xb05   :  { %12955 = vst [vmem:[#allocation224_spill] sm:$0xff] %v11647_v63  ;;  %12957 = vst [vmem:[#allocation209_spill] sm:$0xff] %v11651_v20  ;;  %7297 = vmatprep.subr.bf16.mxu1 %v8182_v36  ;;  %v11669_v31 = vmul.f32 %v11581_v52, %v12961_v45  ;;  %v12962_v55 = vld [vmem:[#allocation122_spill] sm:$0xff]  ;;  %v12963_v56 = vld [vmem:[#allocation119_spill] sm:$0xff] }
 0xb06   :  { %12959 = vst [vmem:[#allocation242_spill] sm:$0xff] %v11659_v34  ;;  %v11673_v7 = vmul.f32 %v11529_v13, %v12962_v55  ;;  %v12964_v60 = vld [vmem:[#allocation218_spill] sm:$0xff]  ;;  %v12965_v61 = vld [vmem:[#allocation124_spill] sm:$0xff]  ;;  %v12966_v47 = vld [vmem:[#allocation231_spill] sm:$0xff] }
 0xb07   :  { %v11677_v26 = vmul.f32 %v12964_v60, %v12963_v56  ;;  %v11683_v16 = vmul.f32 %v12966_v47, %v12965_v61  ;;  %v12967_v29 = vld [vmem:[#allocation121_spill] sm:$0xff]  ;;  %v12968_v45 = vld [vmem:[#allocation219_spill] sm:$0xff]  ;;  %v12969_v63 = vld [vmem:[#allocation70_spill] sm:$0xff] }
 0xb08   :  { %v11687_v40 = vmul.f32 %v11210_v14, %v12967_v29  ;;  %v12970_v55 = vld [vmem:[#allocation71_spill] sm:$0xff]  ;;  %v12971_v48 = vld [vmem:[#allocation80_spill] sm:$0xff]  ;;  %v12973_v20 = vld [vmem:[#allocation125_spill] sm:$0xff]  ;;  %7298 = vmatpush3.bf16.msra.mxu1 %v8182_v36  ;;  %v12975_v29 = vpack.c.bf16 %v11419_v15, %v11415_v11 }
 0xb09   :  { %v12972_v43 = vpack.c.bf16 %v12970_v55, %v12971_v48  ;;  %v11700_v61 = vmul.f32 %v11271_v12, %v12973_v20  ;;  %v12974_v34 = vld [vmem:[#allocation128_spill] sm:$0xff]  ;;  %v12976_v48 = vld [vmem:[#allocation127_spill] sm:$0xff]  ;;  %v12978_v41 = vld [vmem:[#allocation130_spill] sm:$0xff]  ;;  %7299 = vmatprep.subr.bf16.mxu1 %v8183_v44 }
 0xb0a   :  { %v11704_v14 = vmul.f32 %v11275_v54, %v12974_v34  ;;  %v11713_v55 = vmul.f32 %v11279_v38, %v12976_v48  ;;  %v11717_v12 = vmul.f32 %v11290_v4, %v12978_v41  ;;  %v8184_v20 = vld [vmem:[#allocation22 + $0xb0] sm:$0xff]   ;;  %v12985_v41 = vld [vmem:[#allocation134_spill] sm:$0xff] }
 0xb0b   :  { %7282 = vmatmul.mubr.bf16.gmra.mrb[16].mxu1 %v12972_v43  ;;  %v12979_v36 = vld [vmem:[#allocation129_spill] sm:$0xff]  ;;  %v12981_v15 = vld [vmem:[#allocation132_spill] sm:$0xff]  ;;  %v11737_v48 = vmul.f32 %v11381_v27, %v12985_v41  ;;  %v12994_v4 = vld [vmem:[#allocation230_spill] sm:$0xff] }
 0xb0c   :  { %7285 = vmatprep.mubr.bf16.mxu1 %v12975_v29  ;;  %12977 = vst [vmem:[#allocation241_spill] sm:$0xff] %v11713_v55  ;;  %v11723_v11 = vmul.f32 %v11329_v6, %v12979_v36  ;;  %v11727_v34 = vmul.f32 %v11325_v51, %v12981_v15  ;;  %v12983_v29 = vld [vmem:[#allocation131_spill] sm:$0xff]  ;;  %v12987_v54 = vld [vmem:[#allocation133_spill] sm:$0xff]  ;;  %v12989_v6 = vld [vmem:[#allocation136_spill] sm:$0xff]  ;;  %7300 = vmatpush3.bf16.msra.mxu1 %v8183_v44 }
 0xb0d   :  { %v11731_v38 = vmul.f32 %v11385_v42, %v12983_v29  ;;  %12986 = vst [vmem:[#allocation165_spill] sm:$0xff] %v11737_v48  ;;  %v11741_v43 = vmul.f32 %v11390_v0, %v12987_v54  ;;  %v11745_v36 = vmul.f32 %v11411_v39, %v12989_v6  ;;  %v12991_v42 = vld [vmem:[#allocation135_spill] sm:$0xff]  ;;  %v12993_v29 = vld [vmem:[#allocation138_spill] sm:$0xff]  ;;  %v12996_v27 = vld [vmem:[#allocation137_spill] sm:$0xff]  ;;  %7301 = vmatprep.subr.bf16.mxu1 %v8184_v20 }
 0xb0e   :  { %12980 = vst [vmem:[#allocation243_spill] sm:$0xff] %v11723_v11  ;;  %12982 = vst [vmem:[#allocation161_spill] sm:$0xff] %v11727_v34  ;;  %v11751_v15 = vmul.f32 %v11370_v19, %v12991_v42  ;;  %v11755_v59 = vmul.f32 %v12994_v4, %v12993_v29  ;;  %v12997_v41 = vld [vmem:[#allocation229_spill] sm:$0xff]  ;;  %v12999_v54 = vld [vmem:[#allocation140_spill] sm:$0xff] }
 0xb0f   :  { %12984 = vst [vmem:[#allocation158_spill] sm:$0xff] %v11731_v38  ;;  %12988 = vst [vmem:[#allocation163_spill] sm:$0xff] %v11741_v43  ;;  %v11759_v56 = vmul.f32 %v12997_v41, %v12996_v27  ;;  %v11767_v6 = vmul.f32 %v11161_v10, %v12999_v54  ;;  %v13001_v19 = vld [vmem:[#allocation139_spill] sm:$0xff]  ;;  %v8185_v29 = vld [vmem:[#allocation22 + $0xb8] sm:$0xff]  }
 0xb10   :  { %12990 = vst [vmem:[#allocation169_spill] sm:$0xff] %v11745_v36  ;;  %12992 = vst [vmem:[#allocation167_spill] sm:$0xff] %v11751_v15  ;;  %v11771_v42 = vmul.f32 %v11170_v3, %v13001_v19  ;;  %v13003_v44 = vld [vmem:[#allocation141_spill] sm:$0xff]  ;;  %v13004_v0 = vld [vmem:[#allocation142_spill] sm:$0xff]  ;;  %7302 = vmatpush3.bf16.msra.mxu1 %v8184_v20 }
 0xb11   :  { %12995 = vst [vmem:[#allocation176_spill] sm:$0xff] %v11755_v59  ;;  %12998 = vst [vmem:[#allocation172_spill] sm:$0xff] %v11759_v56  ;;  %v11777_v51 = vmul.f32 %v11175_v2, %v13003_v44  ;;  %v11781_v39 = vmul.f32 %v11182_v8, %v13004_v0  ;;  %v13006_v43 = vld [vmem:[#allocation143_spill] sm:$0xff]  ;;  %v13008_v36 = vld [vmem:[#allocation144_spill] sm:$0xff]  ;;  %7303 = vmatprep.subr.bf16.mxu1 %v8185_v29 }
 0xb12   :  { %13000 = vst [vmem:[#allocation181_spill] sm:$0xff] %v11767_v6  ;;  %13002 = vst [vmem:[#allocation179_spill] sm:$0xff] %v11771_v42  ;;  %v11785_v54 = vmul.f32 %v11185_v9, %v13006_v43  ;;  %v11791_v38 = vmul.f32 %v11192_v62, %v13008_v36  ;;  %v13010_v27 = vld [vmem:[#allocation145_spill] sm:$0xff]  ;;  %v13012_v44 = vld [vmem:[#allocation146_spill] sm:$0xff] }
 0xb13   :  { %13005 = vst [vmem:[#allocation187_spill] sm:$0xff] %v11781_v39  ;;  %v11795_v15 = vmul.f32 %v11195_v5, %v13010_v27  ;;  %v11799_v59 = vmul.f32 %v11217_v37, %v13012_v44  ;;  %v13014_v0 = vld [vmem:[#allocation234_spill] sm:$0xff]  ;;  %v13015_v48 = vld [vmem:[#allocation75_spill] sm:$0xff]  ;;  %v13019_v27 = vld [vmem:[#allocation148_spill] sm:$0xff] }
 0xb14   :  { %13007 = vst [vmem:[#allocation185_spill] sm:$0xff] %v11785_v54  ;;  %13009 = vst [vmem:[#allocation210_spill] sm:$0xff] %v11791_v38  ;;  %v13016_v11 = vpack.c.bf16 %v13014_v0, %v13015_v48  ;;  %v13017_v36 = vld [vmem:[#allocation147_spill] sm:$0xff]  ;;  %v11814_v6 = vmul.f32 %v11264_v33, %v13019_v27  ;;  %v13021_v44 = vld [vmem:[#allocation184_spill] sm:$0xff]  ;;  %7304 = vmatpush3.bf16.msra.mxu1 %v8185_v29 }
 0xb15   :  { %13011 = vst [vmem:[#allocation203_spill] sm:$0xff] %v11795_v15  ;;  %13013 = vst [vmem:[#allocation213_spill] sm:$0xff] %v11799_v59  ;;  %v11810_v56 = vmul.f32 %v11220_v30, %v13017_v36  ;;  %v13022_v34 = vld [vmem:[#allocation73_spill] sm:$0xff]  ;;  %v13025_v19 = vld [vmem:[#allocation150_spill] sm:$0xff] }
 0xb16   :  { %7286 = vmatmul.mubr.bf16.gmra.mrb[20].mxu1 %v13016_v11  ;;  %13020 = vst [vmem:[#allocation178_spill] sm:$0xff] %v11814_v6  ;;  %v13023_v55 = vpack.c.bf16 %v13021_v44, %v13022_v34  ;;  %v13024_v48 = vld [vmem:[#allocation149_spill] sm:$0xff]  ;;  %v11827_v36 = vmul.f32 %v11317_v17, %v13025_v19  ;;  %v8186_v43 = vld [vmem:[#allocation22 + $0xc0] sm:$0xff]   ;;  %v13027_v39 = vld [vmem:[#allocation232_spill] sm:$0xff] }
 0xb17   :  { %13018 = vst [vmem:[#allocation212_spill] sm:$0xff] %v11810_v56  ;;  %v11823_v0 = vmul.f32 %v11304_v50, %v13024_v48  ;;  %v13026_v27 = vld [vmem:[#allocation233_spill] sm:$0xff]  ;;  %v13029_v11 = vld [vmem:[#allocation154_spill] sm:$0xff]  ;;  %v13031_v19 = vld [vmem:[#allocation155_spill] sm:$0xff]  ;;  %7321 = vmatprep.subr.bf16.mxu1 %v8186_v43 }
 0xb18   :  { %7305 = vmatprep.mubr.bf16.mxu1 %v13023_v55  ;;  %v4421_v20 = vpack.c.bf16 %v13027_v39, %v13026_v27  ;;  %v13028_v55 = vld [vmem:[#allocation151_spill] sm:$0xff]  ;;  %v11841_v38 = vmul.f32 %v11402_v58, %v13029_v11  ;;  %v11845_v15 = vmul.f32 %v12942_v23, %v13031_v19  ;;  %v13035_v42 = vld [vmem:[#allocation225_spill] sm:$0xff]  ;;  %v13037_v56 = vld [vmem:[#allocation160_spill] sm:$0xff] }
 0xb19   :  { %v11835_v44 = vmul.f32 %v11334_v24, %v13028_v55  ;;  %v13036_v34 = vld [vmem:[#allocation235_spill] sm:$0xff]  ;;  %v11855_v48 = vmul.f32 %v11484_v25, %v13037_v56  ;;  %v13044_v27 = vld [vmem:[#allocation190_spill] sm:$0xff]  ;;  %v13045_v29 = vld [vmem:[#allocation189_spill] sm:$0xff] }
 0xb1a   :  { %13030 = vst [vmem:[#allocation168_spill] sm:$0xff] %v11841_v38  ;;  %13032 = vst [vmem:[#allocation191_spill] sm:$0xff] %v11845_v15  ;;  %v4422_v59 = vpack.c.bf16 %v13036_v34, %v13035_v42  ;;  %v13039_v6 = vld [vmem:[#allocation159_spill] sm:$0xff]  ;;  %v13043_v42 = vld [vmem:[#allocation174_spill] sm:$0xff]  ;;  %v11873_v56 = vmul.f32 %v11503_v57, %v13044_v27  ;;  %v11879_v23 = vmul.f32 %v11499_v22, %v13045_v29 }
 0xb1b   :  { %13038 = vst [vmem:[#allocation188_spill] sm:$0xff] %v11855_v48  ;;  %v11859_v58 = vmul.f32 %v11480_v49, %v13039_v6  ;;  %v13041_v11 = vld [vmem:[#allocation175_spill] sm:$0xff]  ;;  %v11869_v34 = vmul.f32 %v11495_v1, %v13043_v42  ;;  %v13046_v54 = vld [vmem:[#allocation198_spill] sm:$0xff]  ;;  %v13048_v39 = vld [vmem:[#allocation197_spill] sm:$0xff] }
 0xb1c   :  { %v11865_v19 = vmul.f32 %v11488_v18, %v13041_v11  ;;  %v8187_v55 = vld [vmem:[#allocation22 + $0xc8] sm:$0xff]   ;;  %v11883_v11 = vmul.f32 %v11507_v32, %v13046_v54  ;;  %v11887_v42 = vmul.f32 %v11523_v28, %v13048_v39  ;;  %v13051_v6 = vld [vmem:[#allocation206_spill] sm:$0xff]  ;;  %v13052_v29 = vld [vmem:[#allocation217_spill] sm:$0xff] }
 0xb1d   :  { %13040 = vst [vmem:[#allocation192_spill] sm:$0xff] %v11859_v58  ;;  %v13049_v38 = vld [vmem:[#allocation207_spill] sm:$0xff]  ;;  %v11897_v48 = vmul.f32 %v11529_v13, %v13051_v6  ;;  %v11901_v58 = vmul.f32 %v12964_v60, %v13052_v29  ;;  %v13053_v27 = vld [vmem:[#allocation216_spill] sm:$0xff]  ;;  %v13055_v29 = vld [vmem:[#allocation77_spill] sm:$0xff] }
 0xb1e   :  { %13042 = vst [vmem:[#allocation193_spill] sm:$0xff] %v11865_v19  ;;  %13047 = vst [vmem:[#allocation194_spill] sm:$0xff] %v11883_v11  ;;  %v11893_v15 = vmul.f32 %v11581_v52, %v13049_v38  ;;  %7306 = vmatmul.mubr.bf16.vlgmr.msra.gmra.mrb[8].mxu1 %v4421_v20  ;;  %v11909_v19 = vmul.f32 %v12937_v46, %v13053_v27  ;;  %v8188_v6 = vld [vmem:[#allocation22 + $0xd0] sm:$0xff]   ;;  %v4411_v54 = vmul.f32 %v11480_v49, %v13055_v29  ;;  %v13056_v11 = vld [vmem:[#allocation86_spill] sm:$0xff] }
 0xb1f   :  { %7322 = vmatpush3.bf16.msra.mxu1 %v8186_v43  ;;  %7309 = vmatprep.mubr.bf16.mxu1 %v4422_v59  ;;  %v13054_v60 = vld [vmem:[#allocation84_spill] sm:$0xff]  ;;  %v4412_v46 = vmul.f32 %v11488_v18, %v13056_v11  ;;  %v13057_v27 = vld [vmem:[#allocation79_spill] sm:$0xff]  ;;  %v8189_v38 = vld [vmem:[#allocation22 + $0xd8] sm:$0xff]  }
 0xb20   :  { %13050 = vst [vmem:[#allocation195_spill] sm:$0xff] %v11893_v15  ;;  %7323 = vmatprep.subr.bf16.mxu1 %v8187_v55  ;;  %v4410_v20 = vmul.f32 %v11484_v25, %v13054_v60  ;;  %v4413_v59 = vmul.f32 %v11495_v1, %v13057_v27  ;;  %v8190_v25 = vld [vmem:[#allocation22 + $0xe0] sm:$0xff]   ;;  %v13058_v49 = vld [vmem:[#allocation88_spill] sm:$0xff]  ;;  %v13059_v29 = vld [vmem:[#allocation81_spill] sm:$0xff] }
 0xb21   :  { %v4414_v60 = vmul.f32 %v11503_v57, %v13058_v49  ;;  %v4415_v39 = vmul.f32 %v11499_v22, %v13059_v29  ;;  %v13060_v18 = vld [vmem:[#allocation90_spill] sm:$0xff]  ;;  %v13061_v1 = vld [vmem:[#allocation83_spill] sm:$0xff]  ;;  %v13062_v57 = vld [vmem:[#allocation92_spill] sm:$0xff] }
 0xb22   :  { %v4423_v43 = vpack.c.bf16 %v4411_v54, %v4410_v20  ;;  %v4424_v15 = vpack.c.bf16 %v4413_v59, %v4412_v46  ;;  %v4416_v11 = vmul.f32 %v11507_v32, %v13060_v18  ;;  %v8191_v20 = vld [vmem:[#allocation22 + $0xe8] sm:$0xff]   ;;  %v4418_v46 = vmul.f32 %v11581_v52, %v13062_v57  ;;  %v13063_v22 = vld [vmem:[#allocation85_spill] sm:$0xff]  ;;  %v13064_v32 = vld [vmem:[#allocation94_spill] sm:$0xff] }
 0xb23   :  { %7324 = vmatpush3.bf16.msra.mxu1 %v8187_v55  ;;  %v4417_v55 = vmul.f32 %v11523_v28, %v13061_v1  ;;  %v4425_v54 = vpack.c.bf16 %v4415_v39, %v4414_v60  ;;  %v4419_v27 = vmul.f32 %v11529_v13, %v13063_v22  ;;  %v4606_v59 = vmul.f32 %v12994_v4, %v13064_v32  ;;  %v13065_v28 = vld [vmem:[#allocation87_spill] sm:$0xff]  ;;  %v13066_v13 = vld [vmem:[#allocation162_spill] sm:$0xff]  ;;  %v13068_v4 = vld [vmem:[#allocation173_spill] sm:$0xff] }
 0xb24   :  { %7325 = vmatprep.subr.bf16.mxu1 %v8188_v6  ;;  %v4607_v39 = vmul.f32 %v12966_v47, %v13065_v28  ;;  %v8194_v49 = vld [vmem:[#allocation22 + $0x100] sm:$0xff]   ;;  %v8195_v52 = vld [vmem:[#allocation22 + $0x108] sm:$0xff]   ;;  %v13067_v60 = vpack.c.bf16 %v11267_v21, %v13066_v13  ;;  %v8196_v18 = vld [vmem:[#allocation22 + $0x110] sm:$0xff]  }
 0xb25   :  { %v13069_v29 = vld [vmem:[#allocation166_spill] sm:$0xff]  ;;  %v13076_v57 = vld [vmem:[#allocation183_spill] sm:$0xff]  ;;  %v13080_v32 = vld [vmem:[#allocation208_spill] sm:$0xff] }
 0xb26   :  { %7310 = vmatmul.mubr.bf16.gmra.mrb[12].mxu1 %v4423_v43  ;;  %v8193_v43 = vld [vmem:[#allocation22 + $0xf8] sm:$0xff]   ;;  %v13070_v47 = vpack.c.bf16 %v13068_v4, %v13069_v29  ;;  %v8198_v21 = vld [vmem:[#allocation22 + $0x120] sm:$0xff]   ;;  %v8200_v28 = vld [vmem:[#allocation22 + $0x130] sm:$0xff]   ;;  %v13087_v4 = vpack.c.bf16 %v11182_v8, %v11175_v2  ;;  %v13090_v2 = vpack.c.bf16 %v11264_v33, %v11220_v30  ;;  %v13091_v8 = vpack.c.bf16 %v11317_v17, %v11304_v50 }
 0xb27   :  { %7326 = vmatpush3.bf16.msra.mxu1 %v8188_v6  ;;  %7313 = vmatprep.mubr.bf16.mxu1 %v4424_v15  ;;  %v4426_v6 = vpack.c.bf16 %v4417_v55, %v4416_v11  ;;  %v8192_v15 = vld [vmem:[#allocation22 + $0xf0] sm:$0xff]   ;;  %v8197_v11 = vld [vmem:[#allocation22 + $0x118] sm:$0xff]   ;;  %v8203_v13 = vld [vmem:[#allocation22 + $0x148] sm:$0xff]  }
 0xb28   :  { %7327 = vmatprep.subr.bf16.mxu1 %v8189_v38  ;;  %v13071_v1 = vld [vmem:[#allocation182_spill] sm:$0xff]  ;;  %v8211_v33 = vld [vmem:[#allocation22 + $0x188] sm:$0xff]  }
 0xb29   :  { %v13072_v55 = vld [vmem:[#allocation170_spill] sm:$0xff]  ;;  %v13097_v17 = vld [vmem:[#allocation236_spill] sm:$0xff] }
 0xb2a   :  { %v8205_v29 = vld [vmem:[#allocation22 + $0x158] sm:$0xff]   ;;  %v8210_v30 = vld [vmem:[#allocation22 + $0x180] sm:$0xff]   ;;  %v13098_v50 = vld [vmem:[#allocation240_spill] sm:$0xff] }
 0xb2b   :  { %7328 = vmatpush3.bf16.msra.mxu1 %v8189_v38  ;;  %v4427_v38 = vpack.c.bf16 %v4419_v27, %v4418_v46  ;;  %v13077_v46 = vld [vmem:[#allocation201_spill] sm:$0xff]  ;;  %v13079_v27 = vld [vmem:[#allocation204_spill] sm:$0xff] }
 0xb2c   :  { %7329 = vmatprep.subr.bf16.mxu1 %v8190_v25  ;;  %v13078_v22 = vpack.c.bf16 %v13076_v57, %v13077_v46  ;;  %v13103_v57 = vld [vmem:[#allocation202_spill] sm:$0xff] }
 0xb2d   :  { %v13104_v46 = vld [vmem:[#allocation226_spill] sm:$0xff] }
 0xb2e   :  { %7314 = vmatmul.mubr.bf16.gmra.mrb[16].mxu1 %v4425_v54  ;;  %v13073_v54 = vpack.c.bf16 %v13071_v1, %v13072_v55  ;;  %v13095_v1 = vld [vmem:[#allocation186_spill] sm:$0xff] }
 0xb2f   :  { %7330 = vmatpush3.bf16.msra.mxu1 %v8190_v25  ;;  %7317 = vmatprep.mubr.bf16.mxu1 %v4426_v6  ;;  %v4622_v25 = vpack.c.bf16 %v4607_v39, %v4606_v59  ;;  %v13081_v59 = vpack.c.bf16 %v13079_v27, %v13080_v32  ;;  %v13082_v39 = vld [vmem:[#allocation228_spill] sm:$0xff] }
 0xb30   :  { %7331 = vmatprep.subr.bf16.mxu1 %v8191_v20  ;;  %v13106_v27 = vld [vmem:[#allocation224_spill] sm:$0xff] }
 0xb31   :  { %v13107_v32 = vld [vmem:[#allocation196_spill] sm:$0xff] }
 0xb33   :  { %7332 = vmatpush3.bf16.msra.mxu1 %v8191_v20  ;;  %v13074_v20 = vld [vmem:[#allocation177_spill] sm:$0xff] }
 0xb34   :  { %7333 = vmatprep.subr.bf16.mxu1 %v8192_v15  ;;  %v13075_v6 = vpack.c.bf16 %v11549_v53, %v13074_v20  ;;  %v8201_v53 = vld [vmem:[#allocation22 + $0x138] sm:$0xff]   ;;  %v13100_v20 = vld [vmem:[#allocation227_spill] sm:$0xff] }
 0xb36   :  { %7318 = vmatmul.mubr.bf16.gmra.mrb[20].mxu1 %v4427_v38  ;;  %v4808_v38 = vpack.c.bf16 %v12997_v41, %v13082_v39  ;;  %v8204_v41 = vld [vmem:[#allocation22 + $0x150] sm:$0xff]  }
 0xb37   :  { %7334 = vmatpush3.bf16.msra.mxu1 %v8192_v15  ;;  %7337 = vmatprep.mubr.bf16.mxu1 %v4622_v25  ;;  %v8199_v15 = vld [vmem:[#allocation22 + $0x128] sm:$0xff]   ;;  %v13084_v25 = vld [vmem:[#allocation238_spill] sm:$0xff] }
 0xb38   :  { %7335 = vmatprep.subr.bf16.mxu1 %v8193_v43 }
 0xb3b   :  { %7336 = vmatpush3.bf16.msra.mxu1 %v8193_v43  ;;  %v13083_v43 = vld [vmem:[#allocation223_spill] sm:$0xff] }
 0xb3c   :  { %7353 = vmatprep.subr.bf16.mxu1 %v8194_v49 }
 0xb3e   :  { %7338 = vmatmul.mubr.bf16.vlgmr.msra.gmra.mrb[8].mxu1 %v13067_v60  ;;  %v13086_v60 = vpack.c.bf16 %v11170_v3, %v11161_v10  ;;  %v8206_v10 = vld [vmem:[#allocation22 + $0x160] sm:$0xff]   ;;  %v8207_v3 = vld [vmem:[#allocation22 + $0x168] sm:$0xff]  }
 0xb3f   :  { %7354 = vmatpush3.bf16.msra.mxu1 %v8194_v49  ;;  %7341 = vmatprep.mubr.bf16.mxu1 %v13070_v47  ;;  %v13085_v49 = vpack.c.bf16 %v13083_v43, %v13084_v25  ;;  %v13088_v47 = vpack.c.bf16 %v11192_v62, %v11185_v9  ;;  %v8208_v9 = vld [vmem:[#allocation22 + $0x170] sm:$0xff]   ;;  %v8209_v62 = vld [vmem:[#allocation22 + $0x178] sm:$0xff]  }
 0xb40   :  { %7355 = vmatprep.subr.bf16.mxu1 %v8195_v52  ;;  %v13110_v43 = vld [vmem:[#allocation209_spill] sm:$0xff] }
 0xb43   :  { %7356 = vmatpush3.bf16.msra.mxu1 %v8195_v52  ;;  %v8202_v52 = vld [vmem:[#allocation22 + $0x140] sm:$0xff]  }
 0xb44   :  { %7357 = vmatprep.subr.bf16.mxu1 %v8196_v18 }
 0xb46   :  { %7342 = vmatmul.mubr.bf16.gmra.mrb[12].mxu1 %v13073_v54  ;;  %v13099_v54 = vpack.c.bf16 %v13097_v17, %v13098_v50  ;;  %v8226_v17 = vld [vmem:[#allocation22 + $0x200] sm:$0xff]   ;;  %v8227_v50 = vld [vmem:[#allocation22 + $0x208] sm:$0xff]  }
 0xb47   :  { %7358 = vmatpush3.bf16.msra.mxu1 %v8196_v18  ;;  %7345 = vmatprep.mubr.bf16.mxu1 %v13075_v6  ;;  %v13089_v18 = vpack.c.bf16 %v11217_v37, %v11195_v5  ;;  %v13092_v5 = vld [vmem:[#allocation222_spill] sm:$0xff]  ;;  %v13101_v6 = vld [vmem:[#allocation239_spill] sm:$0xff] }
 0xb48   :  { %7359 = vmatprep.subr.bf16.mxu1 %v8197_v11  ;;  %v13093_v37 = vpack.c.bf16 %v13092_v5, %v11334_v24  ;;  %v8212_v24 = vld [vmem:[#allocation22 + $0x190] sm:$0xff]  }
 0xb4b   :  { %7360 = vmatpush3.bf16.msra.mxu1 %v8197_v11  ;;  %v13094_v11 = vld [vmem:[#allocation180_spill] sm:$0xff] }
 0xb4c   :  { %7361 = vmatprep.subr.bf16.mxu1 %v8198_v21  ;;  %v13096_v55 = vpack.c.bf16 %v13094_v11, %v13095_v1  ;;  %v13129_v11 = vld [vmem:[#allocation167_spill] sm:$0xff] }
 0xb4e   :  { %7346 = vmatmul.mubr.bf16.gmra.mrb[16].mxu1 %v13078_v22  ;;  %v13105_v22 = vpack.c.bf16 %v13103_v57, %v13104_v46  ;;  %v8229_v57 = vld [vmem:[#allocation22 + $0x218] sm:$0xff]   ;;  %v13139_v46 = vld [vmem:[#allocation203_spill] sm:$0xff] }
 0xb4f   :  { %7362 = vmatpush3.bf16.msra.mxu1 %v8198_v21  ;;  %7349 = vmatprep.mubr.bf16.mxu1 %v13081_v59  ;;  %v13102_v21 = vpack.c.bf16 %v13100_v20, %v13101_v6  ;;  %v13108_v59 = vpack.c.bf16 %v13106_v27, %v13107_v32  ;;  %v13136_v6 = vld [vmem:[#allocation185_spill] sm:$0xff]  ;;  %v13142_v32 = vld [vmem:[#allocation212_spill] sm:$0xff] }
 0xb50   :  { %7363 = vmatprep.subr.bf16.mxu1 %v8199_v15 }
 0xb53   :  { %7364 = vmatpush3.bf16.msra.mxu1 %v8199_v15  ;;  %v8213_v15 = vld [vmem:[#allocation22 + $0x198] sm:$0xff]  }
 0xb54   :  { %7365 = vmatprep.subr.bf16.mxu1 %v8200_v28 }
 0xb56   :  { %7350 = vmatmul.mubr.bf16.gmra.mrb[20].mxu1 %v13085_v49  ;;  %v13112_v49 = vpack.c.bf16 %v11669_v31, %v11663_v35  ;;  %v8219_v31 = vld [vmem:[#allocation22 + $0x1c8] sm:$0xff]   ;;  %v13115_v35 = vpack.c.bf16 %v12969_v63, %v12968_v45  ;;  %v8222_v63 = vld [vmem:[#allocation22 + $0x1e0] sm:$0xff]  }
 0xb57   :  { %7366 = vmatpush3.bf16.msra.mxu1 %v8200_v28  ;;  %7369 = vmatprep.mubr.bf16.mxu1 %v4808_v38  ;;  %v8214_v28 = vld [vmem:[#allocation22 + $0x1a0] sm:$0xff]   ;;  %v8223_v45 = vld [vmem:[#allocation22 + $0x1e8] sm:$0xff]  }
 0xb58   :  { %7367 = vmatprep.subr.bf16.mxu1 %v8201_v53  ;;  %v13109_v38 = vld [vmem:[#allocation242_spill] sm:$0xff] }
 0xb59   :  { %v13111_v25 = vpack.c.bf16 %v13109_v38, %v13110_v43  ;;  %v13145_v38 = vld [vmem:[#allocation178_spill] sm:$0xff] }
 0xb5a   :  { %v13146_v43 = vpack.c.bf16 %v11823_v0, %v13145_v38  ;;  %v13150_v0 = vld [vmem:[#allocation191_spill] sm:$0xff] }
 0xb5b   :  { %7368 = vmatpush3.bf16.msra.mxu1 %v8201_v53  ;;  %v8215_v53 = vld [vmem:[#allocation22 + $0x1a8] sm:$0xff]  }
 0xb5c   :  { %7385 = vmatprep.subr.bf16.mxu1 %v8202_v52 }
 0xb5e   :  { %7370 = vmatmul.mubr.bf16.vlgmr.msra.gmra.mrb[8].mxu1 %v13086_v60  ;;  %v13113_v60 = vpack.c.bf16 %v11677_v26, %v11673_v7  ;;  %v8220_v26 = vld [vmem:[#allocation22 + $0x1d0] sm:$0xff]  }
 0xb5f   :  { %7386 = vmatpush3.bf16.msra.mxu1 %v8202_v52  ;;  %7373 = vmatprep.mubr.bf16.mxu1 %v13087_v4  ;;  %v8216_v52 = vld [vmem:[#allocation22 + $0x1b0] sm:$0xff]   ;;  %v13114_v4 = vpack.c.bf16 %v11687_v40, %v11683_v16  ;;  %v8221_v16 = vld [vmem:[#allocation22 + $0x1d8] sm:$0xff]  }
 0xb60   :  { %7387 = vmatprep.subr.bf16.mxu1 %v8203_v13  ;;  %v13117_v40 = vld [vmem:[#allocation241_spill] sm:$0xff] }
 0xb61   :  { %v13118_v7 = vpack.c.bf16 %v11717_v12, %v13117_v40  ;;  %v8224_v12 = vld [vmem:[#allocation22 + $0x1f0] sm:$0xff]  }
 0xb62   :  { %v13157_v40 = vld [vmem:[#allocation188_spill] sm:$0xff] }
 0xb63   :  { %7388 = vmatpush3.bf16.msra.mxu1 %v8203_v13  ;;  %v8217_v13 = vld [vmem:[#allocation22 + $0x1b8] sm:$0xff]  }
 0xb64   :  { %7389 = vmatprep.subr.bf16.mxu1 %v8204_v41 }
 0xb66   :  { %7374 = vmatmul.mubr.bf16.gmra.mrb[12].mxu1 %v13088_v47  ;;  %v13119_v47 = vld [vmem:[#allocation161_spill] sm:$0xff] }
 0xb67   :  { %7390 = vmatpush3.bf16.msra.mxu1 %v8204_v41  ;;  %7377 = vmatprep.mubr.bf16.mxu1 %v13089_v18  ;;  %v8218_v41 = vld [vmem:[#allocation22 + $0x1c0] sm:$0xff]  }
 0xb68   :  { %7391 = vmatprep.subr.bf16.mxu1 %v8205_v29  ;;  %v13120_v18 = vld [vmem:[#allocation243_spill] sm:$0xff] }
 0xb6b   :  { %7392 = vmatpush3.bf16.msra.mxu1 %v8205_v29  ;;  %v13116_v29 = vpack.c.bf16 %v11704_v14, %v11700_v61  ;;  %v13122_v61 = vld [vmem:[#allocation165_spill] sm:$0xff]  ;;  %v13123_v14 = vld [vmem:[#allocation158_spill] sm:$0xff] }
 0xb6c   :  { %7393 = vmatprep.subr.bf16.mxu1 %v8206_v10 }
 0xb6e   :  { %7378 = vmatmul.mubr.bf16.gmra.mrb[16].mxu1 %v13090_v2  ;;  %v13125_v2 = vld [vmem:[#allocation169_spill] sm:$0xff] }
 0xb6f   :  { %7394 = vmatpush3.bf16.msra.mxu1 %v8206_v10  ;;  %7381 = vmatprep.mubr.bf16.mxu1 %v13091_v8  ;;  %v13121_v10 = vpack.c.bf16 %v13119_v47, %v13120_v18  ;;  %v13126_v8 = vld [vmem:[#allocation163_spill] sm:$0xff]  ;;  %v8236_v47 = vld [vmem:[#allocation25 + $0x10] sm:$0xff]   ;;  %v8237_v18 = vld [vmem:[#allocation25 + $0x18] sm:$0xff]  }
 0xb70   :  { %7395 = vmatprep.subr.bf16.mxu1 %v8207_v3 }
 0xb73   :  { %7396 = vmatpush3.bf16.msra.mxu1 %v8207_v3  ;;  %v13124_v3 = vpack.c.bf16 %v13122_v61, %v13123_v14  ;;  %v8238_v61 = vld [vmem:[#allocation25 + $0x20] sm:$0xff]   ;;  %v8239_v14 = vld [vmem:[#allocation25 + $0x28] sm:$0xff]  }
 0xb74   :  { %7397 = vmatprep.subr.bf16.mxu1 %v8208_v9 }
 0xb76   :  { %7382 = vmatmul.mubr.bf16.gmra.mrb[20].mxu1 %v13093_v37  ;;  %v13128_v37 = vld [vmem:[#allocation176_spill] sm:$0xff] }
 0xb77   :  { %7398 = vmatpush3.bf16.msra.mxu1 %v8208_v9  ;;  %7401 = vmatprep.mubr.bf16.mxu1 %v13096_v55  ;;  %v13127_v9 = vpack.c.bf16 %v13125_v2, %v13126_v8  ;;  %v13130_v1 = vpack.c.bf16 %v13128_v37, %v13129_v11  ;;  %v13131_v55 = vld [vmem:[#allocation181_spill] sm:$0xff]  ;;  %v13164_v8 = vld [vmem:[#allocation195_spill] sm:$0xff]  ;;  %v13166_v37 = vpack.c.bf16 %v11909_v19, %v11901_v58 }
 0xb78   :  { %7399 = vmatprep.subr.bf16.mxu1 %v8209_v62  ;;  %v8393_v11 = vld [vmem:[#allocation2 + $0x18] sm:$0xff]  ;;  %v8400_v58 = vld [vmem:[#allocation2 + $0x50] sm:$0xff] }
 0xb79   :  { %v8401_v19 = vld [vmem:[#allocation2 + $0x58] sm:$0xff] }
 0xb7b   :  { %7400 = vmatpush3.bf16.msra.mxu1 %v8209_v62  ;;  %v8225_v62 = vld [vmem:[#allocation22 + $0x1f8] sm:$0xff]  }
 0xb7c   :  { %7417 = vmatprep.subr.bf16.mxu1 %v8210_v30 }
 0xb7e   :  { %7402 = vmatmul.mubr.bf16.vlgmr.msra.gmra.mrb[8].mxu1 %v13099_v54  ;;  %v13134_v54 = vld [vmem:[#allocation179_spill] sm:$0xff] }
 0xb7f   :  { %7418 = vmatpush3.bf16.msra.mxu1 %v8210_v30  ;;  %7405 = vmatprep.mubr.bf16.mxu1 %v13102_v21  ;;  %v13132_v30 = vld [vmem:[#allocation172_spill] sm:$0xff]  ;;  %v13135_v20 = vpack.c.bf16 %v11777_v51, %v13134_v54  ;;  %v13137_v21 = vld [vmem:[#allocation187_spill] sm:$0xff]  ;;  %v8398_v54 = vld [vmem:[#allocation2 + $0x40] sm:$0xff] }
 0xb80   :  { %7419 = vmatprep.subr.bf16.mxu1 %v8211_v33  ;;  %v8230_v51 = vld [vmem:[#allocation22 + $0x220] sm:$0xff]  }
 0xb83   :  { %7420 = vmatpush3.bf16.msra.mxu1 %v8211_v33  ;;  %v13133_v33 = vpack.c.bf16 %v13131_v55, %v13132_v30  ;;  %v8395_v55 = vld [vmem:[#allocation2 + $0x28] sm:$0xff] }
 0xb84   :  { %7421 = vmatprep.subr.bf16.mxu1 %v8212_v24 }
 0xb86   :  { %7406 = vmatmul.mubr.bf16.gmra.mrb[12].mxu1 %v13105_v22  ;;  %v13140_v22 = vld [vmem:[#allocation210_spill] sm:$0xff] }
 0xb87   :  { %7422 = vmatpush3.bf16.msra.mxu1 %v8212_v24  ;;  %7409 = vmatprep.mubr.bf16.mxu1 %v13108_v59  ;;  %v13138_v24 = vpack.c.bf16 %v13136_v6, %v13137_v21  ;;  %v13141_v27 = vpack.c.bf16 %v13139_v46, %v13140_v22  ;;  %v13143_v59 = vld [vmem:[#allocation213_spill] sm:$0xff]  ;;  %v5830_v21 = vpack.c.bf16 %v8401_v19, %v8400_v58  ;;  %v8404_v46 = vld [vmem:[#allocation2 + $0x70] sm:$0xff] }
 0xb88   :  { %7423 = vmatprep.subr.bf16.mxu1 %v8213_v15  ;;  %v8405_v22 = vld [vmem:[#allocation2 + $0x78] sm:$0xff] }
 0xb8b   :  { %7424 = vmatpush3.bf16.msra.mxu1 %v8213_v15  ;;  %v8228_v15 = vld [vmem:[#allocation22 + $0x210] sm:$0xff]  }
 0xb8c   :  { %7425 = vmatprep.subr.bf16.mxu1 %v8214_v28 }
 0xb8e   :  { %7410 = vmatmul.mubr.bf16.gmra.mrb[16].mxu1 %v13111_v25  ;;  %v13147_v25 = vpack.c.bf16 %v11835_v44, %v11827_v36  ;;  %v8234_v36 = vld [vmem:[#allocation25] sm:$0xff]   ;;  %v8235_v44 = vld [vmem:[#allocation25 + $0x8] sm:$0xff]  }
 0xb8f   :  { %7426 = vmatpush3.bf16.msra.mxu1 %v8214_v28  ;;  %7413 = vmatprep.mubr.bf16.mxu1 %v13112_v49  ;;  %v13144_v28 = vpack.c.bf16 %v13142_v32, %v13143_v59  ;;  %v8232_v49 = vld [vmem:[#allocation22 + $0x230] sm:$0xff]   ;;  %v6207_v32 = vld [vmem:[#allocation23] ss:$0 sm:$0xff]  ;;  %v6208_v59 = vld [vmem:[#allocation26] ss:$0 sm:$0xff] }
 0xb90   :  { %7427 = vmatprep.subr.bf16.mxu1 %v8215_v53 }
 0xb93   :  { %7428 = vmatpush3.bf16.msra.mxu1 %v8215_v53  ;;  %v8231_v53 = vld [vmem:[#allocation22 + $0x228] sm:$0xff]  }
 0xb94   :  { %7429 = vmatprep.subr.bf16.mxu1 %v8216_v52 }
 0xb96   :  { %7414 = vmatmul.mubr.bf16.gmra.mrb[20].mxu1 %v13113_v60  ;;  %v13149_v60 = vld [vmem:[#allocation153_spill] sm:$0xff] }
 0xb97   :  { %7430 = vmatpush3.bf16.msra.mxu1 %v8216_v52  ;;  %7433 = vmatprep.mubr.bf16.mxu1 %v13114_v4  ;;  %v13148_v52 = vld [vmem:[#allocation152_spill] sm:$0xff]  ;;  %v5413_v4 = vmul.f32 %v13082_v39, %v13149_v60 }
 0xb98   :  { %7431 = vmatprep.subr.bf16.mxu1 %v8217_v13  ;;  %v13156_v39 = vld [vmem:[#allocation192_spill] sm:$0xff] }
 0xb9b   :  { %7432 = vmatpush3.bf16.msra.mxu1 %v8217_v13  ;;  %v5412_v13 = vmul.f32 %v13092_v5, %v13148_v52  ;;  %v13154_v5 = vld [vmem:[#allocation237_spill] sm:$0xff] }
 0xb9c   :  { %7449 = vmatprep.subr.bf16.mxu1 %v8218_v41 }
 0xb9e   :  { %7434 = vmatmul.mubr.bf16.vlgmr.msra.gmra.mrb[8].mxu1 %v13115_v35  ;;  %v13151_v35 = vld [vmem:[#allocation168_spill] sm:$0xff] }
 0xb9f   :  { %7450 = vmatpush3.bf16.msra.mxu1 %v8218_v41  ;;  %7437 = vmatprep.mubr.bf16.mxu1 %v13116_v29  ;;  %v5421_v41 = vpack.c.bf16 %v5413_v4, %v5412_v13  ;;  %v13152_v29 = vpack.c.bf16 %v13150_v0, %v13151_v35 }
 0xba0   :  { %7451 = vmatprep.subr.bf16.mxu1 %v8219_v31 }
 0xba3   :  { %7452 = vmatpush3.bf16.msra.mxu1 %v8219_v31  ;;  %v8233_v31 = vld [vmem:[#allocation22 + $0x238] sm:$0xff]  }
 0xba4   :  { %7453 = vmatprep.subr.bf16.mxu1 %v8220_v26 }
 0xba6   :  { %7438 = vmatmul.mubr.bf16.gmra.mrb[12].mxu1 %v13118_v7  ;;  %v13158_v7 = vpack.c.bf16 %v13156_v39, %v13157_v40 }
 0xba7   :  { %7454 = vmatpush3.bf16.msra.mxu1 %v8220_v26  ;;  %7441 = vmatprep.mubr.bf16.mxu1 %v13121_v10  ;;  %v13153_v26 = vld [vmem:[#allocation164_spill] sm:$0xff]  ;;  %v13159_v10 = vld [vmem:[#allocation193_spill] sm:$0xff] }
 0xba8   :  { %7455 = vmatprep.subr.bf16.mxu1 %v8221_v16 }
 0xbab   :  { %7456 = vmatpush3.bf16.msra.mxu1 %v8221_v16  ;;  %v13155_v16 = vpack.c.bf16 %v13153_v26, %v13154_v5 }
 0xbac   :  { %7457 = vmatprep.subr.bf16.mxu1 %v8222_v63 }
 0xbae   :  { %7442 = vmatmul.mubr.bf16.gmra.mrb[16].mxu1 %v13124_v3  ;;  %v13162_v3 = vld [vmem:[#allocation194_spill] sm:$0xff] }
 0xbaf   :  { %7458 = vmatpush3.bf16.msra.mxu1 %v8222_v63  ;;  %7445 = vmatprep.mubr.bf16.mxu1 %v13127_v9  ;;  %v13160_v63 = vpack.c.bf16 %v11869_v34, %v13159_v10  ;;  %v13163_v2 = vpack.c.bf16 %v11887_v42, %v13162_v3  ;;  %v13165_v9 = vpack.c.bf16 %v11897_v48, %v13164_v8  ;;  %v8240_v34 = vld [vmem:[#allocation25 + $0x30] sm:$0xff]   ;;  %v8392_v42 = vld [vmem:[#allocation2 + $0x10] sm:$0xff] }
 0xbb0   :  { %7459 = vmatprep.subr.bf16.mxu1 %v8223_v45  ;;  %v8394_v48 = vld [vmem:[#allocation2 + $0x20] sm:$0xff] }
 0xbb1   :  { %v5827_v30 = vpack.c.bf16 %v8395_v55, %v8394_v48 }
 0xbb3   :  { %7460 = vmatpush3.bf16.msra.mxu1 %v8223_v45  ;;  %v13161_v45 = vpack.c.bf16 %v11879_v23, %v11873_v56  ;;  %v8391_v23 = vld [vmem:[#allocation2 + $0x8] sm:$0xff] }
 0xbb4   :  { %7461 = vmatprep.subr.bf16.mxu1 %v8224_v12 }
 0xbb6   :  { %7446 = vmatmul.mubr.bf16.gmra.mrb[20].mxu1 %v13130_v1  ;;  %v5826_v1 = vpack.c.bf16 %v8393_v11, %v8392_v42 }
 0xbb7   :  { %7462 = vmatpush3.bf16.msra.mxu1 %v8224_v12  ;;  %7465 = vmatprep.mubr.bf16.mxu1 %v13133_v33  ;;  %v8390_v12 = vld [vmem:[#allocation2] sm:$0xff]  ;;  %v8396_v33 = vld [vmem:[#allocation2 + $0x30] sm:$0xff] }
 0xbb8   :  { %7463 = vmatprep.subr.bf16.mxu1 %v8225_v62  ;;  %v5825_v56 = vpack.c.bf16 %v8391_v23, %v8390_v12 }
 0xbbb   :  { %7464 = vmatpush3.bf16.msra.mxu1 %v8225_v62  ;;  %v8241_v62 = vld [vmem:[#allocation25 + $0x38] sm:$0xff]  }
 0xbbc   :  { %7481 = vmatprep.subr.bf16.mxu1 %v8226_v17 }
 0xbbe   :  { %7466 = vmatmul.mubr.bf16.vlgmr.msra.gmra.mrb[8].mxu1 %v13135_v20  ;;  %v8399_v20 = vld [vmem:[#allocation2 + $0x48] sm:$0xff] }
 0xbbf   :  { %7482 = vmatpush3.bf16.msra.mxu1 %v8226_v17  ;;  %7469 = vmatprep.mubr.bf16.mxu1 %v13138_v24  ;;  %v8397_v17 = vld [vmem:[#allocation2 + $0x38] sm:$0xff]  ;;  %v5829_v6 = vpack.c.bf16 %v8399_v20, %v8398_v54  ;;  %v8402_v24 = vld [vmem:[#allocation2 + $0x60] sm:$0xff] }
 0xbc0   :  { %7483 = vmatprep.subr.bf16.mxu1 %v8227_v50 }
 0xbc3   :  { %7484 = vmatpush3.bf16.msra.mxu1 %v8227_v50  ;;  %v5828_v50 = vpack.c.bf16 %v8397_v17, %v8396_v33 }
 0xbc4   :  { %7485 = vmatprep.subr.bf16.mxu1 %v8228_v15 }
 0xbc6   :  { %7470 = vmatmul.mubr.bf16.gmra.mrb[12].mxu1 %v13141_v27  ;;  %v5832_v27 = vpack.c.bf16 %v8405_v22, %v8404_v46 }
 0xbc7   :  { %7486 = vmatpush3.bf16.msra.mxu1 %v8228_v15  ;;  %7473 = vmatprep.mubr.bf16.mxu1 %v13144_v28  ;;  %v8403_v15 = vld [vmem:[#allocation2 + $0x68] sm:$0xff]  ;;  %v7743_v28 = vadd.f32 %v6208_v59, %v6207_v32 }
 0xbc8   :  { %7487 = vmatprep.subr.bf16.mxu1 %v8229_v57 }
 0xbcb   :  { %7488 = vmatpush3.bf16.msra.mxu1 %v8229_v57  ;;  %v5831_v57 = vpack.c.bf16 %v8403_v15, %v8402_v24 }
 0xbcc   :  { %7489 = vmatprep.subr.bf16.mxu1 %v8230_v51 }
 0xbce   :  { %7474 = vmatmul.mubr.bf16.gmra.mrb[16].mxu1 %v13146_v43 }
 0xbcf   :  { %7490 = vmatpush3.bf16.msra.mxu1 %v8230_v51  ;;  %7477 = vmatprep.mubr.bf16.mxu1 %v13147_v25 }
 0xbd0   :  { %7491 = vmatprep.subr.bf16.mxu1 %v8231_v53 }
 0xbd3   :  { %7492 = vmatpush3.bf16.msra.mxu1 %v8231_v53 }
 0xbd4   :  { %7493 = vmatprep.subr.bf16.mxu1 %v8232_v49 }
 0xbd6   :  { %7478 = vmatmul.mubr.bf16.gmra.mrb[20].mxu1 %v5421_v41 }
 0xbd7   :  { %7494 = vmatpush3.bf16.msra.mxu1 %v8232_v49  ;;  %7497 = vmatprep.mubr.bf16.mxu1 %v13152_v29 }
 0xbd8   :  { %7495 = vmatprep.subr.bf16.mxu1 %v8233_v31 }
 0xbdb   :  { %7496 = vmatpush3.bf16.msra.mxu1 %v8233_v31 }
 0xbdc   :  { %7513 = vmatprep.subr.bf16.mxu1 %v8234_v36 }
 0xbde   :  { %7498 = vmatmul.mubr.bf16.vlgmr.msra.gmra.mrb[8].mxu1 %v13155_v16 }
 0xbdf   :  { %7514 = vmatpush3.bf16.msra.mxu1 %v8234_v36  ;;  %7501 = vmatprep.mubr.bf16.mxu1 %v13158_v7 }
 0xbe0   :  { %7515 = vmatprep.subr.bf16.mxu1 %v8235_v44 }
 0xbe3   :  { %7516 = vmatpush3.bf16.msra.mxu1 %v8235_v44 }
 0xbe4   :  { %7517 = vmatprep.subr.bf16.mxu1 %v8236_v47 }
 0xbe6   :  { %7502 = vmatmul.mubr.bf16.gmra.mrb[12].mxu1 %v13160_v63 }
 0xbe7   :  { %7518 = vmatpush3.bf16.msra.mxu1 %v8236_v47  ;;  %7505 = vmatprep.mubr.bf16.mxu1 %v13161_v45 }
 0xbe8   :  { %7519 = vmatprep.subr.bf16.mxu1 %v8237_v18 }
 0xbeb   :  { %7520 = vmatpush3.bf16.msra.mxu1 %v8237_v18 }
 0xbec   :  { %7521 = vmatprep.subr.bf16.mxu1 %v8238_v61 }
 0xbee   :  { %7506 = vmatmul.mubr.bf16.gmra.mrb[16].mxu1 %v13163_v2 }
 0xbef   :  { %7522 = vmatpush3.bf16.msra.mxu1 %v8238_v61  ;;  %7509 = vmatprep.mubr.bf16.mxu1 %v13165_v9 }
 0xbf0   :  { %7523 = vmatprep.subr.bf16.mxu1 %v8239_v14 }
 0xbf3   :  { %7524 = vmatpush3.bf16.msra.mxu1 %v8239_v14 }
 0xbf4   :  { %7525 = vmatprep.subr.bf16.mxu1 %v8240_v34 }
 0xbf6   :  { %7510 = vmatmul.mubr.bf16.gmra.mrb[20].mxu1 %v13166_v37 }
 0xbf7   :  { %7526 = vmatpush3.bf16.msra.mxu1 %v8240_v34  ;;  %7529 = vmatprep.mubr.bf16.mxu1 %v5825_v56 }
 0xbf8   :  { %7527 = vmatprep.subr.bf16.mxu1 %v8241_v62 }
 0xbfb   :  { %7528 = vmatpush3.bf16.msra.mxu1 %v8241_v62 }
 0xbfe   :  { %7530 = vmatmul.mubr.bf16.vlgmr.msra.gmra.mrb[8].mxu1 %v5826_v1 }
 0xbff   :  { %7533 = vmatprep.mubr.bf16.mxu1 %v5827_v30 }
 0xc06   :  { %7534 = vmatmul.mubr.bf16.gmra.mrb[12].mxu1 %v5828_v50 }
 0xc07   :  { %7537 = vmatprep.mubr.bf16.mxu1 %v5829_v6 }
 0xc0e   :  { %7538 = vmatmul.mubr.bf16.gmra.mrb[16].mxu1 %v5830_v21 }
 0xc0f   :  { %7541 = vmatprep.mubr.bf16.mxu1 %v5831_v57 }
 0xc16   :  { %7542 = vmatmul.mubr.bf16.gmra.mrb[20].mxu1 %v5832_v27 }
 0xcd1   :  { %v7531_v51 = vpop.f32.mrb[8].mxu1 }
 0xcd2   :  { %v7737_v53 = vadd.f32 %v7531_v51, %v6207_v32  ;;  %v5938_v38 = vpop.f32.mrb[9].mxu1 }
 0xcd3   :  { %v7739_v43 = vadd.f32 %v6207_v32, %v5938_v38  ;;  %v7532_v25 = vpop.f32.mrb[10].mxu1 }
 0xcd4   :  { %v7738_v49 = vadd.f32 %v7737_v53, %v6208_v59  ;;  %v7742_v52 = vadd.f32 %v7743_v28, %v7532_v25  ;;  %v5941_v13 = vpop.f32.mrb[11].mxu1 }
 0xcd5   :  { %v7740_v60 = vadd.f32 %v7739_v43, %v6208_v59  ;;  %v7744_v4 = vadd.f32 %v7743_v28, %v5941_v13 }
 0xcd6   :  { %6019 = vst [vmem:[#allocation28 + $0x10] sm:$0xff] %v7738_v49  ;;  %6020 = vst [vmem:[#allocation28 + $0x18] sm:$0xff] %v7742_v52 }
 0xcd7   :  { %6017 = vst [vmem:[#allocation28] sm:$0xff] %v7740_v60  ;;  %6018 = vst [vmem:[#allocation28 + $0x8] sm:$0xff] %v7744_v4 }
 0xcd9   :  { %v7535_v41 = vpop.f32.mrb[12].mxu1 }
 0xcda   :  { %v7746_v31 = vadd.f32 %v7743_v28, %v7535_v41  ;;  %v5954_v0 = vpop.f32.mrb[13].mxu1 }
 0xcdb   :  { %v7748_v35 = vadd.f32 %v7743_v28, %v5954_v0  ;;  %v7536_v29 = vpop.f32.mrb[14].mxu1 }
 0xcdc   :  { %6023 = vst [vmem:[#allocation28 + $0x30] sm:$0xff] %v7746_v31  ;;  %v7750_v36 = vadd.f32 %v7743_v28, %v7536_v29  ;;  %v5957_v44 = vpop.f32.mrb[15].mxu1 }
 0xcdd   :  { %6021 = vst [vmem:[#allocation28 + $0x20] sm:$0xff] %v7748_v35  ;;  %v7752_v26 = vadd.f32 %v7743_v28, %v5957_v44 }
 0xcde   :  { %6024 = vst [vmem:[#allocation28 + $0x38] sm:$0xff] %v7750_v36 }
 0xcdf   :  { %6022 = vst [vmem:[#allocation28 + $0x28] sm:$0xff] %v7752_v26 }
 0xce1   :  { %v7539_v5 = vpop.f32.mrb[16].mxu1 }
 0xce2   :  { %v7754_v16 = vadd.f32 %v7743_v28, %v7539_v5  ;;  %v5970_v39 = vpop.f32.mrb[17].mxu1 }
 0xce3   :  { %v7756_v40 = vadd.f32 %v7743_v28, %v5970_v39  ;;  %v7540_v7 = vpop.f32.mrb[18].mxu1 }
 0xce4   :  { %6027 = vst [vmem:[#allocation28 + $0x50] sm:$0xff] %v7754_v16  ;;  %v7758_v47 = vadd.f32 %v7743_v28, %v7540_v7  ;;  %v5973_v18 = vpop.f32.mrb[19].mxu1 }
 0xce5   :  { %6025 = vst [vmem:[#allocation28 + $0x40] sm:$0xff] %v7756_v40  ;;  %v7760_v10 = vadd.f32 %v7743_v28, %v5973_v18 }
 0xce6   :  { %6028 = vst [vmem:[#allocation28 + $0x58] sm:$0xff] %v7758_v47 }
 0xce7   :  { %6026 = vst [vmem:[#allocation28 + $0x48] sm:$0xff] %v7760_v10 }
 0xce9   :  { %v7543_v63 = vpop.f32.mrb[20].mxu1 }
 0xcea   :  { %v7762_v45 = vadd.f32 %v7743_v28, %v7543_v63  ;;  %v5986_v61 = vpop.f32.mrb[21].mxu1 }
 0xceb   :  { %v7764_v14 = vadd.f32 %v7743_v28, %v5986_v61  ;;  %v7544_v3 = vpop.f32.mrb[22].mxu1 }
 0xcec   :  { %6031 = vst [vmem:[#allocation28 + $0x70] sm:$0xff] %v7762_v45  ;;  %v7766_v2 = vadd.f32 %v7743_v28, %v7544_v3  ;;  %v5989_v8 = vpop.f32.mrb[23].mxu1 }
 0xced   :  { %6029 = vst [vmem:[#allocation28 + $0x60] sm:$0xff] %v7764_v14  ;;  %v7768_v9 = vadd.f32 %v7743_v28, %v5989_v8 }
 0xcee   :  { %6032 = vst [vmem:[#allocation28 + $0x78] sm:$0xff] %v7766_v2 }
 0xcef   :  { %6030 = vst [vmem:[#allocation28 + $0x68] sm:$0xff] %v7768_v9 }
 0xcf0   :  { %8769 = shalt.err (!%p8766_p6)
}
 0xcf1   :  { %s8770_s9 = scalar_lea.hbm %s12111_s16, 2048 }
 0xcf2   :  { %p8771_p7 = scmp.ne.s32.totalorder %s12111_s16, %s8770_s9  ;;  %p8774_p8 = scmp.lt.u32.totalorder %s8770_s9, %s12111_s16 }
 0xcf4   :  { %p8776_p9 = pnand %p8774_p8, %p8771_p7 }
 0xcf6   :  { %8779 = shalt.err (!%p8776_p9)
}
 0xcf7   :  { %6044 = dma.vmem_to_hbm [thread:$0]  %s6039_s20, 2048, %s12111_s16, [#allocation4], %s8802_s18, %s8802_s18, %s8803_s19  }
 0xcf8   :  { %8798 = dma.done.wait [#allocation4], 2048  }
 0xcf9   :  { %8799 = vsyncadd [#allocation4], 4294965248 }
 0xcfa   :  { %6048 = vsyncpa [#allocation3], 1 }
 0xcfb   :  { %6049 = vsyncpa [#allocation6], 1 }
 0xcfc   :  { %6050 = vsyncpa [#allocation9], 1 }
 0xcfd   :  { %6051 = vsyncpa [#allocation12], 1 }
 0xcfe   :  { %6052 = vsyncpa [#allocation15], 1 }
 0xcff   :  { %6053 = vsyncpa [#allocation18], 1 }
 0xd00   :  { %6054 = vsyncpa [#allocation21], 1 }
 0xd01   :  { %6055 = vsyncpa [#allocation24], 1 }
 0xd02   :  { %6056 = vsyncpa [#allocation27], 1 }
 0xd03   :  { %6057 = vsyncpa [#allocation4], 1 }

</bundles_post_ra>
